<compile_context>
chip_gen: v6e
topology: v6e:2x2x1
jax: 0.10.0
libtpu: 0.0.40
codegen_flags: <defaults>
</compile_context>

<pallas_src>
import jax
import jax.numpy as jnp
import numpy as np
from jax.experimental import pallas as pl
from jax.experimental.pallas import tpu as pltpu


# ---------------------------------------------------------------------------
# Pallas kernel: one (branch, batch, query-tile) grid step.
# ---------------------------------------------------------------------------
def _psa_branch_kernel(x_ref, w1_ref, s1_ref, b1_ref,
                       w2_ref, s2_ref, b2_ref, w3_ref,
                       o_ref, r_ref):
    """
    x_ref : (1, HW, Cin) bf16  -- all tokens of this batch element (resident across q)
    w*    : (1, ...)     bf16  -- branch weights (resident: branch is the OUTER grid axis)
    s*/b* : (1, 1, RC)   f32   -- folded BatchNorm scale / bias
    o_ref : (1, TQ, RC)  f32   -- output rows for this query tile
    r_ref : (HW, RC)     bf16  -- VMEM scratch: conv_reduce output, computed at q == 0
    """
    q = pl.program_id(2)
    tq = o_ref.shape[1]

    # conv_reduce once per (branch, batch): R = relu(BN(X @ W1))   -> bf16 scratch
    @pl.when(q == 0)
    def _():
        r = jnp.dot(x_ref[0], w1_ref[0], preferred_element_type=jnp.float32)
        r = jnp.maximum(r * s1_ref[0] + b1_ref[0], 0.0)
        r_ref[...] = r.astype(jnp.bfloat16)

    start = pl.multiple_of(q * tq, tq)
    r_q = r_ref[pl.ds(start, tq), :]                               # (TQ, RC) bf16

    # attention head (two 1x1 convs) for this query tile
    a1 = jnp.dot(r_q, w2_ref[0], preferred_element_type=jnp.float32)
    a1 = jnp.maximum(a1 * s2_ref[0] + b2_ref[0], 0.0)
    a = jnp.dot(a1.astype(jnp.bfloat16), w3_ref[0],
                preferred_element_type=jnp.float32)                # (TQ, HW) logits, f32

    # softmax over attention channels (== torch.softmax(attn.view(n,c,hw), dim=1)).
    # The 1/sum goes to the EUP and is folded into the (TQ, RC) output instead of
    # scaling the (TQ, HW) probability slab.
    a = a - jnp.max(a, axis=-1, keepdims=True)
    e = jnp.exp(a)
    inv = pl.reciprocal(jnp.sum(e, axis=-1, keepdims=True), approx=True)  # (TQ, 1)

    fm = jnp.dot(e.astype(jnp.bfloat16), r_ref[...],
                 preferred_element_type=jnp.float32)               # (TQ, RC)
    o_ref[0] = fm * inv


def psa_pallas(x_tokens, params, *, tq=128):
    """x_tokens: (N, HW, Cin) bf16.  Returns (N, HW, 2*RC) float32."""
    N, HW, Cin = x_tokens.shape
    RC = params["w1"].shape[-1]
    tq = min(tq, HW)
    assert HW % tq == 0, "HW must be divisible by the query tile size"
    n_q = HW // tq

    # branch OUTERMOST (weights resident), batch next, query tile innermost (sequential).
    grid = (2, N, n_q)

    in_specs = [
        pl.BlockSpec((1, HW, Cin), lambda br, n, q: (n, 0, 0)),    # x
        pl.BlockSpec((1, Cin, RC), lambda br, n, q: (br, 0, 0)),   # w1
        pl.BlockSpec((1, 1, RC),   lambda br, n, q: (br, 0, 0)),   # s1
        pl.BlockSpec((1, 1, RC),   lambda br, n, q: (br, 0, 0)),   # b1
        pl.BlockSpec((1, RC, RC),  lambda br, n, q: (br, 0, 0)),   # w2
        pl.BlockSpec((1, 1, RC),   lambda br, n, q: (br, 0, 0)),   # s2
        pl.BlockSpec((1, 1, RC),   lambda br, n, q: (br, 0, 0)),   # b2
        pl.BlockSpec((1, RC, HW),  lambda br, n, q: (br, 0, 0)),   # w3
    ]
    # collect branch -> channels [0:RC], distribute branch -> channels [RC:2RC]
    out_specs = pl.BlockSpec((1, tq, RC), lambda br, n, q: (n, q, br))

    return pl.pallas_call(
        _psa_branch_kernel,
        out_shape=jax.ShapeDtypeStruct((N, HW, 2 * RC), jnp.float32),
        grid_spec=pltpu.PrefetchScalarGridSpec(
            num_scalar_prefetch=0,
            grid=grid,
            in_specs=in_specs,
            out_specs=out_specs,
            scratch_shapes=[pltpu.VMEM((HW, RC), jnp.bfloat16)],   # resident conv_reduce R
        ),
        compiler_params=pltpu.CompilerParams(
            dimension_semantics=("parallel", "parallel", "arbitrary"),
            vmem_limit_bytes=32 * 1024 * 1024,
        ),
    )(x_tokens, params["w1"], params["s1"], params["b1"],
      params["w2"], params["s2"], params["b2"], params["w3"])


# ---------------------------------------------------------------------------
# Glue: NCHW <-> (N, HW, C), deterministic parameters, pure-JAX reference.
# ---------------------------------------------------------------------------
def psa_forward_nchw(x_nchw, params):
    N, Cin, H, W = x_nchw.shape
    x_tokens = jnp.transpose(x_nchw, (0, 2, 3, 1)).reshape(N, H * W, Cin)
    out_tokens = psa_pallas(x_tokens.astype(jnp.bfloat16), params)  # (N, HW, 2*RC)
    RC2 = out_tokens.shape[-1]
    return jnp.transpose(out_tokens, (0, 2, 1)).reshape(N, RC2, H, W)


def make_params(key, in_channels, reduced_channels, out_channels, eps=1e-5):
    """Two branches (collect, distribute) stacked along axis 0; BN folded.
    Weights stored in bf16 (MXU operands); scale/bias in f32."""
    ks = jax.random.split(key, 22)
    ki = iter(range(22))

    def conv_w(k, cin, cout):
        return (jax.random.normal(k, (cin, cout), jnp.float32)
                / np.sqrt(cin)).astype(jnp.float32)

    def bn(kg, kb, km, kv, c):
        gamma = jax.random.uniform(kg, (c,), jnp.float32, 0.5, 1.5)
        beta = 0.1 * jax.random.normal(kb, (c,), jnp.float32)
        mean = 0.1 * jax.random.normal(km, (c,), jnp.float32)
        var = jax.random.uniform(kv, (c,), jnp.float32, 0.5, 1.5)
        scale = gamma / jnp.sqrt(var + eps)
        bias = beta - mean * scale
        return scale.reshape(1, c), bias.reshape(1, c)

    w1s, s1s, b1s, w2s, s2s, b2s, w3s = [], [], [], [], [], [], []
    for _branch in range(2):
        w1 = conv_w(ks[next(ki)], in_channels, reduced_channels)
        s1, b1 = bn(ks[next(ki)], ks[next(ki)], ks[next(ki)], ks[next(ki)],
                    reduced_channels)
        w2 = conv_w(ks[next(ki)], reduced_channels, reduced_channels)
        s2, b2 = bn(ks[next(ki)], ks[next(ki)], ks[next(ki)], ks[next(ki)],
                    reduced_channels)
        w3 = conv_w(ks[next(ki)], reduced_channels, out_channels)
        w1s.append(w1); s1s.append(s1); b1s.append(b1)
        w2s.append(w2); s2s.append(s2); b2s.append(b2)
        w3s.append(w3)

    return {
        "w1": jnp.stack(w1s).astype(jnp.bfloat16),
        "s1": jnp.stack(s1s), "b1": jnp.stack(b1s),
        "w2": jnp.stack(w2s).astype(jnp.bfloat16),
        "s2": jnp.stack(s2s), "b2": jnp.stack(b2s),
        "w3": jnp.stack(w3s).astype(jnp.bfloat16),
    }


def reference_nchw(x_nchw, params):
    """Pure-JAX reference with matching numerics (bf16 matmul operands, f32 accum,
    f32 softmax; exact reciprocal)."""
    N, Cin, H, W = x_nchw.shape
    x = jnp.transpose(x_nchw, (0, 2, 3, 1)).reshape(N, H * W, Cin)
    x16 = x.astype(jnp.bfloat16)
    outs = []
    for br in range(2):
        r = jnp.maximum(
            jnp.einsum("npc,cr->npr", x16, params["w1"][br],
                       preferred_element_type=jnp.float32)
            * params["s1"][br] + params["b1"][br], 0.0)
        r16 = r.astype(jnp.bfloat16)
        a1 = jnp.maximum(
            jnp.einsum("npr,rs->nps", r16, params["w2"][br],
                       preferred_element_type=jnp.float32)
            * params["s2"][br] + params["b2"][br], 0.0)
        a = jnp.einsum("nps,so->npo", a1.astype(jnp.bfloat16), params["w3"][br],
                       preferred_element_type=jnp.float32)
        a = a - jnp.max(a, axis=-1, keepdims=True)
        e = jnp.exp(a)
        inv = 1.0 / jnp.sum(e, axis=-1, keepdims=True)
        fm = jnp.einsum("npq,nqr->npr", e.astype(jnp.bfloat16), r16,
                        preferred_element_type=jnp.float32) * inv
        outs.append(fm)
    out = jnp.concatenate(outs, axis=-1)                            # (N, HW, 2RC)
    return jnp.transpose(out, (0, 2, 1)).reshape(N, -1, H, W)


if __name__ == "__main__":
    # Shapes consistent with the module: attention out_channels must equal H*W
    # (required by the bmm in _AttentionGeneration); reduced_channels is the
    # module's hard-coded 512.  H=W=16 -> HW=256 gives two 128-row query tiles.
    N, Cin, H, W = 2, 64, 16, 16
    HW = H * W                      # attention out_channels
    RC = 512                        # reduced_channels (module hard-codes 512)

    key = jax.random.PRNGKey(0)
    kx, kp = jax.random.split(key)
    x = jax.random.normal(kx, (N, Cin, H, W), jnp.float32)
    params = make_params(kp, Cin, RC, HW)

    out = jax.block_until_ready(psa_forward_nchw(x, params))        # (N, 2*RC, H, W)
    ref = jax.block_until_ready(reference_nchw(x, params))

    assert out.shape == (N, 2 * RC, H, W)
    np.testing.assert_allclose(np.asarray(out), np.asarray(ref),
                               rtol=5e-3, atol=5e-3)
    print("KERNEL_OK")
</pallas_src>

<mosaic_0001>
module attributes {stable_mosaic.version = 11 : i64} {
  func.func @_psa_branch_kernel(%arg0: i32, %arg1: i32, %arg2: i32, %arg3: memref<1x256x64xbf16, #tpu.memory_space<vmem>>, %arg4: memref<1x64x512xbf16, #tpu.memory_space<vmem>>, %arg5: memref<1x1x512xf32, #tpu.memory_space<vmem>>, %arg6: memref<1x1x512xf32, #tpu.memory_space<vmem>>, %arg7: memref<1x512x512xbf16, #tpu.memory_space<vmem>>, %arg8: memref<1x1x512xf32, #tpu.memory_space<vmem>>, %arg9: memref<1x1x512xf32, #tpu.memory_space<vmem>>, %arg10: memref<1x512x256xbf16, #tpu.memory_space<vmem>>, %arg11: memref<1x128x512xf32, #tpu.memory_space<vmem>>, %arg12: memref<256x512xbf16, #tpu.memory_space<vmem>>) attributes {dimension_semantics = [#tpu.dimension_semantics<parallel>, #tpu.dimension_semantics<parallel>, #tpu.dimension_semantics<arbitrary>], iteration_bounds = array<i64: 2, 2, 2>, scalar_prefetch = 0 : i64, scratch_operands = 1 : i64, tpu.core_type = #tpu.core_type<tc>, window_params = [{transform_indices = @transform_0, window_bounds = array<i64: 1, 256, 64>}, {transform_indices = @transform_1, window_bounds = array<i64: 1, 64, 512>}, {transform_indices = @transform_2, window_bounds = array<i64: 1, 1, 512>}, {transform_indices = @transform_3, window_bounds = array<i64: 1, 1, 512>}, {transform_indices = @transform_4, window_bounds = array<i64: 1, 512, 512>}, {transform_indices = @transform_5, window_bounds = array<i64: 1, 1, 512>}, {transform_indices = @transform_6, window_bounds = array<i64: 1, 1, 512>}, {transform_indices = @transform_7, window_bounds = array<i64: 1, 512, 256>}, {transform_indices = @transform_8, window_bounds = array<i64: 1, 128, 512>}]} {
    %c0_i32 = arith.constant 0 : i32
    %0 = arith.cmpi eq, %arg2, %c0_i32 : i32
    %1 = arith.extui %0 : i1 to i32
    %c0_i32_0 = arith.constant 0 : i32
    %2 = arith.cmpi ne, %1, %c0_i32_0 : i32
    scf.if %2 {
      %c0_23 = arith.constant 0 : index
      %c0_24 = arith.constant 0 : index
      %c0_25 = arith.constant 0 : index
      %40 = vector.load %arg3[%c0_23, %c0_24, %c0_25] : memref<1x256x64xbf16, #tpu.memory_space<vmem>>, vector<1x256x64xbf16>
      %41 = vector.shape_cast %40 : vector<1x256x64xbf16> to vector<256x64xbf16>
      %c0_26 = arith.constant 0 : index
      %c0_27 = arith.constant 0 : index
      %c0_28 = arith.constant 0 : index
      %42 = vector.load %arg4[%c0_26, %c0_27, %c0_28] : memref<1x64x512xbf16, #tpu.memory_space<vmem>>, vector<1x64x512xbf16>
      %43 = vector.shape_cast %42 : vector<1x64x512xbf16> to vector<64x512xbf16>
      %cst_29 = arith.constant dense<0.000000e+00> : vector<256x512xf32>
      %44 = tpu.matmul %41, %43, %cst_29 {dimension_numbers = #tpu.dot_dimension_numbers<[1], [0], [0], [1], [0, 0, 1, 1], [], []>} : vector<256x64xbf16>, vector<64x512xbf16>, vector<256x512xf32> -> vector<256x512xf32>
      %c0_30 = arith.constant 0 : index
      %c0_31 = arith.constant 0 : index
      %c0_32 = arith.constant 0 : index
      %45 = vector.load %arg5[%c0_30, %c0_31, %c0_32] : memref<1x1x512xf32, #tpu.memory_space<vmem>>, vector<1x1x512xf32>
      %46 = vector.shape_cast %45 : vector<1x1x512xf32> to vector<1x512xf32>
      %47 = vector.broadcast %46 : vector<1x512xf32> to vector<256x512xf32>
      %48 = arith.mulf %44, %47 : vector<256x512xf32>
      %c0_33 = arith.constant 0 : index
      %c0_34 = arith.constant 0 : index
      %c0_35 = arith.constant 0 : index
      %49 = vector.load %arg6[%c0_33, %c0_34, %c0_35] : memref<1x1x512xf32, #tpu.memory_space<vmem>>, vector<1x1x512xf32>
      %50 = vector.shape_cast %49 : vector<1x1x512xf32> to vector<1x512xf32>
      %51 = vector.broadcast %50 : vector<1x512xf32> to vector<256x512xf32>
      %52 = arith.addf %48, %51 : vector<256x512xf32>
      %cst_36 = arith.constant 0.000000e+00 : f32
      %53 = vector.broadcast %cst_36 : f32 to vector<256x512xf32>
      %54 = arith.maximumf %52, %53 : vector<256x512xf32>
      %55 = arith.truncf %54 : vector<256x512xf32> to vector<256x512xbf16>
      %c0_37 = arith.constant 0 : index
      %c0_38 = arith.constant 0 : index
      %56 = vector.load %arg12[%c0_37, %c0_38] : memref<256x512xbf16, #tpu.memory_space<vmem>>, vector<256x512xbf16>
      tpu.vector_store %arg12[%c0_37, %c0_38], %55 {strides = array<i32>} : memref<256x512xbf16, #tpu.memory_space<vmem>>, vector<256x512xbf16>,
    } else {
    }
    %c128_i32 = arith.constant 128 : i32
    %3 = arith.muli %arg2, %c128_i32 : i32
    %4 = tpu.assume_multiple %3, 128 : i32
    %5 = arith.index_cast %4 : i32 to index
    %c0 = arith.constant 0 : index
    %6 = vector.load %arg12[%5, %c0] : memref<256x512xbf16, #tpu.memory_space<vmem>>, vector<128x512xbf16>
    %c0_1 = arith.constant 0 : index
    %c0_2 = arith.constant 0 : index
    %c0_3 = arith.constant 0 : index
    %7 = vector.load %arg7[%c0_1, %c0_2, %c0_3] : memref<1x512x512xbf16, #tpu.memory_space<vmem>>, vector<1x512x512xbf16>
    %8 = vector.shape_cast %7 : vector<1x512x512xbf16> to vector<512x512xbf16>
    %cst = arith.constant dense<0.000000e+00> : vector<128x512xf32>
    %9 = tpu.matmul %6, %8, %cst {dimension_numbers = #tpu.dot_dimension_numbers<[1], [0], [0], [1], [0, 0, 1, 1], [], []>} : vector<128x512xbf16>, vector<512x512xbf16>, vector<128x512xf32> -> vector<128x512xf32>
    %c0_4 = arith.constant 0 : index
    %c0_5 = arith.constant 0 : index
    %c0_6 = arith.constant 0 : index
    %10 = vector.load %arg8[%c0_4, %c0_5, %c0_6] : memref<1x1x512xf32, #tpu.memory_space<vmem>>, vector<1x1x512xf32>
    %11 = vector.shape_cast %10 : vector<1x1x512xf32> to vector<1x512xf32>
    %12 = vector.broadcast %11 : vector<1x512xf32> to vector<128x512xf32>
    %13 = arith.mulf %9, %12 : vector<128x512xf32>
    %c0_7 = arith.constant 0 : index
    %c0_8 = arith.constant 0 : index
    %c0_9 = arith.constant 0 : index
    %14 = vector.load %arg9[%c0_7, %c0_8, %c0_9] : memref<1x1x512xf32, #tpu.memory_space<vmem>>, vector<1x1x512xf32>
    %15 = vector.shape_cast %14 : vector<1x1x512xf32> to vector<1x512xf32>
    %16 = vector.broadcast %15 : vector<1x512xf32> to vector<128x512xf32>
    %17 = arith.addf %13, %16 : vector<128x512xf32>
    %cst_10 = arith.constant 0.000000e+00 : f32
    %18 = vector.broadcast %cst_10 : f32 to vector<128x512xf32>
    %19 = arith.maximumf %17, %18 : vector<128x512xf32>
    %20 = arith.truncf %19 : vector<128x512xf32> to vector<128x512xbf16>
    %c0_11 = arith.constant 0 : index
    %c0_12 = arith.constant 0 : index
    %c0_13 = arith.constant 0 : index
    %21 = vector.load %arg10[%c0_11, %c0_12, %c0_13] : memref<1x512x256xbf16, #tpu.memory_space<vmem>>, vector<1x512x256xbf16>
    %22 = vector.shape_cast %21 : vector<1x512x256xbf16> to vector<512x256xbf16>
    %cst_14 = arith.constant dense<0.000000e+00> : vector<128x256xf32>
    %23 = tpu.matmul %20, %22, %cst_14 {dimension_numbers = #tpu.dot_dimension_numbers<[1], [0], [0], [1], [0, 0, 1, 1], [], []>} : vector<128x512xbf16>, vector<512x256xbf16>, vector<128x256xf32> -> vector<128x256xf32>
    %cst_15 = arith.constant dense<0xFF800000> : vector<128xf32>
    %24 = vector.multi_reduction <maximumf>, %23, %cst_15 [1] : vector<128x256xf32> to vector<128xf32>
    %25 = vector.shape_cast %24 : vector<128xf32> to vector<128x1xf32>
    %26 = vector.broadcast %25 : vector<128x1xf32> to vector<128x256xf32>
    %27 = arith.subf %23, %26 : vector<128x256xf32>
    %28 = math.exp %27 : vector<128x256xf32>
    %cst_16 = arith.constant dense<0.000000e+00> : vector<128xf32>
    %29 = vector.multi_reduction <add>, %28, %cst_16 [1] : vector<128x256xf32> to vector<128xf32>
    %30 = vector.shape_cast %29 : vector<128xf32> to vector<128x1xf32>
    %31 = tpu.reciprocal %30 {approx = true} : vector<128x1xf32> -> vector<128x1xf32>
    %32 = arith.truncf %28 : vector<128x256xf32> to vector<128x256xbf16>
    %c0_17 = arith.constant 0 : index
    %c0_18 = arith.constant 0 : index
    %33 = vector.load %arg12[%c0_17, %c0_18] : memref<256x512xbf16, #tpu.memory_space<vmem>>, vector<256x512xbf16>
    %cst_19 = arith.constant dense<0.000000e+00> : vector<128x512xf32>
    %34 = tpu.matmul %32, %33, %cst_19 {dimension_numbers = #tpu.dot_dimension_numbers<[1], [0], [0], [1], [0, 0, 1, 1], [], []>} : vector<128x256xbf16>, vector<256x512xbf16>, vector<128x512xf32> -> vector<128x512xf32>
    %35 = vector.broadcast %31 : vector<128x1xf32> to vector<128x512xf32>
    %36 = arith.mulf %34, %35 : vector<128x512xf32>
    %c0_20 = arith.constant 0 : index
    %c0_21 = arith.constant 0 : index
    %c0_22 = arith.constant 0 : index
    %37 = vector.load %arg11[%c0_20, %c0_21, %c0_22] : memref<1x128x512xf32, #tpu.memory_space<vmem>>, vector<1x128x512xf32>
    %38 = vector.shape_cast %37 : vector<1x128x512xf32> to vector<128x512xf32>
    %39 = vector.shape_cast %36 : vector<128x512xf32> to vector<1x128x512xf32>
    tpu.vector_store %arg11[%c0_20, %c0_21, %c0_22], %39 {strides = array<i32>} : memref<1x128x512xf32, #tpu.memory_space<vmem>>, vector<1x128x512xf32>,
    return
  }
  func.func @transform_0(%arg0: i32, %arg1: i32, %arg2: i32) -> (i32, i32, i32) {
    %c0_i32 = arith.constant 0 : i32
    %c0_i32_0 = arith.constant 0 : i32
    %c0_i32_1 = arith.constant 0 : i32
    return %arg1, %c0_i32, %c0_i32_0 : i32, i32, i32
  }
  func.func @transform_1(%arg0: i32, %arg1: i32, %arg2: i32) -> (i32, i32, i32) {
    %c0_i32 = arith.constant 0 : i32
    %c0_i32_0 = arith.constant 0 : i32
    %c0_i32_1 = arith.constant 0 : i32
    return %arg0, %c0_i32, %c0_i32_0 : i32, i32, i32
  }
  func.func @transform_2(%arg0: i32, %arg1: i32, %arg2: i32) -> (i32, i32, i32) {
    %c0_i32 = arith.constant 0 : i32
    %c0_i32_0 = arith.constant 0 : i32
    %c0_i32_1 = arith.constant 0 : i32
    return %arg0, %c0_i32, %c0_i32_0 : i32, i32, i32
  }
  func.func @transform_3(%arg0: i32, %arg1: i32, %arg2: i32) -> (i32, i32, i32) {
    %c0_i32 = arith.constant 0 : i32
    %c0_i32_0 = arith.constant 0 : i32
    %c0_i32_1 = arith.constant 0 : i32
    return %arg0, %c0_i32, %c0_i32_0 : i32, i32, i32
  }
  func.func @transform_4(%arg0: i32, %arg1: i32, %arg2: i32) -> (i32, i32, i32) {
    %c0_i32 = arith.constant 0 : i32
    %c0_i32_0 = arith.constant 0 : i32
    %c0_i32_1 = arith.constant 0 : i32
    return %arg0, %c0_i32, %c0_i32_0 : i32, i32, i32
  }
  func.func @transform_5(%arg0: i32, %arg1: i32, %arg2: i32) -> (i32, i32, i32) {
    %c0_i32 = arith.constant 0 : i32
    %c0_i32_0 = arith.constant 0 : i32
    %c0_i32_1 = arith.constant 0 : i32
    return %arg0, %c0_i32, %c0_i32_0 : i32, i32, i32
  }
  func.func @transform_6(%arg0: i32, %arg1: i32, %arg2: i32) -> (i32, i32, i32) {
    %c0_i32 = arith.constant 0 : i32
    %c0_i32_0 = arith.constant 0 : i32
    %c0_i32_1 = arith.constant 0 : i32
    return %arg0, %c0_i32, %c0_i32_0 : i32, i32, i32
  }
  func.func @transform_7(%arg0: i32, %arg1: i32, %arg2: i32) -> (i32, i32, i32) {
    %c0_i32 = arith.constant 0 : i32
    %c0_i32_0 = arith.constant 0 : i32
    %c0_i32_1 = arith.constant 0 : i32
    return %arg0, %c0_i32, %c0_i32_0 : i32, i32, i32
  }
  func.func @transform_8(%arg0: i32, %arg1: i32, %arg2: i32) -> (i32, i32, i32) {
    %c0_i32 = arith.constant 0 : i32
    return %arg1, %arg2, %arg0 : i32, i32, i32
  }
}

</mosaic_0001>

<bundles_post_ra>
// kernel: tpu_custom_call.1
= control target key start
LH: loop header
LB: loop body
LE: loop exit
PB: predicated region body
PF: predicated region fallthrough
CT: control target
= control target key end

     0   :  { %s8825_s0 = inlined_call_operand.vmem [shape: bf16[2,256,64], index: 0, kind: input, shape index: {}]   ;;  %s8826_s1 = inlined_call_operand.hbm [shape: bf16[2,64,512], index: 1, kind: input, shape index: {}]   ;;  %s8827_s2 = inlined_call_operand.hbm [shape: f32[2,1,512], index: 2, kind: input, shape index: {}]   ;;  %s8828_s3 = inlined_call_operand.hbm [shape: f32[2,1,512], index: 3, kind: input, shape index: {}]   ;;  %s8829_s4 = inlined_call_operand.hbm [shape: bf16[2,512,512], index: 4, kind: input, shape index: {}]   ;;  %s8830_s5 = inlined_call_operand.hbm [shape: f32[2,1,512], index: 5, kind: input, shape index: {}]   ;;  %s8831_s6 = inlined_call_operand.hbm [shape: f32[2,1,512], index: 6, kind: input, shape index: {}]   ;;  %s8832_s7 = inlined_call_operand.hbm [shape: bf16[2,512,256], index: 7, kind: input, shape index: {}]   ;;  %s8833_s8 = inlined_call_operand.hbm [shape: f32[2,256,1024], index: 8, kind: output, shape index: {}]  }
   0x1   :  { %8857 = sst [smem:[#allocation38_spill]] %s8825_s0 }
   0x2   :  { %8858 = sst [smem:[#allocation39_spill]] %s8827_s2 }
   0x3   :  { %8859 = sst [smem:[#allocation40_spill]] %s8829_s4 }
   0x4   :  { %8860 = sst [smem:[#allocation41_spill]] %s8833_s8 }
   0x5   :  { %13 = vsyncpa [#allocation4], 0 }
   0x6   :  { %15 = vsyncpa [#allocation4 + $0x1], 0 }
   0x7   :  { %16 = vsyncpa [#allocation7], 0 }
   0x8   :  { %18 = vsyncpa [#allocation7 + $0x1], 0 }
   0x9   :  { %19 = vsyncpa [#allocation10], 0 }
   0xa   :  { %21 = vsyncpa [#allocation10 + $0x1], 0 }
   0xb   :  { %22 = vsyncpa [#allocation13], 0 }
   0xc   :  { %24 = vsyncpa [#allocation13 + $0x1], 0 }
   0xd   :  { %25 = vsyncpa [#allocation5], 0 }
   0xe   :  { %27 = vsyncpa [#allocation5 + $0x1], 0  ;;  %s7300_s27 = smov 0   ;;  %s7302_s28 = smov 0  }
   0xf   :  { %s7304_s29 = smov 0   ;;  %s7306_s30 = smov 0  }
  0x10   :  { %s7308_s9 = smov 0   ;;  %s7310_s10 = smov 0  }
  0x11   :  { %s7312_s11 = smov 0   ;;  %s7314_s12 = smov 0  }
  0x12   :  { %s7316_s13 = smov 0   ;;  %s7318_s14 = smov 0  }
  0x13   :  { %s7320_s15 = smov 0   ;;  %s7322_s16 = smov 0  }
  0x14   :  { %s7324_s17 = smov 0  }
  0x15 LB: > { %8861 = sst [smem:[#allocation21_spill]] %s7189_s27  ;;  %s7364_s18 = sadd.s32 4294967295, %s7237_s17   ;;  %s7237_s17 = sphi %s7324_s17, %s33_s17   ;;  %s7233_s16 = sphi %s7322_s16, %s8922_s16   ;;  %s7229_s15 = sphi %s7320_s15, %s8915_s15   ;;  %s7225_s14 = sphi %s7318_s14, %s8914_s14   ;;  %s7221_s13 = sphi %s7316_s13, %s8921_s13   ;;  %s7217_s12 = sphi %s7314_s12, %s8913_s12   ;;  %s7213_s11 = sphi %s7312_s11, %s8920_s11   ;;  %s7209_s10 = sphi %s7310_s10, %s8911_s10   ;;  %s7205_s9 = sphi %s7308_s9, %s8919_s9   ;;  %s7201_s30 = sphi %s7306_s30, %s8918_s30   ;;  %s7197_s29 = sphi %s7304_s29, %s8909_s29   ;;  %s7193_s28 = sphi %s7302_s28, %s8908_s28   ;;  %s7189_s27 = sphi %s7300_s27, %s8907_s27  }
  0x16   : > { %8862 = sst [smem:[#allocation22_spill]] %s7193_s28  ;;  %s5632_s19 = sadd.s32 4294967294, %s7237_s17  }
  0x17   : > { %8863 = sst [smem:[#allocation23_spill]] %s7197_s29  ;;  %s45_s20 = sadd.s32 1, %s7225_s14 }
  0x18   : > { %8864 = sst [smem:[#allocation24_spill]] %s7209_s10  ;;  %s48_s21 = sadd.s32 1, %s7229_s15 }
  0x19   : > { %8865 = sst [smem:[#allocation25_spill]] %s7213_s11  ;;  %p46_p0 = scmp.ge.s32.totalorder %s45_s20, 2 }
  0x1a   : > { %8866 = sst [smem:[#allocation26_spill]] %s7217_s12  ;;  %s52_s22 = sadd.s32 1, %s7233_s16 }
  0x1b   : > { %8867 = sst [smem:[#allocation27_spill]] %s7221_s13  ;;  %s85_s23 = sadd.s32 1, %s7209_s10 }
  0x1c   : > { %8868 = sst [smem:[#allocation28_spill]] %s7225_s14  ;;  %p92_p1 = scmp.ne.s32.totalorder %s7209_s10, %s7205_s9 }
  0x1d   : > { %8869 = sst [smem:[#allocation29_spill]] %s7229_s15  ;;  %s8924_s20 = smov (%p46_p0, %s45_s20), 0 }
  0x1e   : > { %8870 = sst [smem:[#allocation30_spill]] %s7237_s17  ;;  %s8926_s21 = smov (!%p46_p0, %s48_s21), %s7229_s15 }
  0x1f   : > { %8871 = sst [smem:[#allocation31_spill]] %s8924_s20  ;;  %p93_p2 = scmp.eq.s32.totalorder %s7237_s17, 0 }
  0x20   : > { %p98_p3 = scmp.ne.s32.totalorder %s7205_s9, %s7201_s30  ;;  %p50_p4 = scmp.ge.s32.totalorder %s8926_s21, 2 }
  0x21   : > { %p99_p5 = scmp.eq.s32.totalorder %s7364_s18, 0  ;;  %p7379_p6 = por %p93_p2, %p92_p1 }
  0x22   : > { %s265_s25 = ssub.s32 %s7225_s14, %s8924_s20  ;;  %s8928_s21 = smov (%p50_p4, %s8926_s21), 0 }
  0x23   : > { %8873 = sst [smem:[#allocation32_spill]] %s8928_s21  ;;  %s8930_s22 = smov (!%p50_p4, %s52_s22), %s7233_s16 }
  0x24   : > { %p7388_p7 = por %p99_p5, %p98_p3  ;;  %s264_s8 = ssub.s32 %s7229_s15, %s8928_s21 }
  0x25   : > { %p54_p8 = scmp.ge.s32.totalorder %s8930_s22, 2  ;;  %s266_s30 = sor.u32 %s265_s25, %s264_s8 }
  0x26   : > { %s271_s13 = sadd.s32 1, %s7197_s29  ;;  %p281_p9 = scmp.ne.s32.totalorder %s7197_s29, %s7193_s28 }
  0x27   : > { %s8932_s22 = smov (%p54_p8, %s8930_s22), 0  ;;  %p282_p10 = scmp.eq.s32.totalorder %s7364_s18, 7 }
  0x28   : > { %8875 = sst [smem:[#allocation33_spill]] %s8932_s22  ;;  %p287_p11 = scmp.ne.s32.totalorder %s7193_s28, %s7189_s27 }
  0x29   : > { %s82_s20 = ssub.s32 %s7233_s16, %s8932_s22  ;;  %p288_p12 = scmp.eq.s32.totalorder %s5632_s19, 7 }
  0x2a   : > { %p83_p13 = scmp.eq.s32.totalorder %s82_s20, 0  ;;  %s268_s14 = sor.u32 %s266_s30, %s82_s20 }
  0x2b   : > { %p269_p0 = scmp.eq.s32.totalorder %s268_s14, 0  ;;  %p7404_p1 = por %p282_p10, %p281_p9 }
  0x2c   : > { %s7409_s8 = scalar_select %p83_p13, %s7209_s10, %s85_s23  }
  0x2d   : > { %s8876_s21 = scalar_select %p7404_p1, 1, 0 }
  0x2e   : > { %8878 = sst [smem:[#allocation35_spill]] %s7409_s8  ;;  %p7414_p2 = por %p288_p12, %p287_p11 }
  0x2f   : > { %8877 = sst [smem:[#allocation34_spill]] %s8876_s21  ;;  %p6211_p3 = scmp.lt.s32.totalorder %s7237_s17, 8 }
  0x30   : > { %s7412_s25 = scalar_select %p269_p0, %s7197_s29, %s271_s13  }
  0x31   : > { %s8880_s15 = scalar_select %p7414_p2, 1, 0 }
  0x32   : > { %8879 = sst [smem:[#allocation36_spill]] %s7412_s25  ;;  %s7420_s27 = sand.u32 1, %s7209_s10  }
  0x33   : > { %8881 = sst [smem:[#allocation37_spill]] %s8880_s15  ;;  %s7423_s19 = sand.u32 1, %s7237_s17  }
  0x34   : > { %s7426_s14 = sshll.u32 %s7420_s27, 2  ;;  %p7430_p4 = pnand %p6211_p3, %p7379_p6 }
  0x35   : > { %s7435_s13 = sshll.u32 %s7233_s16, 6  ;;  %s8883_s2 = sld [smem:[#allocation39_spill]] }
  0x36   : > { %s341_s8 = scalar_lea.vmem [#allocation6], %s7426_s14  ;;  %p5656_p5 = scmp.ge.s32.totalorder %s7237_s17, 1 }
  0x37   : > { %s349_s10 = sshll.u32 %s341_s8, 4  ;;  %s8848_s25 = scalar_lea.sflag [#allocation7], %s7423_s19  ;;  %s350_s10 = int_to_ptr.vmem [resolvable:$true] %s349_s10 }
  0x38   : > { %p7446_p8 = pneg %p7430_p4  ;;  %s6906_s29 = scalar_lea.vmem %s350_s10, 64 }
  0x39   : > { %p6907_p6 = scmp.ne.s32.totalorder %s350_s10, %s6906_s29  ;;  %s7239_s15 = smov [#allocation6]  }
  0x3a   : > { %s6911_s21 = sshll.u32 %s7239_s15, 4  ;;  %s6912_s21 = int_to_ptr.vmem [resolvable:$false] %s6911_s21 }
  0x3b   : > { %s347_s22 = scalar_lea.hbm %s8883_s2, %s7435_s13  ;;  %p6909_p9 = pnand %p6907_p6, %p7446_p8 }
  0x3c   : > { %s6913_s23 = scalar_lea.vmem %s6912_s21, 128  ;;  %p6914_p11 = scmp.lt.s32.totalorder %s350_s10, %s6912_s21 }
  0x3d   : > { %p6910_p10 = pneg %p6909_p9  ;;  %p6915_p12 = scmp.lt.s32.totalorder %s6913_s23, %s6906_s29 }
  0x3f   : > { %p6916_p13 = por %p6915_p12, %p6914_p11 }
  0x41   : > { %p6917_p0 = pnand %p6916_p13, %p6910_p10 }
  0x43   : > { %6920 = shalt.err (!%p6917_p0)
}
  0x44   : > { %6191 = dma.hbm_to_vmem [thread:$0]  (!%p7430_p4), %s347_s22, 64, %s350_s10, %s8848_s25  }
  0x45   : > { %p453_p3 = scmp.lt.s32.totalorder %s7237_s17, 9  ;;  %s5644_s15 = sshll.u32 %s7420_s27, 10 }
  0x46   : > { %s6098_s29 = sshll.u32 %s7233_s16, 14  ;;  %s379_s8 = scalar_lea.vmem [#allocation9], %s5644_s15 }
  0x47   : > { %p7460_p6 = pnand %p5656_p5, %p453_p3  ;;  %s386_s30 = sshll.u32 %s379_s8, 4  ;;  %s387_s30 = int_to_ptr.vmem [resolvable:$true] %s386_s30 }
  0x48   : > { %s8886_s4 = sld [smem:[#allocation40_spill]]  ;;  %s8853_s0 = scalar_lea.sflag [#allocation10], %s7423_s19 }
  0x49   : > { %s6934_s12 = scalar_lea.vmem %s387_s30, 16384  ;;  %s7240_s10 = smov [#allocation9]  }
  0x4a   : > { %p6935_p9 = scmp.ne.s32.totalorder %s387_s30, %s6934_s12  ;;  %s6939_s22 = sshll.u32 %s7240_s10, 4  ;;  %s6940_s22 = int_to_ptr.vmem [resolvable:$false] %s6939_s22 }
  0x4b   : > { %s6941_s25 = scalar_lea.vmem %s6940_s22, 32768  ;;  %p6942_p5 = scmp.lt.s32.totalorder %s387_s30, %s6940_s22 }
  0x4c   : > { %p6937_p10 = pnand %p6935_p9, %p7446_p8  ;;  %p6943_p12 = scmp.lt.s32.totalorder %s6941_s25, %s6934_s12 }
  0x4e   : > { %s385_s11 = scalar_lea.hbm %s8886_s4, %s6098_s29  ;;  %p6938_p11 = pneg %p6937_p10 }
  0x4f   : > { %p6944_p13 = por %p6943_p12, %p6942_p5 }
  0x51   : > { %p6945_p0 = pnand %p6944_p13, %p6938_p11 }
  0x53   : > { %6948 = shalt.err (!%p6945_p0)
}
  0x54   : > { %s8854_s15 = smov 256   ;;  %s8855_s2 = smov 16  }
  0x55   : > { %6197 = dma.hbm_to_vmem [thread:$0]  (!%p7430_p4), %s385_s11, 16384, %s387_s30, %s8853_s0, %s8854_s15, %s8854_s15, %s8855_s2  }
  0x56   : > { %s425_s12 = scalar_lea.hbm %s8831_s6, %s7435_s13  ;;  %s419_s25 = scalar_lea.vmem [#allocation12], %s7426_s14 }
  0x57   : > { %s427_s23 = sshll.u32 %s419_s25, 4  ;;  %s8856_s10 = scalar_lea.sflag [#allocation13], %s7423_s19  ;;  %s428_s23 = int_to_ptr.vmem [resolvable:$true] %s427_s23 }
  0x58   : > { %s6962_s22 = scalar_lea.vmem %s428_s23, 64  ;;  %s7243_s4 = smov [#allocation12]  }
  0x59   : > { %p6963_p3 = scmp.ne.s32.totalorder %s428_s23, %s6962_s22  ;;  %s6967_s17 = sshll.u32 %s7243_s4, 4  ;;  %s6968_s17 = int_to_ptr.vmem [resolvable:$false] %s6967_s17 }
  0x5a   : > { %s6969_s28 = scalar_lea.vmem %s6968_s17, 128  ;;  %p6970_p11 = scmp.lt.s32.totalorder %s428_s23, %s6968_s17 }
  0x5b   : > { %p6965_p9 = pnand %p6963_p3, %p7446_p8  ;;  %p6971_p5 = scmp.lt.s32.totalorder %s6969_s28, %s6962_s22 }
  0x5d   : > { %p6966_p10 = pneg %p6965_p9  ;;  %p6972_p12 = por %p6971_p5, %p6970_p11 }
  0x5f   : > { %p6973_p13 = pnand %p6972_p12, %p6966_p10 }
  0x61   : > { %6976 = shalt.err (!%p6973_p13)
}
  0x62   : > { %6203 = dma.hbm_to_vmem [thread:$0]  (!%p7430_p4), %s425_s12, 64, %s428_s23, %s8856_s10  }
  0x63   : > { %s5635_s11 = sshll.u32 %s7420_s27, 7  ;;  %s6095_s30 = sshll.u32 %s7233_s16, 11 }
  0x64   : > { %s326_s17 = scalar_lea.hbm %s8826_s1, %s6095_s30  ;;  %s320_s28 = scalar_lea.vmem [#allocation3], %s5635_s11 }
  0x65   : > { %s327_s8 = sshll.u32 %s320_s28, 4  ;;  %s366_s0 = scalar_lea.hbm %s8828_s3, %s7435_s13  ;;  %s328_s8 = int_to_ptr.vmem [resolvable:$true] %s327_s8 }
  0x66   : > { %s317_s15 = scalar_lea.sflag [#allocation4], %s7420_s27  ;;  %s6990_s2 = scalar_lea.vmem %s328_s8, 2048 }
  0x67   : > { %p6991_p0 = scmp.ne.s32.totalorder %s328_s8, %s6990_s2  ;;  %s7244_s12 = smov [#allocation3]  }
  0x68   : > { %s6995_s23 = sshll.u32 %s7244_s12, 4  ;;  %s6996_s23 = int_to_ptr.vmem [resolvable:$false] %s6995_s23 }
  0x69   : > { %p6993_p3 = pnand %p6991_p0, %p7446_p8  ;;  %s6997_s10 = scalar_lea.vmem %s6996_s23, 4096 }
  0x6a   : > { %p6998_p10 = scmp.lt.s32.totalorder %s328_s8, %s6996_s23  ;;  %p6999_p11 = scmp.lt.s32.totalorder %s6997_s10, %s6990_s2 }
  0x6b   : > { %p6994_p9 = pneg %p6993_p3 }
  0x6c   : > { %p7000_p5 = por %p6999_p11, %p6998_p10 }
  0x6e   : > { %p7001_p12 = pnand %p7000_p5, %p6994_p9 }
  0x70   : > { %7004 = shalt.err (!%p7001_p12)
}
  0x71   : > { %s8887_s11 = smov 16   ;;  %s8888_s30 = smov 256  }
  0x72   : > { %6188 = dma.hbm_to_vmem [thread:$0]  (!%p7430_p4), %s326_s17, 2048, %s328_s8, %s317_s15, %s8888_s30, %s8888_s30, %s8887_s11  }
  0x73   : > { %s360_s4 = scalar_lea.vmem [#allocation8], %s7426_s14  ;;  %s406_s22 = scalar_lea.hbm %s8830_s5, %s7435_s13 }
  0x74   : > { %s368_s29 = sshll.u32 %s360_s4, 4  ;;  %s7245_s10 = smov [#allocation8]   ;;  %s369_s29 = int_to_ptr.vmem [resolvable:$true] %s368_s29 }
  0x75   : > { %s7018_s2 = scalar_lea.vmem %s369_s29, 64  ;;  %s7023_s12 = sshll.u32 %s7245_s10, 4  ;;  %s7024_s12 = int_to_ptr.vmem [resolvable:$false] %s7023_s12 }
  0x76   : > { %p7019_p13 = scmp.ne.s32.totalorder %s369_s29, %s7018_s2  ;;  %s7025_s23 = scalar_lea.vmem %s7024_s12, 128 }
  0x77   : > { %p7026_p9 = scmp.lt.s32.totalorder %s369_s29, %s7024_s12  ;;  %p7027_p10 = scmp.lt.s32.totalorder %s7025_s23, %s7018_s2 }
  0x78   : > { %p7021_p0 = pnand %p7019_p13, %p7446_p8 }
  0x79   : > { %p7028_p11 = por %p7027_p10, %p7026_p9 }
  0x7a   : > { %p7022_p3 = pneg %p7021_p0 }
  0x7c   : > { %p7029_p5 = pnand %p7028_p11, %p7022_p3 }
  0x7e   : > { %7032 = shalt.err (!%p7029_p5)
}
  0x7f   : > { %s8889_s15 = scalar_lea.sflag [#allocation7], %s7423_s19  ;;  %s400_s11 = scalar_lea.vmem [#allocation11], %s7426_s14 }
  0x80   : > { %6194 = dma.hbm_to_vmem [thread:$0]  (!%p7430_p4), %s366_s0, 64, %s369_s29, %s8889_s15  }
  0x81   : > { %s408_s30 = sshll.u32 %s400_s11, 4  ;;  %s5653_s4 = sshll.u32 %s7420_s27, 9  ;;  %s409_s30 = int_to_ptr.vmem [resolvable:$true] %s408_s30 }
  0x82   : > { %s7046_s28 = scalar_lea.vmem %s409_s30, 64  ;;  %s7246_s25 = smov [#allocation11]  }
  0x83   : > { %p7047_p12 = scmp.ne.s32.totalorder %s409_s30, %s7046_s28  ;;  %s7051_s2 = sshll.u32 %s7246_s25, 4  ;;  %s7052_s2 = int_to_ptr.vmem [resolvable:$false] %s7051_s2 }
  0x84   : > { %s7053_s10 = scalar_lea.vmem %s7052_s2, 128  ;;  %p7054_p3 = scmp.lt.s32.totalorder %s409_s30, %s7052_s2 }
  0x85   : > { %p7049_p13 = pnand %p7047_p12, %p7446_p8  ;;  %p7055_p9 = scmp.lt.s32.totalorder %s7053_s10, %s7046_s28 }
  0x87   : > { %p7050_p0 = pneg %p7049_p13  ;;  %p7056_p10 = por %p7055_p9, %p7054_p3 }
  0x89   : > { %p7057_p11 = pnand %p7056_p10, %p7050_p0 }
  0x8b   : > { %7060 = shalt.err (!%p7057_p11)
}
  0x8c   : > { %s8890_s0 = scalar_lea.sflag [#allocation10], %s7423_s19  ;;  %s6101_s29 = sshll.u32 %s7233_s16, 13 }
  0x8d   : > { %6200 = dma.hbm_to_vmem [thread:$0]  (!%p7430_p4), %s406_s22, 64, %s409_s30, %s8890_s0  }
  0x8e   : > { %s438_s12 = scalar_lea.vmem [#allocation14], %s5653_s4  ;;  %s444_s8 = scalar_lea.hbm %s8832_s7, %s6101_s29 }
  0x8f   : > { %s445_s23 = sshll.u32 %s438_s12, 4  ;;  %s7247_s28 = smov [#allocation14]   ;;  %s446_s23 = int_to_ptr.vmem [resolvable:$true] %s445_s23 }
  0x90   : > { %s7074_s11 = scalar_lea.vmem %s446_s23, 8192  ;;  %s7079_s25 = sshll.u32 %s7247_s28, 4  ;;  %s7080_s25 = int_to_ptr.vmem [resolvable:$false] %s7079_s25 }
  0x91   : > { %p7075_p5 = scmp.ne.s32.totalorder %s446_s23, %s7074_s11  ;;  %s7081_s13 = scalar_lea.vmem %s7080_s25, 16384 }
  0x92   : > { %p7082_p0 = scmp.lt.s32.totalorder %s446_s23, %s7080_s25  ;;  %p7083_p3 = scmp.lt.s32.totalorder %s7081_s13, %s7074_s11 }
  0x93   : > { %p7077_p12 = pnand %p7075_p5, %p7446_p8 }
  0x94   : > { %p7084_p9 = por %p7083_p3, %p7082_p0 }
  0x95   : > { %p7078_p13 = pneg %p7077_p12 }
  0x97   : > { %p7085_p10 = pnand %p7084_p9, %p7078_p13 }
  0x99   : > { %7088 = shalt.err (!%p7085_p10)
}
  0x9a   : > { %s7248_s22 = smov 128   ;;  %s7249_s30 = smov 8  }
  0x9b   : > { %s8891_s4 = scalar_lea.sflag [#allocation13], %s7423_s19  ;;  %457 = sbr.rel (%p7460_p6) target bundleno = 1508 (0x5e4), region = 52 }
  0x9c   : > { %6206 = dma.hbm_to_vmem [thread:$0]  (!%p7430_p4), %s444_s8, 8192, %s446_s23, %s8891_s4, %s7248_s22, %s7248_s22, %s7249_s30  }
  0x9d   : > { %s7549_s24 = sand.u32 (!%p7460_p6), 1, %s7205_s9  }
  0x9e   : > { %s5657_s2 = sshll.u32 (!%p7460_p6), %s7549_s24, 7  ;;  %s460_s10 = scalar_lea.sflag (!%p7460_p6), [#allocation4], %s7549_s24 }
  0x9f   : > { %s7553_s0 = scalar_lea.vmem (!%p7460_p6), [#allocation3], %s5657_s2 }
  0xa0   : > { %7168 = dma.done.wait (%p7388_p7), %s460_s10, 2048  }
  0xa1   : > { %7170 = vsyncadd (%p7388_p7), %s460_s10, 4294965248  ;;  %s468_s19 = sand.u32 1, %s7364_s18   ;;  %s7561_s20 = sshll.u32 %s7549_s24, 2 }
  0xa2   : > { %s469_s21 = scalar_lea.sflag [#allocation7], %s468_s19  ;;  %s472_s27 = scalar_lea.vmem [#allocation6], %s7561_s20 }
  0xa3   : > { %7172 = dma.done.wait (%p7388_p7), %s469_s21, 128  }
  0xa4   : > { %7174 = vsyncadd (%p7388_p7), %s469_s21, 4294967168  ;;  %s5660_s14 = sshll.u32 %s7549_s24, 10  ;;  %s481_s29 = scalar_lea.vmem [#allocation8], %s7561_s20 }
  0xa5   : > { %s487_s12 = scalar_lea.sflag [#allocation10], %s468_s19  ;;  %s7570_s23 = scalar_lea.vmem [#allocation9], %s5660_s14 }
  0xa6   : > { %7176 = dma.done.wait (%p7388_p7), %s487_s12, 16448  }
  0xa7   : > { %7178 = vsyncadd (%p7388_p7), %s487_s12, 4294950848  ;;  %s499_s18 = scalar_lea.vmem [#allocation11], %s7561_s20  ;;  %s505_s15 = scalar_lea.sflag [#allocation13], %s468_s19 }
  0xa8   : > { %s508_s17 = scalar_lea.vmem [#allocation12], %s7561_s20 }
  0xa9   : > { %7180 = dma.done.wait (%p7388_p7), %s505_s15, 8256  }
  0xaa   : > { %7182 = vsyncadd (%p7388_p7), %s505_s15, 4294959040  ;;  %s8892_s8 = sld [smem:[#allocation22_spill]]  ;;  %s5663_s28 = sshll.u32 %s7549_s24, 9 }
  0xab   : > { %s8893_s11 = sld [smem:[#allocation26_spill]]  ;;  %s7593_s19 = scalar_lea.vmem [#allocation14], %s5663_s28 }
  0xac   : > { %s8894_s2 = sld [smem:[#allocation38_spill]] }
  0xad   : > { %s8895_s21 = sld [smem:[#allocation25_spill]] }
  0xb0   : > { %s582_s25 = sand.u32 1, %s8892_s8  }
  0xb1   : > { %s5664_s13 = sshll.u32 %s582_s25, 9  ;;  %p585_p4 = scmp.lt.s32.totalorder %s8893_s11, 1 }
  0xb2   : > { %s7595_s26 = scalar_lea.vmem [#allocation15], %s5664_s13 }
  0xb3   : > { %s8934_s11 = smov (!%p585_p4, %s8893_s11), 1  ;;  %p5667_p7 = scmp.ne.s32.totalorder %s8895_s21, 0 }
  0xb4   : > { %s6102_s22 = sshll.u32 %s8934_s11, 7 }
  0xb5   : > { %s7591_s10 = scalar_lea.vmem %s8894_s2, %s6102_s22  ;;  %596 = sbr.rel (%p5667_p7) target bundleno = 532 (0x214), region = 84 }
  0xba   : > { %v6325_v0 = vld [vmem:[%s7553_s0 + $0x64] ss:$16 sps:$4 sm:$0xff]   ;;  %v6327_v1 = vld [vmem:[%s7553_s0 + $0x6c] ss:$16 sps:$4 sm:$0xff]   ;;  %v7250_v2 = vmov 0   ;;  %vm805_vm0 = vcmask 523264   ;;  %v1242_v33 = vlaneseq }
  0xbb   : > { %886 = vmatprep.mubr.bf16.mxu0 %v7250_v2  ;;  %1079 = vmatprep.mubr.bf16.mxu1 %v7250_v2  ;;  %v6329_v3 = vld [vmem:[%s7553_s0 + $0x60] ss:$16 sps:$4 sm:$0xff]   ;;  %v6330_v4 = vld [vmem:[%s7553_s0 + $0x68] ss:$16 sps:$4 sm:$0xff]   ;;  %v6331_v5 = vld [vmem:[%s7553_s0 + $0x44] ss:$16 sps:$4 sm:$0xff]  }
  0xbc   : > { %862 = vmatprep.subr.bf16.mxu0 %v6325_v0  ;;  %1055 = vmatprep.subr.bf16.mxu1 %v6327_v1  ;;  %v6333_v6 = vld [vmem:[%s7553_s0 + $0x4c] ss:$16 sps:$4 sm:$0xff]   ;;  %v6335_v7 = vld [vmem:[%s7553_s0 + $0x40] ss:$16 sps:$4 sm:$0xff]   ;;  %v6336_v8 = vld [vmem:[%s7553_s0 + $0x48] ss:$16 sps:$4 sm:$0xff]  }
  0xbd   : > { %863 = vmatpush1.bf16.msra.mxu0 %v6329_v3  ;;  %1056 = vmatpush1.bf16.msra.mxu1 %v6330_v4  ;;  %v6337_v9 = vld [vmem:[%s7553_s0 + $0x24] ss:$16 sps:$4 sm:$0xff]   ;;  %v6339_v10 = vld [vmem:[%s7553_s0 + $0x2c] ss:$16 sps:$4 sm:$0xff]   ;;  %v6341_v11 = vld [vmem:[%s7553_s0 + $0x20] ss:$16 sps:$4 sm:$0xff]  }
  0xbe   : > { %864 = vmatprep.subr.bf16.mxu0 %v6331_v5  ;;  %1057 = vmatprep.subr.bf16.mxu1 %v6333_v6  ;;  %v6342_v12 = vld [vmem:[%s7553_s0 + $0x28] ss:$16 sps:$4 sm:$0xff]   ;;  %v6343_v13 = vld [vmem:[%s7553_s0 + $0x4] ss:$16 sps:$4 sm:$0xff]   ;;  %v6345_v14 = vld [vmem:[%s7553_s0 + $0xc] ss:$16 sps:$4 sm:$0xff]  }
  0xbf   : > { %v6347_v15 = vld [vmem:[%s7553_s0] ss:$16 sps:$4 sm:$0xff]   ;;  %v6348_v16 = vld [vmem:[%s7553_s0 + $0x8] ss:$16 sps:$4 sm:$0xff]   ;;  %v1243_v34 = vshrl.u32 %v1242_v33, 7 }
  0xc0   : > { %v6349_v17 = vld [vmem:[%s7591_s10] sm:$0xff]   ;;  %v6350_v18 = vld [vmem:[%s7591_s10 + $0x8] sm:$0xff]   ;;  %v6351_v19 = vld [vmem:[%s7591_s10 + $0x10] sm:$0xff]  }
  0xc1   : > { %865 = vmatpush1.bf16.msra.mxu0 %v6335_v7  ;;  %1058 = vmatpush1.bf16.msra.mxu1 %v6336_v8  ;;  %v6352_v20 = vld [vmem:[%s7591_s10 + $0x18] sm:$0xff]   ;;  %v6353_v21 = vld [vmem:[%s7591_s10 + $0x20] sm:$0xff]   ;;  %v6354_v22 = vld [vmem:[%s7591_s10 + $0x28] sm:$0xff]   ;;  %v1244_v35 = vsub.s32 0, %v1243_v34  ;;  %v1252_v36 = vsub.s32 2, %v1243_v34  ;;  %v1248_v38 = vsub.s32 1, %v1243_v34 }
  0xc2   : > { %866 = vmatprep.subr.bf16.mxu0 %v6337_v9  ;;  %1059 = vmatprep.subr.bf16.mxu1 %v6339_v10  ;;  %v6355_v23 = vld [vmem:[%s7591_s10 + $0x30] sm:$0xff]   ;;  %v6356_v24 = vld [vmem:[%s7591_s10 + $0x38] sm:$0xff]   ;;  %v6357_v25 = vld [vmem:[%s7591_s10 + $0x40] sm:$0xff]   ;;  %v1256_v39 = vsub.s32 3, %v1243_v34 }
  0xc3   : > { %v6358_v26 = vld [vmem:[%s7591_s10 + $0x48] sm:$0xff]   ;;  %v6359_v27 = vld [vmem:[%s7591_s10 + $0x50] sm:$0xff]   ;;  %v6360_v28 = vld [vmem:[%s7591_s10 + $0x58] sm:$0xff]  }
  0xc4   : > { %v6361_v29 = vld [vmem:[%s7591_s10 + $0x60] sm:$0xff]   ;;  %v6362_v30 = vld [vmem:[%s7591_s10 + $0x68] sm:$0xff]   ;;  %v6363_v31 = vld [vmem:[%s7591_s10 + $0x70] sm:$0xff]  }
  0xc5   : > { %867 = vmatpush1.bf16.msra.mxu0 %v6341_v11  ;;  %1060 = vmatpush1.bf16.msra.mxu1 %v6342_v12  ;;  %v6364_v32 = vld [vmem:[%s7591_s10 + $0x78] sm:$0xff]   ;;  %v1240_v37 = vld [vmem:[%s472_s27] sm:$0xf]  ;;  %v1390_v40 = vld [vmem:[%s481_s29] sm:$0xf] }
  0xc6   : > { %868 = vmatprep.subr.bf16.mxu0 %v6343_v13  ;;  %1061 = vmatprep.subr.bf16.mxu1 %v6345_v14  ;;  %v7698_v41 = vrot.slane %v1240_v37, %v1244_v35  ;;  %v7700_v42 = vrot.slane %v1240_v37, %v1252_v36  ;;  %v7702_v43 = vrot.slane %v1390_v40, %v1244_v35 }
  0xc7   : > { %v7704_v44 = vrot.slane %v1390_v40, %v1252_v36  ;;  %v7706_v45 = vrot.slane %v1240_v37, %v1248_v38  ;;  %v7708_v46 = vrot.slane %v1240_v37, %v1256_v39  ;;  %v7712_v51 = vrot.slane %v1390_v40, %v1248_v38 }
  0xc8   : > { %v7714_v52 = vrot.slane %v1390_v40, %v1256_v39 }
  0xc9   : > { %869 = vmatpush1.bf16.msra.mxu0 %v6347_v15  ;;  %1062 = vmatpush1.bf16.msra.mxu1 %v6348_v16 }
  0xcc   : > { %5700 = vmatmul.mubr.msk.bf16.vlgmr.msra.gmra.mxu0 %vm805_vm0, %v6349_v17  ;;  %5716 = vmatmul.mubr.msk.bf16.vlgmr.msra.gmra.mxu1 %vm805_vm0, %v6349_v17 }
  0xcd   : > { %896 = vmatprep.mubr.bf16.mxu0 %v7250_v2  ;;  %1089 = vmatprep.mubr.bf16.mxu1 %v7250_v2 }
  0xd4   : > { %5701 = vmatmul.mubr.msk.bf16.gmra.mxu0 %vm805_vm0, %v6350_v18  ;;  %5717 = vmatmul.mubr.msk.bf16.gmra.mxu1 %vm805_vm0, %v6350_v18 }
  0xd5   : > { %906 = vmatprep.mubr.bf16.mxu0 %v7250_v2  ;;  %1099 = vmatprep.mubr.bf16.mxu1 %v7250_v2 }
  0xdc   : > { %5702 = vmatmul.mubr.msk.bf16.gmra.mxu0 %vm805_vm0, %v6351_v19  ;;  %5718 = vmatmul.mubr.msk.bf16.gmra.mxu1 %vm805_vm0, %v6351_v19 }
  0xdd   : > { %916 = vmatprep.mubr.bf16.mxu0 %v7250_v2  ;;  %1109 = vmatprep.mubr.bf16.mxu1 %v7250_v2 }
  0xe4   : > { %5703 = vmatmul.mubr.msk.bf16.gmra.mxu0 %vm805_vm0, %v6352_v20  ;;  %5719 = vmatmul.mubr.msk.bf16.gmra.mxu1 %vm805_vm0, %v6352_v20 }
  0xe5   : > { %926 = vmatprep.mubr.bf16.mxu0 %v7250_v2  ;;  %1119 = vmatprep.mubr.bf16.mxu1 %v7250_v2 }
  0xec   : > { %5704 = vmatmul.mubr.msk.bf16.gmra.mxu0 %vm805_vm0, %v6353_v21  ;;  %5720 = vmatmul.mubr.msk.bf16.gmra.mxu1 %vm805_vm0, %v6353_v21 }
  0xed   : > { %936 = vmatprep.mubr.bf16.mxu0 %v7250_v2  ;;  %1129 = vmatprep.mubr.bf16.mxu1 %v7250_v2 }
  0xf4   : > { %5705 = vmatmul.mubr.msk.bf16.gmra.mxu0 %vm805_vm0, %v6354_v22  ;;  %5721 = vmatmul.mubr.msk.bf16.gmra.mxu1 %vm805_vm0, %v6354_v22 }
  0xf5   : > { %946 = vmatprep.mubr.bf16.mxu0 %v7250_v2  ;;  %1139 = vmatprep.mubr.bf16.mxu1 %v7250_v2 }
  0xfc   : > { %5706 = vmatmul.mubr.msk.bf16.gmra.mxu0 %vm805_vm0, %v6355_v23  ;;  %5722 = vmatmul.mubr.msk.bf16.gmra.mxu1 %vm805_vm0, %v6355_v23 }
  0xfd   : > { %956 = vmatprep.mubr.bf16.mxu0 %v7250_v2  ;;  %1149 = vmatprep.mubr.bf16.mxu1 %v7250_v2 }
 0x104   : > { %5707 = vmatmul.mubr.msk.bf16.gmra.mxu0 %vm805_vm0, %v6356_v24  ;;  %5723 = vmatmul.mubr.msk.bf16.gmra.mxu1 %vm805_vm0, %v6356_v24 }
 0x105   : > { %966 = vmatprep.mubr.bf16.mxu0 %v7250_v2  ;;  %1159 = vmatprep.mubr.bf16.mxu1 %v7250_v2 }
 0x10c   : > { %5708 = vmatmul.mubr.msk.bf16.gmra.mxu0 %vm805_vm0, %v6357_v25  ;;  %5724 = vmatmul.mubr.msk.bf16.gmra.mxu1 %vm805_vm0, %v6357_v25 }
 0x10d   : > { %976 = vmatprep.mubr.bf16.mxu0 %v7250_v2  ;;  %1169 = vmatprep.mubr.bf16.mxu1 %v7250_v2 }
 0x114   : > { %5709 = vmatmul.mubr.msk.bf16.gmra.mxu0 %vm805_vm0, %v6358_v26  ;;  %5725 = vmatmul.mubr.msk.bf16.gmra.mxu1 %vm805_vm0, %v6358_v26 }
 0x115   : > { %986 = vmatprep.mubr.bf16.mxu0 %v7250_v2  ;;  %1179 = vmatprep.mubr.bf16.mxu1 %v7250_v2 }
 0x11c   : > { %5710 = vmatmul.mubr.msk.bf16.gmra.mxu0 %vm805_vm0, %v6359_v27  ;;  %5726 = vmatmul.mubr.msk.bf16.gmra.mxu1 %vm805_vm0, %v6359_v27 }
 0x11d   : > { %996 = vmatprep.mubr.bf16.mxu0 %v7250_v2  ;;  %1189 = vmatprep.mubr.bf16.mxu1 %v7250_v2 }
 0x124   : > { %5711 = vmatmul.mubr.msk.bf16.gmra.mxu0 %vm805_vm0, %v6360_v28  ;;  %5727 = vmatmul.mubr.msk.bf16.gmra.mxu1 %vm805_vm0, %v6360_v28 }
 0x125   : > { %1006 = vmatprep.mubr.bf16.mxu0 %v7250_v2  ;;  %1199 = vmatprep.mubr.bf16.mxu1 %v7250_v2 }
 0x12c   : > { %5712 = vmatmul.mubr.msk.bf16.gmra.mxu0 %vm805_vm0, %v6361_v29  ;;  %5728 = vmatmul.mubr.msk.bf16.gmra.mxu1 %vm805_vm0, %v6361_v29 }
 0x12d   : > { %1016 = vmatprep.mubr.bf16.mxu0 %v7250_v2  ;;  %1209 = vmatprep.mubr.bf16.mxu1 %v7250_v2 }
 0x134   : > { %5713 = vmatmul.mubr.msk.bf16.gmra.mxu0 %vm805_vm0, %v6362_v30  ;;  %5729 = vmatmul.mubr.msk.bf16.gmra.mxu1 %vm805_vm0, %v6362_v30 }
 0x135   : > { %1026 = vmatprep.mubr.bf16.mxu0 %v7250_v2  ;;  %1219 = vmatprep.mubr.bf16.mxu1 %v7250_v2 }
 0x13c   : > { %5714 = vmatmul.mubr.msk.bf16.gmra.mxu0 %vm805_vm0, %v6363_v31  ;;  %5730 = vmatmul.mubr.msk.bf16.gmra.mxu1 %vm805_vm0, %v6363_v31 }
 0x13d   : > { %1036 = vmatprep.mubr.bf16.mxu0 %v7250_v2  ;;  %1229 = vmatprep.mubr.bf16.mxu1 %v7250_v2 }
 0x144   : > { %5715 = vmatmul.mubr.msk.bf16.gmra.mxu0 %vm805_vm0, %v6364_v32  ;;  %5731 = vmatmul.mubr.msk.bf16.gmra.mxu1 %vm805_vm0, %v6364_v32 }
 0x18c   : > { %v888_v47 = vpop.f32.mrf.mxu0  ;;  %v1081_v48 = vpop.f32.mrf.mxu1 }
 0x18d   : > { %v1262_v49 = vmul.f32 %v7698_v41, %v888_v47  ;;  %v1264_v50 = vmul.f32 %v7700_v42, %v1081_v48 }
 0x18e   : > { %v890_v53 = vpop.f32.mrf.mxu0  ;;  %v1083_v54 = vpop.f32.mrf.mxu1 }
 0x18f   : > { %v1412_v55 = vadd.f32 %v7702_v43, %v1262_v49  ;;  %v1414_v56 = vadd.f32 %v7704_v44, %v1264_v50  ;;  %v1263_v57 = vmul.f32 %v7706_v45, %v890_v53  ;;  %v1265_v58 = vmul.f32 %v7708_v46, %v1083_v54 }
 0x190   : > { %v892_v59 = vpop.f32.mrf.mxu0  ;;  %v1085_v60 = vpop.f32.mrf.mxu1 }
 0x191   : > { %v1413_v61 = vadd.f32 %v7712_v51, %v1263_v57  ;;  %v1415_v62 = vadd.f32 %v7714_v52, %v1265_v58  ;;  %v1540_v63 = vmax.f32 %v1412_v55, 0.0  ;;  %v1542_v0 = vmax.f32 %v1414_v56, 0.0 }
 0x192   : > { %v1266_v1 = vmul.f32 %v7698_v41, %v892_v59  ;;  %v1268_v2 = vmul.f32 %v7700_v42, %v1085_v60  ;;  %v894_v3 = vpop.f32.mrf.mxu0  ;;  %v1087_v4 = vpop.f32.mrf.mxu1 }
 0x193   : > { %v1541_v5 = vmax.f32 %v1413_v61, 0.0  ;;  %v1543_v6 = vmax.f32 %v1415_v62, 0.0  ;;  %v1267_v7 = vmul.f32 %v7706_v45, %v894_v3  ;;  %v1269_v8 = vmul.f32 %v7708_v46, %v1087_v4 }
 0x194   : > { %v1416_v9 = vadd.f32 %v7702_v43, %v1266_v1  ;;  %v1418_v10 = vadd.f32 %v7704_v44, %v1268_v2  ;;  %v898_v11 = vpop.f32.mrf.mxu0  ;;  %v1091_v12 = vpop.f32.mrf.mxu1 }
 0x195   : > { %v6103_v13 = vpack.c.bf16 %v1541_v5, %v1540_v63  ;;  %v6104_v14 = vpack.c.bf16 %v1543_v6, %v1542_v0  ;;  %v1417_v15 = vadd.f32 %v7712_v51, %v1267_v7  ;;  %v1419_v16 = vadd.f32 %v7714_v52, %v1269_v8 }
 0x196   : > { %v1544_v17 = vmax.f32 %v1416_v9, 0.0  ;;  %v1546_v18 = vmax.f32 %v1418_v10, 0.0  ;;  %v1270_v19 = vmul.f32 %v7698_v41, %v898_v11  ;;  %v1272_v20 = vmul.f32 %v7700_v42, %v1091_v12  ;;  %v900_v21 = vpop.f32.mrf.mxu0  ;;  %v1093_v22 = vpop.f32.mrf.mxu1 }
 0x197   : > { %2052 = vst [vmem:[#allocation2] sm:$0xff] %v6103_v13  ;;  %2053 = vst [vmem:[#allocation2 + $0x8] sm:$0xff] %v6104_v14  ;;  %v1545_v23 = vmax.f32 %v1417_v15, 0.0  ;;  %v1547_v24 = vmax.f32 %v1419_v16, 0.0  ;;  %v1271_v25 = vmul.f32 %v7706_v45, %v900_v21  ;;  %v1273_v26 = vmul.f32 %v7708_v46, %v1093_v22 }
 0x198   : > { %v1420_v27 = vadd.f32 %v7702_v43, %v1270_v19  ;;  %v1422_v28 = vadd.f32 %v7704_v44, %v1272_v20  ;;  %v902_v29 = vpop.f32.mrf.mxu0  ;;  %v1095_v30 = vpop.f32.mrf.mxu1 }
 0x199   : > { %v6105_v31 = vpack.c.bf16 %v1545_v23, %v1544_v17  ;;  %v6106_v32 = vpack.c.bf16 %v1547_v24, %v1546_v18  ;;  %v1421_v33 = vadd.f32 %v7712_v51, %v1271_v25  ;;  %v1423_v34 = vadd.f32 %v7714_v52, %v1273_v26 }
 0x19a   : > { %v1548_v35 = vmax.f32 %v1420_v27, 0.0  ;;  %v1550_v36 = vmax.f32 %v1422_v28, 0.0  ;;  %v1274_v37 = vmul.f32 %v7698_v41, %v902_v29  ;;  %v1276_v38 = vmul.f32 %v7700_v42, %v1095_v30  ;;  %v904_v39 = vpop.f32.mrf.mxu0  ;;  %v1097_v40 = vpop.f32.mrf.mxu1 }
 0x19b   : > { %2054 = vst [vmem:[#allocation2 + $0x10] sm:$0xff] %v6105_v31  ;;  %2055 = vst [vmem:[#allocation2 + $0x18] sm:$0xff] %v6106_v32  ;;  %v1549_v47 = vmax.f32 %v1421_v33, 0.0  ;;  %v1551_v48 = vmax.f32 %v1423_v34, 0.0  ;;  %v1275_v49 = vmul.f32 %v7706_v45, %v904_v39  ;;  %v1277_v50 = vmul.f32 %v7708_v46, %v1097_v40 }
 0x19c   : > { %v1424_v53 = vadd.f32 %v7702_v43, %v1274_v37  ;;  %v1426_v54 = vadd.f32 %v7704_v44, %v1276_v38  ;;  %v908_v55 = vpop.f32.mrf.mxu0  ;;  %v1101_v56 = vpop.f32.mrf.mxu1 }
 0x19d   : > { %v6107_v57 = vpack.c.bf16 %v1549_v47, %v1548_v35  ;;  %v6108_v58 = vpack.c.bf16 %v1551_v48, %v1550_v36  ;;  %v1425_v59 = vadd.f32 %v7712_v51, %v1275_v49  ;;  %v1427_v60 = vadd.f32 %v7714_v52, %v1277_v50 }
 0x19e   : > { %v1552_v61 = vmax.f32 %v1424_v53, 0.0  ;;  %v1554_v62 = vmax.f32 %v1426_v54, 0.0  ;;  %v1278_v63 = vmul.f32 %v7698_v41, %v908_v55  ;;  %v1280_v0 = vmul.f32 %v7700_v42, %v1101_v56  ;;  %v910_v1 = vpop.f32.mrf.mxu0  ;;  %v1103_v2 = vpop.f32.mrf.mxu1 }
 0x19f   : > { %2056 = vst [vmem:[#allocation2 + $0x20] sm:$0xff] %v6107_v57  ;;  %2057 = vst [vmem:[#allocation2 + $0x28] sm:$0xff] %v6108_v58  ;;  %v1553_v3 = vmax.f32 %v1425_v59, 0.0  ;;  %v1555_v4 = vmax.f32 %v1427_v60, 0.0  ;;  %v1279_v5 = vmul.f32 %v7706_v45, %v910_v1  ;;  %v1281_v6 = vmul.f32 %v7708_v46, %v1103_v2 }
 0x1a0   : > { %v1428_v7 = vadd.f32 %v7702_v43, %v1278_v63  ;;  %v1430_v8 = vadd.f32 %v7704_v44, %v1280_v0  ;;  %v912_v9 = vpop.f32.mrf.mxu0  ;;  %v1105_v10 = vpop.f32.mrf.mxu1 }
 0x1a1   : > { %v6109_v11 = vpack.c.bf16 %v1553_v3, %v1552_v61  ;;  %v6110_v12 = vpack.c.bf16 %v1555_v4, %v1554_v62  ;;  %v1429_v13 = vadd.f32 %v7712_v51, %v1279_v5  ;;  %v1431_v14 = vadd.f32 %v7714_v52, %v1281_v6 }
 0x1a2   : > { %v1556_v15 = vmax.f32 %v1428_v7, 0.0  ;;  %v1558_v16 = vmax.f32 %v1430_v8, 0.0  ;;  %v1282_v17 = vmul.f32 %v7698_v41, %v912_v9  ;;  %v1284_v18 = vmul.f32 %v7700_v42, %v1105_v10  ;;  %v914_v19 = vpop.f32.mrf.mxu0  ;;  %v1107_v20 = vpop.f32.mrf.mxu1 }
 0x1a3   : > { %2058 = vst [vmem:[#allocation2 + $0x30] sm:$0xff] %v6109_v11  ;;  %2059 = vst [vmem:[#allocation2 + $0x38] sm:$0xff] %v6110_v12  ;;  %v1557_v21 = vmax.f32 %v1429_v13, 0.0  ;;  %v1559_v22 = vmax.f32 %v1431_v14, 0.0  ;;  %v1283_v23 = vmul.f32 %v7706_v45, %v914_v19  ;;  %v1285_v24 = vmul.f32 %v7708_v46, %v1107_v20 }
 0x1a4   : > { %v1432_v25 = vadd.f32 %v7702_v43, %v1282_v17  ;;  %v1434_v26 = vadd.f32 %v7704_v44, %v1284_v18  ;;  %v918_v27 = vpop.f32.mrf.mxu0  ;;  %v1111_v28 = vpop.f32.mrf.mxu1 }
 0x1a5   : > { %v6111_v29 = vpack.c.bf16 %v1557_v21, %v1556_v15  ;;  %v6112_v30 = vpack.c.bf16 %v1559_v22, %v1558_v16  ;;  %v1433_v31 = vadd.f32 %v7712_v51, %v1283_v23  ;;  %v1435_v32 = vadd.f32 %v7714_v52, %v1285_v24 }
 0x1a6   : > { %v1560_v33 = vmax.f32 %v1432_v25, 0.0  ;;  %v1562_v34 = vmax.f32 %v1434_v26, 0.0  ;;  %v1286_v35 = vmul.f32 %v7698_v41, %v918_v27  ;;  %v1288_v36 = vmul.f32 %v7700_v42, %v1111_v28  ;;  %v920_v37 = vpop.f32.mrf.mxu0  ;;  %v1113_v38 = vpop.f32.mrf.mxu1 }
 0x1a7   : > { %2060 = vst [vmem:[#allocation2 + $0x40] sm:$0xff] %v6111_v29  ;;  %2061 = vst [vmem:[#allocation2 + $0x48] sm:$0xff] %v6112_v30  ;;  %v1561_v39 = vmax.f32 %v1433_v31, 0.0  ;;  %v1563_v40 = vmax.f32 %v1435_v32, 0.0  ;;  %v1287_v47 = vmul.f32 %v7706_v45, %v920_v37  ;;  %v1289_v48 = vmul.f32 %v7708_v46, %v1113_v38 }
 0x1a8   : > { %v1436_v49 = vadd.f32 %v7702_v43, %v1286_v35  ;;  %v1438_v50 = vadd.f32 %v7704_v44, %v1288_v36  ;;  %v922_v53 = vpop.f32.mrf.mxu0  ;;  %v1115_v54 = vpop.f32.mrf.mxu1 }
 0x1a9   : > { %v6113_v55 = vpack.c.bf16 %v1561_v39, %v1560_v33  ;;  %v6114_v56 = vpack.c.bf16 %v1563_v40, %v1562_v34  ;;  %v1437_v57 = vadd.f32 %v7712_v51, %v1287_v47  ;;  %v1439_v58 = vadd.f32 %v7714_v52, %v1289_v48 }
 0x1aa   : > { %v1564_v59 = vmax.f32 %v1436_v49, 0.0  ;;  %v1566_v60 = vmax.f32 %v1438_v50, 0.0  ;;  %v1290_v61 = vmul.f32 %v7698_v41, %v922_v53  ;;  %v1292_v62 = vmul.f32 %v7700_v42, %v1115_v54  ;;  %v924_v63 = vpop.f32.mrf.mxu0  ;;  %v1117_v0 = vpop.f32.mrf.mxu1 }
 0x1ab   : > { %2062 = vst [vmem:[#allocation2 + $0x50] sm:$0xff] %v6113_v55  ;;  %2063 = vst [vmem:[#allocation2 + $0x58] sm:$0xff] %v6114_v56  ;;  %v1565_v1 = vmax.f32 %v1437_v57, 0.0  ;;  %v1567_v2 = vmax.f32 %v1439_v58, 0.0  ;;  %v1291_v3 = vmul.f32 %v7706_v45, %v924_v63  ;;  %v1293_v4 = vmul.f32 %v7708_v46, %v1117_v0 }
 0x1ac   : > { %v1440_v5 = vadd.f32 %v7702_v43, %v1290_v61  ;;  %v1442_v6 = vadd.f32 %v7704_v44, %v1292_v62  ;;  %v928_v7 = vpop.f32.mrf.mxu0  ;;  %v1121_v8 = vpop.f32.mrf.mxu1 }
 0x1ad   : > { %v6115_v9 = vpack.c.bf16 %v1565_v1, %v1564_v59  ;;  %v6116_v10 = vpack.c.bf16 %v1567_v2, %v1566_v60  ;;  %v1441_v11 = vadd.f32 %v7712_v51, %v1291_v3  ;;  %v1443_v12 = vadd.f32 %v7714_v52, %v1293_v4 }
 0x1ae   : > { %v1568_v13 = vmax.f32 %v1440_v5, 0.0  ;;  %v1570_v14 = vmax.f32 %v1442_v6, 0.0  ;;  %v1294_v15 = vmul.f32 %v7698_v41, %v928_v7  ;;  %v1296_v16 = vmul.f32 %v7700_v42, %v1121_v8  ;;  %v930_v17 = vpop.f32.mrf.mxu0  ;;  %v1123_v18 = vpop.f32.mrf.mxu1 }
 0x1af   : > { %2064 = vst [vmem:[#allocation2 + $0x60] sm:$0xff] %v6115_v9  ;;  %2065 = vst [vmem:[#allocation2 + $0x68] sm:$0xff] %v6116_v10  ;;  %v1569_v19 = vmax.f32 %v1441_v11, 0.0  ;;  %v1571_v20 = vmax.f32 %v1443_v12, 0.0  ;;  %v1295_v21 = vmul.f32 %v7706_v45, %v930_v17  ;;  %v1297_v22 = vmul.f32 %v7708_v46, %v1123_v18 }
 0x1b0   : > { %v1444_v23 = vadd.f32 %v7702_v43, %v1294_v15  ;;  %v1446_v24 = vadd.f32 %v7704_v44, %v1296_v16  ;;  %v932_v25 = vpop.f32.mrf.mxu0  ;;  %v1125_v26 = vpop.f32.mrf.mxu1 }
 0x1b1   : > { %v6117_v27 = vpack.c.bf16 %v1569_v19, %v1568_v13  ;;  %v6118_v28 = vpack.c.bf16 %v1571_v20, %v1570_v14  ;;  %v1445_v29 = vadd.f32 %v7712_v51, %v1295_v21  ;;  %v1447_v30 = vadd.f32 %v7714_v52, %v1297_v22 }
 0x1b2   : > { %v1572_v31 = vmax.f32 %v1444_v23, 0.0  ;;  %v1574_v32 = vmax.f32 %v1446_v24, 0.0  ;;  %v1298_v33 = vmul.f32 %v7698_v41, %v932_v25  ;;  %v1300_v34 = vmul.f32 %v7700_v42, %v1125_v26  ;;  %v934_v35 = vpop.f32.mrf.mxu0  ;;  %v1127_v36 = vpop.f32.mrf.mxu1 }
 0x1b3   : > { %2066 = vst [vmem:[#allocation2 + $0x70] sm:$0xff] %v6117_v27  ;;  %2067 = vst [vmem:[#allocation2 + $0x78] sm:$0xff] %v6118_v28  ;;  %v1573_v37 = vmax.f32 %v1445_v29, 0.0  ;;  %v1575_v38 = vmax.f32 %v1447_v30, 0.0  ;;  %v1299_v39 = vmul.f32 %v7706_v45, %v934_v35  ;;  %v1301_v40 = vmul.f32 %v7708_v46, %v1127_v36 }
 0x1b4   : > { %v1448_v47 = vadd.f32 %v7702_v43, %v1298_v33  ;;  %v1450_v48 = vadd.f32 %v7704_v44, %v1300_v34  ;;  %v938_v49 = vpop.f32.mrf.mxu0  ;;  %v1131_v50 = vpop.f32.mrf.mxu1 }
 0x1b5   : > { %v6119_v53 = vpack.c.bf16 %v1573_v37, %v1572_v31  ;;  %v6120_v54 = vpack.c.bf16 %v1575_v38, %v1574_v32  ;;  %v1449_v55 = vadd.f32 %v7712_v51, %v1299_v39  ;;  %v1451_v56 = vadd.f32 %v7714_v52, %v1301_v40 }
 0x1b6   : > { %v1576_v57 = vmax.f32 %v1448_v47, 0.0  ;;  %v1578_v58 = vmax.f32 %v1450_v48, 0.0  ;;  %v1302_v59 = vmul.f32 %v7698_v41, %v938_v49  ;;  %v1304_v60 = vmul.f32 %v7700_v42, %v1131_v50  ;;  %v940_v61 = vpop.f32.mrf.mxu0  ;;  %v1133_v62 = vpop.f32.mrf.mxu1 }
 0x1b7   : > { %2068 = vst [vmem:[#allocation2 + $0x80] sm:$0xff] %v6119_v53  ;;  %2069 = vst [vmem:[#allocation2 + $0x88] sm:$0xff] %v6120_v54  ;;  %v1577_v63 = vmax.f32 %v1449_v55, 0.0  ;;  %v1579_v0 = vmax.f32 %v1451_v56, 0.0  ;;  %v1303_v1 = vmul.f32 %v7706_v45, %v940_v61  ;;  %v1305_v2 = vmul.f32 %v7708_v46, %v1133_v62 }
 0x1b8   : > { %v1452_v3 = vadd.f32 %v7702_v43, %v1302_v59  ;;  %v1454_v4 = vadd.f32 %v7704_v44, %v1304_v60  ;;  %v942_v5 = vpop.f32.mrf.mxu0  ;;  %v1135_v6 = vpop.f32.mrf.mxu1 }
 0x1b9   : > { %v6121_v7 = vpack.c.bf16 %v1577_v63, %v1576_v57  ;;  %v6122_v8 = vpack.c.bf16 %v1579_v0, %v1578_v58  ;;  %v1453_v9 = vadd.f32 %v7712_v51, %v1303_v1  ;;  %v1455_v10 = vadd.f32 %v7714_v52, %v1305_v2 }
 0x1ba   : > { %v1580_v11 = vmax.f32 %v1452_v3, 0.0  ;;  %v1582_v12 = vmax.f32 %v1454_v4, 0.0  ;;  %v1306_v13 = vmul.f32 %v7698_v41, %v942_v5  ;;  %v1308_v14 = vmul.f32 %v7700_v42, %v1135_v6  ;;  %v944_v15 = vpop.f32.mrf.mxu0  ;;  %v1137_v16 = vpop.f32.mrf.mxu1 }
 0x1bb   : > { %2070 = vst [vmem:[#allocation2 + $0x90] sm:$0xff] %v6121_v7  ;;  %2071 = vst [vmem:[#allocation2 + $0x98] sm:$0xff] %v6122_v8  ;;  %v1581_v17 = vmax.f32 %v1453_v9, 0.0  ;;  %v1583_v18 = vmax.f32 %v1455_v10, 0.0  ;;  %v1307_v19 = vmul.f32 %v7706_v45, %v944_v15  ;;  %v1309_v20 = vmul.f32 %v7708_v46, %v1137_v16 }
 0x1bc   : > { %v1456_v21 = vadd.f32 %v7702_v43, %v1306_v13  ;;  %v1458_v22 = vadd.f32 %v7704_v44, %v1308_v14  ;;  %v948_v23 = vpop.f32.mrf.mxu0  ;;  %v1141_v24 = vpop.f32.mrf.mxu1 }
 0x1bd   : > { %v6123_v25 = vpack.c.bf16 %v1581_v17, %v1580_v11  ;;  %v6124_v26 = vpack.c.bf16 %v1583_v18, %v1582_v12  ;;  %v1457_v27 = vadd.f32 %v7712_v51, %v1307_v19  ;;  %v1459_v28 = vadd.f32 %v7714_v52, %v1309_v20 }
 0x1be   : > { %v1584_v29 = vmax.f32 %v1456_v21, 0.0  ;;  %v1586_v30 = vmax.f32 %v1458_v22, 0.0  ;;  %v1310_v31 = vmul.f32 %v7698_v41, %v948_v23  ;;  %v1312_v32 = vmul.f32 %v7700_v42, %v1141_v24  ;;  %v950_v33 = vpop.f32.mrf.mxu0  ;;  %v1143_v34 = vpop.f32.mrf.mxu1 }
 0x1bf   : > { %2072 = vst [vmem:[#allocation2 + $0xa0] sm:$0xff] %v6123_v25  ;;  %2073 = vst [vmem:[#allocation2 + $0xa8] sm:$0xff] %v6124_v26  ;;  %v1585_v35 = vmax.f32 %v1457_v27, 0.0  ;;  %v1587_v36 = vmax.f32 %v1459_v28, 0.0  ;;  %v1311_v37 = vmul.f32 %v7706_v45, %v950_v33  ;;  %v1313_v38 = vmul.f32 %v7708_v46, %v1143_v34 }
 0x1c0   : > { %v1460_v39 = vadd.f32 %v7702_v43, %v1310_v31  ;;  %v1462_v40 = vadd.f32 %v7704_v44, %v1312_v32  ;;  %v952_v47 = vpop.f32.mrf.mxu0  ;;  %v1145_v48 = vpop.f32.mrf.mxu1 }
 0x1c1   : > { %v6125_v49 = vpack.c.bf16 %v1585_v35, %v1584_v29  ;;  %v6126_v50 = vpack.c.bf16 %v1587_v36, %v1586_v30  ;;  %v1461_v53 = vadd.f32 %v7712_v51, %v1311_v37  ;;  %v1463_v54 = vadd.f32 %v7714_v52, %v1313_v38 }
 0x1c2   : > { %v1588_v55 = vmax.f32 %v1460_v39, 0.0  ;;  %v1590_v56 = vmax.f32 %v1462_v40, 0.0  ;;  %v1314_v57 = vmul.f32 %v7698_v41, %v952_v47  ;;  %v1316_v58 = vmul.f32 %v7700_v42, %v1145_v48  ;;  %v954_v59 = vpop.f32.mrf.mxu0  ;;  %v1147_v60 = vpop.f32.mrf.mxu1 }
 0x1c3   : > { %2074 = vst [vmem:[#allocation2 + $0xb0] sm:$0xff] %v6125_v49  ;;  %2075 = vst [vmem:[#allocation2 + $0xb8] sm:$0xff] %v6126_v50  ;;  %v1589_v61 = vmax.f32 %v1461_v53, 0.0  ;;  %v1591_v62 = vmax.f32 %v1463_v54, 0.0  ;;  %v1315_v63 = vmul.f32 %v7706_v45, %v954_v59  ;;  %v1317_v0 = vmul.f32 %v7708_v46, %v1147_v60 }
 0x1c4   : > { %v1464_v1 = vadd.f32 %v7702_v43, %v1314_v57  ;;  %v1466_v2 = vadd.f32 %v7704_v44, %v1316_v58  ;;  %v958_v3 = vpop.f32.mrf.mxu0  ;;  %v1151_v4 = vpop.f32.mrf.mxu1 }
 0x1c5   : > { %v6127_v5 = vpack.c.bf16 %v1589_v61, %v1588_v55  ;;  %v6128_v6 = vpack.c.bf16 %v1591_v62, %v1590_v56  ;;  %v1465_v7 = vadd.f32 %v7712_v51, %v1315_v63  ;;  %v1467_v8 = vadd.f32 %v7714_v52, %v1317_v0 }
 0x1c6   : > { %v1592_v9 = vmax.f32 %v1464_v1, 0.0  ;;  %v1594_v10 = vmax.f32 %v1466_v2, 0.0  ;;  %v1318_v11 = vmul.f32 %v7698_v41, %v958_v3  ;;  %v1320_v12 = vmul.f32 %v7700_v42, %v1151_v4  ;;  %v960_v13 = vpop.f32.mrf.mxu0  ;;  %v1153_v14 = vpop.f32.mrf.mxu1 }
 0x1c7   : > { %2076 = vst [vmem:[#allocation2 + $0xc0] sm:$0xff] %v6127_v5  ;;  %2077 = vst [vmem:[#allocation2 + $0xc8] sm:$0xff] %v6128_v6  ;;  %v1593_v15 = vmax.f32 %v1465_v7, 0.0  ;;  %v1595_v16 = vmax.f32 %v1467_v8, 0.0  ;;  %v1319_v17 = vmul.f32 %v7706_v45, %v960_v13  ;;  %v1321_v18 = vmul.f32 %v7708_v46, %v1153_v14 }
 0x1c8   : > { %v1468_v19 = vadd.f32 %v7702_v43, %v1318_v11  ;;  %v1470_v20 = vadd.f32 %v7704_v44, %v1320_v12  ;;  %v962_v21 = vpop.f32.mrf.mxu0  ;;  %v1155_v22 = vpop.f32.mrf.mxu1 }
 0x1c9   : > { %v6129_v23 = vpack.c.bf16 %v1593_v15, %v1592_v9  ;;  %v6130_v24 = vpack.c.bf16 %v1595_v16, %v1594_v10  ;;  %v1469_v25 = vadd.f32 %v7712_v51, %v1319_v17  ;;  %v1471_v26 = vadd.f32 %v7714_v52, %v1321_v18 }
 0x1ca   : > { %v1596_v27 = vmax.f32 %v1468_v19, 0.0  ;;  %v1598_v28 = vmax.f32 %v1470_v20, 0.0  ;;  %v1322_v29 = vmul.f32 %v7698_v41, %v962_v21  ;;  %v1324_v30 = vmul.f32 %v7700_v42, %v1155_v22  ;;  %v964_v31 = vpop.f32.mrf.mxu0  ;;  %v1157_v32 = vpop.f32.mrf.mxu1 }
 0x1cb   : > { %2078 = vst [vmem:[#allocation2 + $0xd0] sm:$0xff] %v6129_v23  ;;  %2079 = vst [vmem:[#allocation2 + $0xd8] sm:$0xff] %v6130_v24  ;;  %v1597_v33 = vmax.f32 %v1469_v25, 0.0  ;;  %v1599_v34 = vmax.f32 %v1471_v26, 0.0  ;;  %v1323_v35 = vmul.f32 %v7706_v45, %v964_v31  ;;  %v1325_v36 = vmul.f32 %v7708_v46, %v1157_v32 }
 0x1cc   : > { %v1472_v37 = vadd.f32 %v7702_v43, %v1322_v29  ;;  %v1474_v38 = vadd.f32 %v7704_v44, %v1324_v30  ;;  %v968_v39 = vpop.f32.mrf.mxu0  ;;  %v1161_v40 = vpop.f32.mrf.mxu1 }
 0x1cd   : > { %v6131_v47 = vpack.c.bf16 %v1597_v33, %v1596_v27  ;;  %v6132_v48 = vpack.c.bf16 %v1599_v34, %v1598_v28  ;;  %v1473_v49 = vadd.f32 %v7712_v51, %v1323_v35  ;;  %v1475_v50 = vadd.f32 %v7714_v52, %v1325_v36 }
 0x1ce   : > { %v1600_v53 = vmax.f32 %v1472_v37, 0.0  ;;  %v1602_v54 = vmax.f32 %v1474_v38, 0.0  ;;  %v1326_v55 = vmul.f32 %v7698_v41, %v968_v39  ;;  %v1328_v56 = vmul.f32 %v7700_v42, %v1161_v40  ;;  %v970_v57 = vpop.f32.mrf.mxu0  ;;  %v1163_v58 = vpop.f32.mrf.mxu1 }
 0x1cf   : > { %2080 = vst [vmem:[#allocation2 + $0xe0] sm:$0xff] %v6131_v47  ;;  %2081 = vst [vmem:[#allocation2 + $0xe8] sm:$0xff] %v6132_v48  ;;  %v1601_v59 = vmax.f32 %v1473_v49, 0.0  ;;  %v1603_v60 = vmax.f32 %v1475_v50, 0.0  ;;  %v1327_v61 = vmul.f32 %v7706_v45, %v970_v57  ;;  %v1329_v62 = vmul.f32 %v7708_v46, %v1163_v58 }
 0x1d0   : > { %v1476_v63 = vadd.f32 %v7702_v43, %v1326_v55  ;;  %v1478_v0 = vadd.f32 %v7704_v44, %v1328_v56  ;;  %v972_v1 = vpop.f32.mrf.mxu0  ;;  %v1165_v2 = vpop.f32.mrf.mxu1 }
 0x1d1   : > { %v6133_v3 = vpack.c.bf16 %v1601_v59, %v1600_v53  ;;  %v6134_v4 = vpack.c.bf16 %v1603_v60, %v1602_v54  ;;  %v1477_v5 = vadd.f32 %v7712_v51, %v1327_v61  ;;  %v1479_v6 = vadd.f32 %v7714_v52, %v1329_v62 }
 0x1d2   : > { %v1604_v7 = vmax.f32 %v1476_v63, 0.0  ;;  %v1606_v8 = vmax.f32 %v1478_v0, 0.0  ;;  %v1330_v9 = vmul.f32 %v7698_v41, %v972_v1  ;;  %v1332_v10 = vmul.f32 %v7700_v42, %v1165_v2  ;;  %v974_v11 = vpop.f32.mrf.mxu0  ;;  %v1167_v12 = vpop.f32.mrf.mxu1 }
 0x1d3   : > { %2082 = vst [vmem:[#allocation2 + $0xf0] sm:$0xff] %v6133_v3  ;;  %2083 = vst [vmem:[#allocation2 + $0xf8] sm:$0xff] %v6134_v4  ;;  %v1605_v13 = vmax.f32 %v1477_v5, 0.0  ;;  %v1607_v14 = vmax.f32 %v1479_v6, 0.0  ;;  %v1331_v15 = vmul.f32 %v7706_v45, %v974_v11  ;;  %v1333_v16 = vmul.f32 %v7708_v46, %v1167_v12 }
 0x1d4   : > { %v1480_v17 = vadd.f32 %v7702_v43, %v1330_v9  ;;  %v1482_v18 = vadd.f32 %v7704_v44, %v1332_v10  ;;  %v978_v19 = vpop.f32.mrf.mxu0  ;;  %v1171_v20 = vpop.f32.mrf.mxu1 }
 0x1d5   : > { %v6135_v21 = vpack.c.bf16 %v1605_v13, %v1604_v7  ;;  %v6136_v22 = vpack.c.bf16 %v1607_v14, %v1606_v8  ;;  %v1481_v23 = vadd.f32 %v7712_v51, %v1331_v15  ;;  %v1483_v24 = vadd.f32 %v7714_v52, %v1333_v16 }
 0x1d6   : > { %v1608_v25 = vmax.f32 %v1480_v17, 0.0  ;;  %v1610_v26 = vmax.f32 %v1482_v18, 0.0  ;;  %v1334_v27 = vmul.f32 %v7698_v41, %v978_v19  ;;  %v1336_v28 = vmul.f32 %v7700_v42, %v1171_v20  ;;  %v980_v29 = vpop.f32.mrf.mxu0  ;;  %v1173_v30 = vpop.f32.mrf.mxu1 }
 0x1d7   : > { %2084 = vst [vmem:[#allocation2 + $0x100] sm:$0xff] %v6135_v21  ;;  %2085 = vst [vmem:[#allocation2 + $0x108] sm:$0xff] %v6136_v22  ;;  %v1609_v31 = vmax.f32 %v1481_v23, 0.0  ;;  %v1611_v32 = vmax.f32 %v1483_v24, 0.0  ;;  %v1335_v33 = vmul.f32 %v7706_v45, %v980_v29  ;;  %v1337_v34 = vmul.f32 %v7708_v46, %v1173_v30 }
 0x1d8   : > { %v1484_v35 = vadd.f32 %v7702_v43, %v1334_v27  ;;  %v1486_v36 = vadd.f32 %v7704_v44, %v1336_v28  ;;  %v982_v37 = vpop.f32.mrf.mxu0  ;;  %v1175_v38 = vpop.f32.mrf.mxu1 }
 0x1d9   : > { %v6137_v39 = vpack.c.bf16 %v1609_v31, %v1608_v25  ;;  %v6138_v40 = vpack.c.bf16 %v1611_v32, %v1610_v26  ;;  %v1485_v47 = vadd.f32 %v7712_v51, %v1335_v33  ;;  %v1487_v48 = vadd.f32 %v7714_v52, %v1337_v34 }
 0x1da   : > { %v1612_v49 = vmax.f32 %v1484_v35, 0.0  ;;  %v1614_v50 = vmax.f32 %v1486_v36, 0.0  ;;  %v1338_v53 = vmul.f32 %v7698_v41, %v982_v37  ;;  %v1340_v54 = vmul.f32 %v7700_v42, %v1175_v38  ;;  %v984_v55 = vpop.f32.mrf.mxu0  ;;  %v1177_v56 = vpop.f32.mrf.mxu1 }
 0x1db   : > { %2086 = vst [vmem:[#allocation2 + $0x110] sm:$0xff] %v6137_v39  ;;  %2087 = vst [vmem:[#allocation2 + $0x118] sm:$0xff] %v6138_v40  ;;  %v1613_v57 = vmax.f32 %v1485_v47, 0.0  ;;  %v1615_v58 = vmax.f32 %v1487_v48, 0.0  ;;  %v1339_v59 = vmul.f32 %v7706_v45, %v984_v55  ;;  %v1341_v60 = vmul.f32 %v7708_v46, %v1177_v56 }
 0x1dc   : > { %v1488_v61 = vadd.f32 %v7702_v43, %v1338_v53  ;;  %v1490_v62 = vadd.f32 %v7704_v44, %v1340_v54  ;;  %v988_v63 = vpop.f32.mrf.mxu0  ;;  %v1181_v0 = vpop.f32.mrf.mxu1 }
 0x1dd   : > { %v6139_v1 = vpack.c.bf16 %v1613_v57, %v1612_v49  ;;  %v6140_v2 = vpack.c.bf16 %v1615_v58, %v1614_v50  ;;  %v1489_v3 = vadd.f32 %v7712_v51, %v1339_v59  ;;  %v1491_v4 = vadd.f32 %v7714_v52, %v1341_v60 }
 0x1de   : > { %v1616_v5 = vmax.f32 %v1488_v61, 0.0  ;;  %v1618_v6 = vmax.f32 %v1490_v62, 0.0  ;;  %v1342_v7 = vmul.f32 %v7698_v41, %v988_v63  ;;  %v1344_v8 = vmul.f32 %v7700_v42, %v1181_v0  ;;  %v990_v9 = vpop.f32.mrf.mxu0  ;;  %v1183_v10 = vpop.f32.mrf.mxu1 }
 0x1df   : > { %2088 = vst [vmem:[#allocation2 + $0x120] sm:$0xff] %v6139_v1  ;;  %2089 = vst [vmem:[#allocation2 + $0x128] sm:$0xff] %v6140_v2  ;;  %v1617_v11 = vmax.f32 %v1489_v3, 0.0  ;;  %v1619_v12 = vmax.f32 %v1491_v4, 0.0  ;;  %v1343_v13 = vmul.f32 %v7706_v45, %v990_v9  ;;  %v1345_v14 = vmul.f32 %v7708_v46, %v1183_v10 }
 0x1e0   : > { %v1492_v15 = vadd.f32 %v7702_v43, %v1342_v7  ;;  %v1494_v16 = vadd.f32 %v7704_v44, %v1344_v8  ;;  %v992_v17 = vpop.f32.mrf.mxu0  ;;  %v1185_v18 = vpop.f32.mrf.mxu1 }
 0x1e1   : > { %v6141_v19 = vpack.c.bf16 %v1617_v11, %v1616_v5  ;;  %v6142_v20 = vpack.c.bf16 %v1619_v12, %v1618_v6  ;;  %v1493_v21 = vadd.f32 %v7712_v51, %v1343_v13  ;;  %v1495_v22 = vadd.f32 %v7714_v52, %v1345_v14 }
 0x1e2   : > { %v1620_v23 = vmax.f32 %v1492_v15, 0.0  ;;  %v1622_v24 = vmax.f32 %v1494_v16, 0.0  ;;  %v1346_v25 = vmul.f32 %v7698_v41, %v992_v17  ;;  %v1348_v26 = vmul.f32 %v7700_v42, %v1185_v18  ;;  %v994_v27 = vpop.f32.mrf.mxu0  ;;  %v1187_v28 = vpop.f32.mrf.mxu1 }
 0x1e3   : > { %2090 = vst [vmem:[#allocation2 + $0x130] sm:$0xff] %v6141_v19  ;;  %2091 = vst [vmem:[#allocation2 + $0x138] sm:$0xff] %v6142_v20  ;;  %v1621_v29 = vmax.f32 %v1493_v21, 0.0  ;;  %v1623_v30 = vmax.f32 %v1495_v22, 0.0  ;;  %v1347_v31 = vmul.f32 %v7706_v45, %v994_v27  ;;  %v1349_v32 = vmul.f32 %v7708_v46, %v1187_v28 }
 0x1e4   : > { %v1496_v33 = vadd.f32 %v7702_v43, %v1346_v25  ;;  %v1498_v34 = vadd.f32 %v7704_v44, %v1348_v26  ;;  %v998_v35 = vpop.f32.mrf.mxu0  ;;  %v1191_v36 = vpop.f32.mrf.mxu1 }
 0x1e5   : > { %v6143_v37 = vpack.c.bf16 %v1621_v29, %v1620_v23  ;;  %v6144_v38 = vpack.c.bf16 %v1623_v30, %v1622_v24  ;;  %v1497_v39 = vadd.f32 %v7712_v51, %v1347_v31  ;;  %v1499_v40 = vadd.f32 %v7714_v52, %v1349_v32 }
 0x1e6   : > { %v1624_v47 = vmax.f32 %v1496_v33, 0.0  ;;  %v1626_v48 = vmax.f32 %v1498_v34, 0.0  ;;  %v1350_v49 = vmul.f32 %v7698_v41, %v998_v35  ;;  %v1352_v50 = vmul.f32 %v7700_v42, %v1191_v36  ;;  %v1000_v53 = vpop.f32.mrf.mxu0  ;;  %v1193_v54 = vpop.f32.mrf.mxu1 }
 0x1e7   : > { %2092 = vst [vmem:[#allocation2 + $0x140] sm:$0xff] %v6143_v37  ;;  %2093 = vst [vmem:[#allocation2 + $0x148] sm:$0xff] %v6144_v38  ;;  %v1625_v55 = vmax.f32 %v1497_v39, 0.0  ;;  %v1627_v56 = vmax.f32 %v1499_v40, 0.0  ;;  %v1351_v57 = vmul.f32 %v7706_v45, %v1000_v53  ;;  %v1353_v58 = vmul.f32 %v7708_v46, %v1193_v54 }
 0x1e8   : > { %v1500_v59 = vadd.f32 %v7702_v43, %v1350_v49  ;;  %v1502_v60 = vadd.f32 %v7704_v44, %v1352_v50  ;;  %v1002_v61 = vpop.f32.mrf.mxu0  ;;  %v1195_v62 = vpop.f32.mrf.mxu1 }
 0x1e9   : > { %v6145_v63 = vpack.c.bf16 %v1625_v55, %v1624_v47  ;;  %v6146_v0 = vpack.c.bf16 %v1627_v56, %v1626_v48  ;;  %v1501_v1 = vadd.f32 %v7712_v51, %v1351_v57  ;;  %v1503_v2 = vadd.f32 %v7714_v52, %v1353_v58 }
 0x1ea   : > { %v1628_v3 = vmax.f32 %v1500_v59, 0.0  ;;  %v1630_v4 = vmax.f32 %v1502_v60, 0.0  ;;  %v1354_v5 = vmul.f32 %v7698_v41, %v1002_v61  ;;  %v1356_v6 = vmul.f32 %v7700_v42, %v1195_v62  ;;  %v1004_v7 = vpop.f32.mrf.mxu0  ;;  %v1197_v8 = vpop.f32.mrf.mxu1 }
 0x1eb   : > { %2094 = vst [vmem:[#allocation2 + $0x150] sm:$0xff] %v6145_v63  ;;  %2095 = vst [vmem:[#allocation2 + $0x158] sm:$0xff] %v6146_v0  ;;  %v1629_v9 = vmax.f32 %v1501_v1, 0.0  ;;  %v1631_v10 = vmax.f32 %v1503_v2, 0.0  ;;  %v1355_v11 = vmul.f32 %v7706_v45, %v1004_v7  ;;  %v1357_v12 = vmul.f32 %v7708_v46, %v1197_v8 }
 0x1ec   : > { %v1504_v13 = vadd.f32 %v7702_v43, %v1354_v5  ;;  %v1506_v14 = vadd.f32 %v7704_v44, %v1356_v6  ;;  %v1008_v15 = vpop.f32.mrf.mxu0  ;;  %v1201_v16 = vpop.f32.mrf.mxu1 }
 0x1ed   : > { %v6147_v17 = vpack.c.bf16 %v1629_v9, %v1628_v3  ;;  %v6148_v18 = vpack.c.bf16 %v1631_v10, %v1630_v4  ;;  %v1505_v19 = vadd.f32 %v7712_v51, %v1355_v11  ;;  %v1507_v20 = vadd.f32 %v7714_v52, %v1357_v12 }
 0x1ee   : > { %v1632_v21 = vmax.f32 %v1504_v13, 0.0  ;;  %v1634_v22 = vmax.f32 %v1506_v14, 0.0  ;;  %v1358_v23 = vmul.f32 %v7698_v41, %v1008_v15  ;;  %v1360_v24 = vmul.f32 %v7700_v42, %v1201_v16  ;;  %v1010_v25 = vpop.f32.mrf.mxu0  ;;  %v1203_v26 = vpop.f32.mrf.mxu1 }
 0x1ef   : > { %2096 = vst [vmem:[#allocation2 + $0x160] sm:$0xff] %v6147_v17  ;;  %2097 = vst [vmem:[#allocation2 + $0x168] sm:$0xff] %v6148_v18  ;;  %v1633_v27 = vmax.f32 %v1505_v19, 0.0  ;;  %v1635_v28 = vmax.f32 %v1507_v20, 0.0  ;;  %v1359_v29 = vmul.f32 %v7706_v45, %v1010_v25  ;;  %v1361_v30 = vmul.f32 %v7708_v46, %v1203_v26 }
 0x1f0   : > { %v1508_v31 = vadd.f32 %v7702_v43, %v1358_v23  ;;  %v1510_v32 = vadd.f32 %v7704_v44, %v1360_v24  ;;  %v1012_v33 = vpop.f32.mrf.mxu0  ;;  %v1205_v34 = vpop.f32.mrf.mxu1 }
 0x1f1   : > { %v6149_v35 = vpack.c.bf16 %v1633_v27, %v1632_v21  ;;  %v6150_v36 = vpack.c.bf16 %v1635_v28, %v1634_v22  ;;  %v1509_v37 = vadd.f32 %v7712_v51, %v1359_v29  ;;  %v1511_v38 = vadd.f32 %v7714_v52, %v1361_v30 }
 0x1f2   : > { %v1636_v39 = vmax.f32 %v1508_v31, 0.0  ;;  %v1638_v40 = vmax.f32 %v1510_v32, 0.0  ;;  %v1362_v47 = vmul.f32 %v7698_v41, %v1012_v33  ;;  %v1364_v48 = vmul.f32 %v7700_v42, %v1205_v34  ;;  %v1014_v49 = vpop.f32.mrf.mxu0  ;;  %v1207_v50 = vpop.f32.mrf.mxu1 }
 0x1f3   : > { %2098 = vst [vmem:[#allocation2 + $0x170] sm:$0xff] %v6149_v35  ;;  %2099 = vst [vmem:[#allocation2 + $0x178] sm:$0xff] %v6150_v36  ;;  %v1637_v53 = vmax.f32 %v1509_v37, 0.0  ;;  %v1639_v54 = vmax.f32 %v1511_v38, 0.0  ;;  %v1363_v55 = vmul.f32 %v7706_v45, %v1014_v49  ;;  %v1365_v56 = vmul.f32 %v7708_v46, %v1207_v50 }
 0x1f4   : > { %v1512_v57 = vadd.f32 %v7702_v43, %v1362_v47  ;;  %v1514_v58 = vadd.f32 %v7704_v44, %v1364_v48  ;;  %v1018_v59 = vpop.f32.mrf.mxu0  ;;  %v1211_v60 = vpop.f32.mrf.mxu1 }
 0x1f5   : > { %v6151_v61 = vpack.c.bf16 %v1637_v53, %v1636_v39  ;;  %v6152_v62 = vpack.c.bf16 %v1639_v54, %v1638_v40  ;;  %v1513_v63 = vadd.f32 %v7712_v51, %v1363_v55  ;;  %v1515_v0 = vadd.f32 %v7714_v52, %v1365_v56 }
 0x1f6   : > { %v1640_v1 = vmax.f32 %v1512_v57, 0.0  ;;  %v1642_v2 = vmax.f32 %v1514_v58, 0.0  ;;  %v1366_v3 = vmul.f32 %v7698_v41, %v1018_v59  ;;  %v1368_v4 = vmul.f32 %v7700_v42, %v1211_v60  ;;  %v1020_v5 = vpop.f32.mrf.mxu0  ;;  %v1213_v6 = vpop.f32.mrf.mxu1 }
 0x1f7   : > { %2100 = vst [vmem:[#allocation2 + $0x180] sm:$0xff] %v6151_v61  ;;  %2101 = vst [vmem:[#allocation2 + $0x188] sm:$0xff] %v6152_v62  ;;  %v1641_v7 = vmax.f32 %v1513_v63, 0.0  ;;  %v1643_v8 = vmax.f32 %v1515_v0, 0.0  ;;  %v1367_v9 = vmul.f32 %v7706_v45, %v1020_v5  ;;  %v1369_v10 = vmul.f32 %v7708_v46, %v1213_v6 }
 0x1f8   : > { %v1516_v11 = vadd.f32 %v7702_v43, %v1366_v3  ;;  %v1518_v12 = vadd.f32 %v7704_v44, %v1368_v4  ;;  %v1022_v13 = vpop.f32.mrf.mxu0  ;;  %v1215_v14 = vpop.f32.mrf.mxu1 }
 0x1f9   : > { %v6153_v15 = vpack.c.bf16 %v1641_v7, %v1640_v1  ;;  %v6154_v16 = vpack.c.bf16 %v1643_v8, %v1642_v2  ;;  %v1517_v17 = vadd.f32 %v7712_v51, %v1367_v9  ;;  %v1519_v18 = vadd.f32 %v7714_v52, %v1369_v10 }
 0x1fa   : > { %v1644_v19 = vmax.f32 %v1516_v11, 0.0  ;;  %v1646_v20 = vmax.f32 %v1518_v12, 0.0  ;;  %v1370_v21 = vmul.f32 %v7698_v41, %v1022_v13  ;;  %v1372_v22 = vmul.f32 %v7700_v42, %v1215_v14  ;;  %v1024_v23 = vpop.f32.mrf.mxu0  ;;  %v1217_v24 = vpop.f32.mrf.mxu1 }
 0x1fb   : > { %2102 = vst [vmem:[#allocation2 + $0x190] sm:$0xff] %v6153_v15  ;;  %2103 = vst [vmem:[#allocation2 + $0x198] sm:$0xff] %v6154_v16  ;;  %v1645_v25 = vmax.f32 %v1517_v17, 0.0  ;;  %v1647_v26 = vmax.f32 %v1519_v18, 0.0  ;;  %v1371_v27 = vmul.f32 %v7706_v45, %v1024_v23  ;;  %v1373_v28 = vmul.f32 %v7708_v46, %v1217_v24 }
 0x1fc   : > { %v1520_v29 = vadd.f32 %v7702_v43, %v1370_v21  ;;  %v1522_v30 = vadd.f32 %v7704_v44, %v1372_v22  ;;  %v1028_v31 = vpop.f32.mrf.mxu0  ;;  %v1221_v32 = vpop.f32.mrf.mxu1 }
 0x1fd   : > { %v6155_v33 = vpack.c.bf16 %v1645_v25, %v1644_v19  ;;  %v6156_v34 = vpack.c.bf16 %v1647_v26, %v1646_v20  ;;  %v1521_v35 = vadd.f32 %v7712_v51, %v1371_v27  ;;  %v1523_v36 = vadd.f32 %v7714_v52, %v1373_v28 }
 0x1fe   : > { %v1648_v37 = vmax.f32 %v1520_v29, 0.0  ;;  %v1650_v38 = vmax.f32 %v1522_v30, 0.0  ;;  %v1374_v39 = vmul.f32 %v7698_v41, %v1028_v31  ;;  %v1376_v40 = vmul.f32 %v7700_v42, %v1221_v32  ;;  %v1030_v47 = vpop.f32.mrf.mxu0  ;;  %v1223_v48 = vpop.f32.mrf.mxu1 }
 0x1ff   : > { %2104 = vst [vmem:[#allocation2 + $0x1a0] sm:$0xff] %v6155_v33  ;;  %2105 = vst [vmem:[#allocation2 + $0x1a8] sm:$0xff] %v6156_v34  ;;  %v1649_v49 = vmax.f32 %v1521_v35, 0.0  ;;  %v1651_v50 = vmax.f32 %v1523_v36, 0.0  ;;  %v1375_v53 = vmul.f32 %v7706_v45, %v1030_v47  ;;  %v1377_v54 = vmul.f32 %v7708_v46, %v1223_v48 }
 0x200   : > { %v1524_v55 = vadd.f32 %v7702_v43, %v1374_v39  ;;  %v1526_v56 = vadd.f32 %v7704_v44, %v1376_v40  ;;  %v1032_v57 = vpop.f32.mrf.mxu0  ;;  %v1225_v58 = vpop.f32.mrf.mxu1 }
 0x201   : > { %v6157_v59 = vpack.c.bf16 %v1649_v49, %v1648_v37  ;;  %v6158_v60 = vpack.c.bf16 %v1651_v50, %v1650_v38  ;;  %v1525_v61 = vadd.f32 %v7712_v51, %v1375_v53  ;;  %v1527_v62 = vadd.f32 %v7714_v52, %v1377_v54 }
 0x202   : > { %v1652_v63 = vmax.f32 %v1524_v55, 0.0  ;;  %v1654_v0 = vmax.f32 %v1526_v56, 0.0  ;;  %v1378_v1 = vmul.f32 %v7698_v41, %v1032_v57  ;;  %v1380_v2 = vmul.f32 %v7700_v42, %v1225_v58  ;;  %v1034_v3 = vpop.f32.mrf.mxu0  ;;  %v1227_v4 = vpop.f32.mrf.mxu1 }
 0x203   : > { %2106 = vst [vmem:[#allocation2 + $0x1b0] sm:$0xff] %v6157_v59  ;;  %2107 = vst [vmem:[#allocation2 + $0x1b8] sm:$0xff] %v6158_v60  ;;  %v1653_v5 = vmax.f32 %v1525_v61, 0.0  ;;  %v1655_v6 = vmax.f32 %v1527_v62, 0.0  ;;  %v1379_v7 = vmul.f32 %v7706_v45, %v1034_v3  ;;  %v1381_v8 = vmul.f32 %v7708_v46, %v1227_v4 }
 0x204   : > { %v1528_v9 = vadd.f32 %v7702_v43, %v1378_v1  ;;  %v1530_v10 = vadd.f32 %v7704_v44, %v1380_v2  ;;  %v1038_v11 = vpop.f32.mrf.mxu0  ;;  %v1231_v12 = vpop.f32.mrf.mxu1 }
 0x205   : > { %v6159_v13 = vpack.c.bf16 %v1653_v5, %v1652_v63  ;;  %v6160_v14 = vpack.c.bf16 %v1655_v6, %v1654_v0  ;;  %v1529_v15 = vadd.f32 %v7712_v51, %v1379_v7  ;;  %v1531_v16 = vadd.f32 %v7714_v52, %v1381_v8 }
 0x206   : > { %v1656_v17 = vmax.f32 %v1528_v9, 0.0  ;;  %v1658_v18 = vmax.f32 %v1530_v10, 0.0  ;;  %v1382_v19 = vmul.f32 %v7698_v41, %v1038_v11  ;;  %v1384_v20 = vmul.f32 %v7700_v42, %v1231_v12  ;;  %v1040_v21 = vpop.f32.mrf.mxu0  ;;  %v1233_v22 = vpop.f32.mrf.mxu1 }
 0x207   : > { %2108 = vst [vmem:[#allocation2 + $0x1c0] sm:$0xff] %v6159_v13  ;;  %2109 = vst [vmem:[#allocation2 + $0x1c8] sm:$0xff] %v6160_v14  ;;  %v1657_v23 = vmax.f32 %v1529_v15, 0.0  ;;  %v1659_v24 = vmax.f32 %v1531_v16, 0.0  ;;  %v1383_v25 = vmul.f32 %v7706_v45, %v1040_v21  ;;  %v1385_v26 = vmul.f32 %v7708_v46, %v1233_v22 }
 0x208   : > { %v1532_v27 = vadd.f32 %v7702_v43, %v1382_v19  ;;  %v1534_v28 = vadd.f32 %v7704_v44, %v1384_v20  ;;  %v1042_v29 = vpop.f32.mrf.mxu0  ;;  %v1235_v30 = vpop.f32.mrf.mxu1 }
 0x209   : > { %v6161_v31 = vpack.c.bf16 %v1657_v23, %v1656_v17  ;;  %v6162_v32 = vpack.c.bf16 %v1659_v24, %v1658_v18  ;;  %v1533_v33 = vadd.f32 %v7712_v51, %v1383_v25  ;;  %v1535_v34 = vadd.f32 %v7714_v52, %v1385_v26 }
 0x20a   : > { %v1660_v35 = vmax.f32 %v1532_v27, 0.0  ;;  %v1662_v36 = vmax.f32 %v1534_v28, 0.0  ;;  %v1386_v37 = vmul.f32 %v7698_v41, %v1042_v29  ;;  %v1388_v38 = vmul.f32 %v7700_v42, %v1235_v30  ;;  %v1044_v39 = vpop.f32.mrf.mxu0  ;;  %v1237_v40 = vpop.f32.mrf.mxu1 }
 0x20b   : > { %2110 = vst [vmem:[#allocation2 + $0x1d0] sm:$0xff] %v6161_v31  ;;  %2111 = vst [vmem:[#allocation2 + $0x1d8] sm:$0xff] %v6162_v32  ;;  %v1661_v47 = vmax.f32 %v1533_v33, 0.0  ;;  %v1663_v48 = vmax.f32 %v1535_v34, 0.0  ;;  %v1387_v49 = vmul.f32 %v7706_v45, %v1044_v39  ;;  %v1389_v50 = vmul.f32 %v7708_v46, %v1237_v40 }
 0x20c   : > { %v1536_v53 = vadd.f32 %v7702_v43, %v1386_v37  ;;  %v1538_v54 = vadd.f32 %v7704_v44, %v1388_v38 }
 0x20d   : > { %v6163_v55 = vpack.c.bf16 %v1661_v47, %v1660_v35  ;;  %v6164_v56 = vpack.c.bf16 %v1663_v48, %v1662_v36  ;;  %v1537_v41 = vadd.f32 %v7712_v51, %v1387_v49  ;;  %v1539_v42 = vadd.f32 %v7714_v52, %v1389_v50 }
 0x20e   : > { %v1664_v57 = vmax.f32 %v1536_v53, 0.0  ;;  %v1666_v58 = vmax.f32 %v1538_v54, 0.0 }
 0x20f   : > { %2112 = vst [vmem:[#allocation2 + $0x1e0] sm:$0xff] %v6163_v55  ;;  %2113 = vst [vmem:[#allocation2 + $0x1e8] sm:$0xff] %v6164_v56  ;;  %v1665_v59 = vmax.f32 %v1537_v41, 0.0  ;;  %v1667_v60 = vmax.f32 %v1539_v42, 0.0 }
 0x211   : > { %v6165_v61 = vpack.c.bf16 %v1665_v59, %v1664_v57  ;;  %v6166_v45 = vpack.c.bf16 %v1667_v60, %v1666_v58 }
 0x213   : > { %2114 = vst [vmem:[#allocation2 + $0x1f0] sm:$0xff] %v6165_v61  ;;  %2115 = vst [vmem:[#allocation2 + $0x1f8] sm:$0xff] %v6166_v45 }
 0x214 PF: > { %v6365_v43 = vld [vmem:[%s7570_s23 + $0xe4] ss:$16 sps:$4 sm:$0xff]   ;;  %v6369_v46 = vld [vmem:[%s7570_s23 + $0xe0] ss:$16 sps:$4 sm:$0xff]   ;;  %s8896_s24 = sld [smem:[#allocation25_spill]]  ;;  %s5393_s11 = sshll.u32 %s7595_s26, 4  ;;  %s8746_s11 = int_to_ptr.vmem [resolvable:$true] %s5393_s11 }
 0x215   : > { %v6367_v44 = vld [vmem:[%s7570_s23 + $0x2e4] ss:$16 sps:$4 sm:$0xff]   ;;  %3082 = vmatprep.subr.bf16.mxu0 %v6365_v43  ;;  %v6370_v51 = vld [vmem:[%s7570_s23 + $0x2e0] ss:$16 sps:$4 sm:$0xff]   ;;  %s8897_s20 = sld [smem:[#allocation27_spill]]  ;;  %s7089_s21 = scalar_lea.vmem %s8746_s11, 8192 }
 0x216   : > { %3195 = vmatprep.subr.bf16.mxu1 %v6367_v44  ;;  %v6371_v52 = vld [vmem:[%s7570_s23 + $0xc4] ss:$16 sps:$4 sm:$0xff]   ;;  %3083 = vmatpush1.bf16.msra.mxu0 %v6369_v46  ;;  %v6375_v63 = vld [vmem:[%s7570_s23 + $0xc0] ss:$16 sps:$4 sm:$0xff]   ;;  %v6469_v46 = vld [vmem:[%s7570_s23 + $0xec] ss:$16 sps:$4 sm:$0xff]   ;;  %p7090_p8 = scmp.ne.s32.totalorder %s8746_s11, %s7089_s21 }
 0x217   : > { %3196 = vmatpush1.bf16.msra.mxu1 %v6370_v51  ;;  %v6373_v62 = vld [vmem:[%s7570_s23 + $0x2c4] ss:$16 sps:$4 sm:$0xff]   ;;  %3084 = vmatprep.subr.bf16.mxu0 %v6371_v52  ;;  %v6376_v0 = vld [vmem:[%s7570_s23 + $0x2c0] ss:$16 sps:$4 sm:$0xff]   ;;  %v6472_v51 = vld [vmem:[%s7570_s23 + $0x2ec] ss:$16 sps:$4 sm:$0xff]  }
 0x218   : > { %3197 = vmatprep.subr.bf16.mxu1 %v6373_v62  ;;  %v6377_v1 = vld [vmem:[%s7570_s23 + $0xa4] ss:$16 sps:$4 sm:$0xff]   ;;  %v6381_v3 = vld [vmem:[%s7570_s23 + $0xa0] ss:$16 sps:$4 sm:$0xff]   ;;  %s8898_s12 = sld [smem:[#allocation26_spill]]  ;;  %p7091_p6 = pnand %p7090_p8, %p7404_p1 }
 0x219   : > { %v6379_v2 = vld [vmem:[%s7570_s23 + $0x2a4] ss:$16 sps:$4 sm:$0xff]   ;;  %v6382_v4 = vld [vmem:[%s7570_s23 + $0x2a0] ss:$16 sps:$4 sm:$0xff]   ;;  %s8900_s30 = sld [smem:[#allocation41_spill]] }
 0x21a   : > { %3085 = vmatpush1.bf16.msra.mxu0 %v6375_v63  ;;  %v6383_v5 = vld [vmem:[%s7570_s23 + $0x84] ss:$16 sps:$4 sm:$0xff]   ;;  %v6387_v7 = vld [vmem:[%s7570_s23 + $0x80] ss:$16 sps:$4 sm:$0xff]   ;;  %s5796_s0 = sshll.u32 %s8896_s24, 7  ;;  %p7092_p11 = pneg %p7091_p6 }
 0x21b   : > { %3198 = vmatpush1.bf16.msra.mxu1 %v6376_v0  ;;  %3086 = vmatprep.subr.bf16.mxu0 %v6377_v1  ;;  %v6385_v6 = vld [vmem:[%s7570_s23 + $0x284] ss:$16 sps:$4 sm:$0xff]   ;;  %v6388_v8 = vld [vmem:[%s7570_s23 + $0x280] ss:$16 sps:$4 sm:$0xff]   ;;  %s2117_s27 = sshra.s32 %s5796_s0, 3  ;;  %s7251_s24 = smov [#allocation15]  }
 0x21c   : > { %3199 = vmatprep.subr.bf16.mxu1 %v6379_v2  ;;  %v6389_v9 = vld [vmem:[%s7570_s23 + $0x64] ss:$16 sps:$4 sm:$0xff]   ;;  %v6393_v11 = vld [vmem:[%s7570_s23 + $0x60] ss:$16 sps:$4 sm:$0xff]   ;;  %s6167_s14 = sshll.u32 %s2117_s27, 4 }
 0x21d   : > { %v6391_v10 = vld [vmem:[%s7570_s23 + $0x264] ss:$16 sps:$4 sm:$0xff]   ;;  %v6394_v12 = vld [vmem:[%s7570_s23 + $0x260] ss:$16 sps:$4 sm:$0xff]   ;;  %s8021_s29 = scalar_lea.vmem [#allocation2], %s6167_s14 }
 0x21e   : > { %3087 = vmatpush1.bf16.msra.mxu0 %v6381_v3  ;;  %v6395_v13 = vld [vmem:[%s7570_s23 + $0x44] ss:$16 sps:$4 sm:$0xff]   ;;  %v6399_v15 = vld [vmem:[%s7570_s23 + $0x40] ss:$16 sps:$4 sm:$0xff]   ;;  %v8029_v50 = vld [vmem:[%s8021_s29 + $0xc] ss:$16 sps:$4 sm:$0xff]  }
 0x21f   : > { %3200 = vmatpush1.bf16.msra.mxu1 %v6382_v4  ;;  %3088 = vmatprep.subr.bf16.mxu0 %v6383_v5  ;;  %v6397_v14 = vld [vmem:[%s7570_s23 + $0x244] ss:$16 sps:$4 sm:$0xff]   ;;  %v6400_v16 = vld [vmem:[%s7570_s23 + $0x240] ss:$16 sps:$4 sm:$0xff]   ;;  %v8053_v62 = vld [vmem:[%s8021_s29 + $0x8] ss:$16 sps:$4 sm:$0xff]   ;;  %s8901_s4 = smov %s8900_s30 }
 0x220   : > { %3201 = vmatprep.subr.bf16.mxu1 %v6385_v6  ;;  %v6401_v17 = vld [vmem:[%s7570_s23 + $0x24] ss:$16 sps:$4 sm:$0xff]   ;;  %v6405_v19 = vld [vmem:[%s7570_s23 + $0x20] ss:$16 sps:$4 sm:$0xff]   ;;  %3227 = vmatprep.mubr.bf16.mxu1 %v8029_v50  ;;  %v6467_v63 = vld [vmem:[%s7570_s23 + $0xe8] ss:$16 sps:$4 sm:$0xff]  }
 0x221   : > { %v6403_v18 = vld [vmem:[%s7570_s23 + $0x224] ss:$16 sps:$4 sm:$0xff]   ;;  %v6406_v20 = vld [vmem:[%s7570_s23 + $0x220] ss:$16 sps:$4 sm:$0xff]   ;;  %v6470_v0 = vld [vmem:[%s7570_s23 + $0x2e8] ss:$16 sps:$4 sm:$0xff]  }
 0x222   : > { %3089 = vmatpush1.bf16.msra.mxu0 %v6387_v7  ;;  %v6407_v21 = vld [vmem:[%s7570_s23 + $0x4] ss:$16 sps:$4 sm:$0xff]   ;;  %v6411_v23 = vld [vmem:[%s7570_s23] ss:$16 sps:$4 sm:$0xff]   ;;  %v6475_v1 = vld [vmem:[%s7570_s23 + $0xcc] ss:$16 sps:$4 sm:$0xff]  }
 0x223   : > { %3202 = vmatpush1.bf16.msra.mxu1 %v6388_v8  ;;  %3090 = vmatprep.subr.bf16.mxu0 %v6389_v9  ;;  %v6409_v22 = vld [vmem:[%s7570_s23 + $0x204] ss:$16 sps:$4 sm:$0xff]   ;;  %v6412_v24 = vld [vmem:[%s7570_s23 + $0x200] ss:$16 sps:$4 sm:$0xff]   ;;  %v6478_v2 = vld [vmem:[%s7570_s23 + $0x2cc] ss:$16 sps:$4 sm:$0xff]  }
 0x224   : > { %3203 = vmatprep.subr.bf16.mxu1 %v6391_v10  ;;  %v6413_v25 = vld [vmem:[%s7570_s23 + $0x1e4] ss:$16 sps:$4 sm:$0xff]   ;;  %v6417_v27 = vld [vmem:[%s7570_s23 + $0x1e0] ss:$16 sps:$4 sm:$0xff]   ;;  %v8063_v4 = vld [vmem:[%s8021_s29 + $0x2c] ss:$16 sps:$4 sm:$0xff]  }
 0x225   : > { %v6415_v26 = vld [vmem:[%s7570_s23 + $0x3e4] ss:$16 sps:$4 sm:$0xff]   ;;  %v6418_v28 = vld [vmem:[%s7570_s23 + $0x3e0] ss:$16 sps:$4 sm:$0xff]   ;;  %v6473_v5 = vld [vmem:[%s7570_s23 + $0xc8] ss:$16 sps:$4 sm:$0xff]  }
 0x226   : > { %3091 = vmatpush1.bf16.msra.mxu0 %v6393_v11  ;;  %v6419_v29 = vld [vmem:[%s7570_s23 + $0x1c4] ss:$16 sps:$4 sm:$0xff]   ;;  %v6423_v31 = vld [vmem:[%s7570_s23 + $0x1c0] ss:$16 sps:$4 sm:$0xff]   ;;  %v6476_v6 = vld [vmem:[%s7570_s23 + $0x2c8] ss:$16 sps:$4 sm:$0xff]  }
 0x227   : > { %3204 = vmatpush1.bf16.msra.mxu1 %v6394_v12  ;;  %3092 = vmatprep.subr.bf16.mxu0 %v6395_v13  ;;  %v6421_v30 = vld [vmem:[%s7570_s23 + $0x3c4] ss:$16 sps:$4 sm:$0xff]   ;;  %v6424_v32 = vld [vmem:[%s7570_s23 + $0x3c0] ss:$16 sps:$4 sm:$0xff]   ;;  %v6487_v7 = vld [vmem:[%s7570_s23 + $0xac] ss:$16 sps:$4 sm:$0xff]  }
 0x228   : > { %3205 = vmatprep.subr.bf16.mxu1 %v6397_v14  ;;  %v6425_v33 = vld [vmem:[%s7570_s23 + $0x1a4] ss:$16 sps:$4 sm:$0xff]   ;;  %v6429_v35 = vld [vmem:[%s7570_s23 + $0x1a0] ss:$16 sps:$4 sm:$0xff]   ;;  %v6490_v8 = vld [vmem:[%s7570_s23 + $0x2ac] ss:$16 sps:$4 sm:$0xff]  }
 0x229   : > { %v6427_v34 = vld [vmem:[%s7570_s23 + $0x3a4] ss:$16 sps:$4 sm:$0xff]   ;;  %v6430_v36 = vld [vmem:[%s7570_s23 + $0x3a0] ss:$16 sps:$4 sm:$0xff]   ;;  %v8077_v10 = vld [vmem:[%s8021_s29 + $0x28] ss:$16 sps:$4 sm:$0xff]  }
 0x22a   : > { %3093 = vmatpush1.bf16.msra.mxu0 %v6399_v15  ;;  %v6431_v37 = vld [vmem:[%s7570_s23 + $0x184] ss:$16 sps:$4 sm:$0xff]   ;;  %v6435_v39 = vld [vmem:[%s7570_s23 + $0x180] ss:$16 sps:$4 sm:$0xff]   ;;  %v6485_v11 = vld [vmem:[%s7570_s23 + $0xa8] ss:$16 sps:$4 sm:$0xff]  }
 0x22b   : > { %3206 = vmatpush1.bf16.msra.mxu1 %v6400_v16  ;;  %3094 = vmatprep.subr.bf16.mxu0 %v6401_v17  ;;  %v6433_v38 = vld [vmem:[%s7570_s23 + $0x384] ss:$16 sps:$4 sm:$0xff]   ;;  %v6436_v40 = vld [vmem:[%s7570_s23 + $0x380] ss:$16 sps:$4 sm:$0xff]   ;;  %v6488_v12 = vld [vmem:[%s7570_s23 + $0x2a8] ss:$16 sps:$4 sm:$0xff]  }
 0x22c   : > { %3207 = vmatprep.subr.bf16.mxu1 %v6403_v18  ;;  %v6437_v47 = vld [vmem:[%s7570_s23 + $0x164] ss:$16 sps:$4 sm:$0xff]   ;;  %v6441_v53 = vld [vmem:[%s7570_s23 + $0x160] ss:$16 sps:$4 sm:$0xff]   ;;  %v6493_v13 = vld [vmem:[%s7570_s23 + $0x8c] ss:$16 sps:$4 sm:$0xff]  }
 0x22d   : > { %v8025_v48 = vld [vmem:[%s8021_s29 + $0x4] ss:$16 sps:$4 sm:$0xff]   ;;  %v6442_v54 = vld [vmem:[%s7570_s23 + $0x360] ss:$16 sps:$4 sm:$0xff]   ;;  %v6496_v14 = vld [vmem:[%s7570_s23 + $0x28c] ss:$16 sps:$4 sm:$0xff]  }
 0x22e   : > { %3095 = vmatpush1.bf16.msra.mxu0 %v6405_v19  ;;  %v6439_v49 = vld [vmem:[%s7570_s23 + $0x364] ss:$16 sps:$4 sm:$0xff]   ;;  %3114 = vmatprep.mubr.bf16.mxu0 %v8025_v48  ;;  %v6447_v41 = vld [vmem:[%s7570_s23 + $0x140] ss:$16 sps:$4 sm:$0xff]   ;;  %v8087_v16 = vld [vmem:[%s8021_s29 + $0x4c] ss:$16 sps:$4 sm:$0xff]  }
 0x22f   : > { %3208 = vmatpush1.bf16.msra.mxu1 %v6406_v20  ;;  %3096 = vmatprep.subr.bf16.mxu0 %v6407_v21  ;;  %v6443_v55 = vld [vmem:[%s7570_s23 + $0x144] ss:$16 sps:$4 sm:$0xff]   ;;  %v6448_v42 = vld [vmem:[%s7570_s23 + $0x340] ss:$16 sps:$4 sm:$0xff]   ;;  %v6491_v17 = vld [vmem:[%s7570_s23 + $0x88] ss:$16 sps:$4 sm:$0xff]  }
 0x230   : > { %3209 = vmatprep.subr.bf16.mxu1 %v6409_v22  ;;  %v6445_v56 = vld [vmem:[%s7570_s23 + $0x344] ss:$16 sps:$4 sm:$0xff]   ;;  %v6453_v59 = vld [vmem:[%s7570_s23 + $0x120] ss:$16 sps:$4 sm:$0xff]   ;;  %v6494_v18 = vld [vmem:[%s7570_s23 + $0x288] ss:$16 sps:$4 sm:$0xff]  }
 0x231   : > { %v6449_v57 = vld [vmem:[%s7570_s23 + $0x124] ss:$16 sps:$4 sm:$0xff]   ;;  %v6454_v60 = vld [vmem:[%s7570_s23 + $0x320] ss:$16 sps:$4 sm:$0xff]   ;;  %v6505_v19 = vld [vmem:[%s7570_s23 + $0x6c] ss:$16 sps:$4 sm:$0xff]  }
 0x232   : > { %3097 = vmatpush1.bf16.msra.mxu0 %v6411_v23  ;;  %v6451_v58 = vld [vmem:[%s7570_s23 + $0x324] ss:$16 sps:$4 sm:$0xff]   ;;  %v6459_v43 = vld [vmem:[%s7570_s23 + $0x100] ss:$16 sps:$4 sm:$0xff]   ;;  %v6508_v20 = vld [vmem:[%s7570_s23 + $0x26c] ss:$16 sps:$4 sm:$0xff]  }
 0x233   : > { %3210 = vmatpush1.bf16.msra.mxu1 %v6412_v24  ;;  %3098 = vmatprep.subr.bf16.mxu0 %v6413_v25  ;;  %v6455_v61 = vld [vmem:[%s7570_s23 + $0x104] ss:$16 sps:$4 sm:$0xff]   ;;  %v6460_v44 = vld [vmem:[%s7570_s23 + $0x300] ss:$16 sps:$4 sm:$0xff]   ;;  %v8101_v22 = vld [vmem:[%s8021_s29 + $0x48] ss:$16 sps:$4 sm:$0xff]  }
 0x234   : > { %3211 = vmatprep.subr.bf16.mxu1 %v6415_v26  ;;  %v6457_v45 = vld [vmem:[%s7570_s23 + $0x304] ss:$16 sps:$4 sm:$0xff]   ;;  %v8050_v52 = vld [vmem:[%s8021_s29] ss:$16 sps:$4 sm:$0xff]   ;;  %v6503_v23 = vld [vmem:[%s7570_s23 + $0x68] ss:$16 sps:$4 sm:$0xff]  }
 0x235   : > { %v8060_v3 = vld [vmem:[%s8021_s29 + $0x24] ss:$16 sps:$4 sm:$0xff]   ;;  %v8074_v9 = vld [vmem:[%s8021_s29 + $0x20] ss:$16 sps:$4 sm:$0xff]   ;;  %v6506_v24 = vld [vmem:[%s7570_s23 + $0x268] ss:$16 sps:$4 sm:$0xff]  }
 0x236   : > { %3099 = vmatpush2.bf16.msra.mxu0 %v6417_v27  ;;  %v8084_v15 = vld [vmem:[%s8021_s29 + $0x44] ss:$16 sps:$4 sm:$0xff]   ;;  %v8098_v21 = vld [vmem:[%s8021_s29 + $0x40] ss:$16 sps:$4 sm:$0xff]   ;;  %v6511_v25 = vld [vmem:[%s7570_s23 + $0x4c] ss:$16 sps:$4 sm:$0xff]  }
 0x237   : > { %3212 = vmatpush2.bf16.msra.mxu1 %v6418_v28  ;;  %3100 = vmatprep.subr.bf16.mxu0 %v6419_v29  ;;  %v6514_v26 = vld [vmem:[%s7570_s23 + $0x24c] ss:$16 sps:$4 sm:$0xff]   ;;  %v8108_v27 = vld [vmem:[%s8021_s29 + $0x64] ss:$16 sps:$4 sm:$0xff]   ;;  %v6509_v29 = vld [vmem:[%s7570_s23 + $0x48] ss:$16 sps:$4 sm:$0xff]  }
 0x238   : > { %3213 = vmatprep.subr.bf16.mxu1 %v6421_v30  ;;  %v8111_v28 = vld [vmem:[%s8021_s29 + $0x6c] ss:$16 sps:$4 sm:$0xff]   ;;  %v6512_v30 = vld [vmem:[%s7570_s23 + $0x248] ss:$16 sps:$4 sm:$0xff]   ;;  %s6091_s15 = sshll.u32 %s8898_s12, 8 }
 0x23a   : > { %3101 = vmatpush2.bf16.msra.mxu0 %v6423_v31  ;;  %v6523_v31 = vld [vmem:[%s7570_s23 + $0x2c] ss:$16 sps:$4 sm:$0xff]  }
 0x23b   : > { %3214 = vmatpush2.bf16.msra.mxu1 %v6424_v32  ;;  %3102 = vmatprep.subr.bf16.mxu0 %v6425_v33  ;;  %v6526_v32 = vld [vmem:[%s7570_s23 + $0x22c] ss:$16 sps:$4 sm:$0xff]   ;;  %v8122_v33 = vld [vmem:[%s8021_s29 + $0x60] ss:$16 sps:$4 sm:$0xff]  }
 0x23c   : > { %3215 = vmatprep.subr.bf16.mxu1 %v6427_v34  ;;  %v8125_v34 = vld [vmem:[%s8021_s29 + $0x68] ss:$16 sps:$4 sm:$0xff]  }
 0x23e   : > { %3103 = vmatpush2.bf16.msra.mxu0 %v6429_v35  ;;  %v6521_v35 = vld [vmem:[%s7570_s23 + $0x28] ss:$16 sps:$4 sm:$0xff]  }
 0x23f   : > { %3216 = vmatpush2.bf16.msra.mxu1 %v6430_v36  ;;  %3104 = vmatprep.subr.bf16.mxu0 %v6431_v37  ;;  %v6524_v36 = vld [vmem:[%s7570_s23 + $0x228] ss:$16 sps:$4 sm:$0xff]   ;;  %v6529_v37 = vld [vmem:[%s7570_s23 + $0xc] ss:$16 sps:$4 sm:$0xff]  }
 0x240   : > { %3217 = vmatprep.subr.bf16.mxu1 %v6433_v38  ;;  %v6532_v38 = vld [vmem:[%s7570_s23 + $0x20c] ss:$16 sps:$4 sm:$0xff]  }
 0x242   : > { %3105 = vmatpush2.bf16.msra.mxu0 %v6435_v39  ;;  %v8132_v39 = vld [vmem:[%s8021_s29 + $0x84] ss:$16 sps:$4 sm:$0xff]  }
 0x243   : > { %3218 = vmatpush2.bf16.msra.mxu1 %v6436_v40  ;;  %3106 = vmatprep.subr.bf16.mxu0 %v6437_v47  ;;  %v8135_v40 = vld [vmem:[%s8021_s29 + $0x8c] ss:$16 sps:$4 sm:$0xff]   ;;  %v6527_v47 = vld [vmem:[%s7570_s23 + $0x8] ss:$16 sps:$4 sm:$0xff]  }
 0x244   : > { %3219 = vmatprep.subr.bf16.mxu1 %v6439_v49  ;;  %v6530_v49 = vld [vmem:[%s7570_s23 + $0x208] ss:$16 sps:$4 sm:$0xff]  }
 0x246   : > { %3107 = vmatpush2.bf16.msra.mxu0 %v6441_v53  ;;  %v6541_v53 = vld [vmem:[%s7570_s23 + $0x1ec] ss:$16 sps:$4 sm:$0xff]  }
 0x247   : > { %3220 = vmatpush2.bf16.msra.mxu1 %v6442_v54  ;;  %3108 = vmatprep.subr.bf16.mxu0 %v6443_v55  ;;  %v6544_v54 = vld [vmem:[%s7570_s23 + $0x3ec] ss:$16 sps:$4 sm:$0xff]   ;;  %v8146_v55 = vld [vmem:[%s8021_s29 + $0x80] ss:$16 sps:$4 sm:$0xff]  }
 0x248   : > { %3221 = vmatprep.subr.bf16.mxu1 %v6445_v56  ;;  %v8149_v56 = vld [vmem:[%s8021_s29 + $0x88] ss:$16 sps:$4 sm:$0xff]  }
 0x24a   : > { %3109 = vmatpush2.bf16.msra.mxu0 %v6447_v41  ;;  %v6539_v41 = vld [vmem:[%s7570_s23 + $0x1e8] ss:$16 sps:$4 sm:$0xff]  }
 0x24b   : > { %3222 = vmatpush2.bf16.msra.mxu1 %v6448_v42  ;;  %3110 = vmatprep.subr.bf16.mxu0 %v6449_v57  ;;  %v6542_v42 = vld [vmem:[%s7570_s23 + $0x3e8] ss:$16 sps:$4 sm:$0xff]   ;;  %v6547_v57 = vld [vmem:[%s7570_s23 + $0x1cc] ss:$16 sps:$4 sm:$0xff]  }
 0x24c   : > { %3223 = vmatprep.subr.bf16.mxu1 %v6451_v58  ;;  %v6550_v58 = vld [vmem:[%s7570_s23 + $0x3cc] ss:$16 sps:$4 sm:$0xff]  }
 0x24e   : > { %3111 = vmatpush2.bf16.msra.mxu0 %v6453_v59  ;;  %v8156_v59 = vld [vmem:[%s8021_s29 + $0xa4] ss:$16 sps:$4 sm:$0xff]  }
 0x24f   : > { %3224 = vmatpush2.bf16.msra.mxu1 %v6454_v60  ;;  %3112 = vmatprep.subr.bf16.mxu0 %v6455_v61  ;;  %v8159_v60 = vld [vmem:[%s8021_s29 + $0xac] ss:$16 sps:$4 sm:$0xff]   ;;  %v6545_v61 = vld [vmem:[%s7570_s23 + $0x1c8] ss:$16 sps:$4 sm:$0xff]  }
 0x250   : > { %3225 = vmatprep.subr.bf16.mxu1 %v6457_v45  ;;  %v6548_v45 = vld [vmem:[%s7570_s23 + $0x3c8] ss:$16 sps:$4 sm:$0xff]  }
 0x252   : > { %3113 = vmatpush2.bf16.msra.mxu0 %v6459_v43  ;;  %v6559_v43 = vld [vmem:[%s7570_s23 + $0x1ac] ss:$16 sps:$4 sm:$0xff]  }
 0x253   : > { %3226 = vmatpush2.bf16.msra.mxu1 %v6460_v44  ;;  %3308 = vmatprep.subr.bf16.mxu0 %v6469_v46  ;;  %v6562_v44 = vld [vmem:[%s7570_s23 + $0x3ac] ss:$16 sps:$4 sm:$0xff]   ;;  %v8170_v46 = vld [vmem:[%s8021_s29 + $0xa0] ss:$16 sps:$4 sm:$0xff]  }
 0x254   : > { %3421 = vmatprep.subr.bf16.mxu1 %v6472_v51  ;;  %v8173_v51 = vld [vmem:[%s8021_s29 + $0xa8] ss:$16 sps:$4 sm:$0xff]  }
 0x255   : > { %3115 = vmatmul.mubr.bf16.vlgmr.msra.gmra.mxu0 %v8050_v52 }
 0x256   : > { %3228 = vmatmul.mubr.bf16.vlgmr.msra.gmra.mxu1 %v8053_v62  ;;  %3309 = vmatpush1.bf16.msra.mxu0 %v6467_v63  ;;  %v6557_v63 = vld [vmem:[%s7570_s23 + $0x1a8] ss:$16 sps:$4 sm:$0xff]  }
 0x257   : > { %3422 = vmatpush1.bf16.msra.mxu1 %v6470_v0  ;;  %3310 = vmatprep.subr.bf16.mxu0 %v6475_v1  ;;  %v6560_v0 = vld [vmem:[%s7570_s23 + $0x3a8] ss:$16 sps:$4 sm:$0xff]   ;;  %v6565_v1 = vld [vmem:[%s7570_s23 + $0x18c] ss:$16 sps:$4 sm:$0xff]  }
 0x258   : > { %3423 = vmatprep.subr.bf16.mxu1 %v6478_v2  ;;  %3124 = vmatprep.mubr.bf16.mxu0 %v8060_v3  ;;  %v6568_v2 = vld [vmem:[%s7570_s23 + $0x38c] ss:$16 sps:$4 sm:$0xff]  }
 0x259   : > { %3237 = vmatprep.mubr.bf16.mxu1 %v8063_v4 }
 0x25a   : > { %3311 = vmatpush1.bf16.msra.mxu0 %v6473_v5  ;;  %v8180_v5 = vld [vmem:[%s8021_s29 + $0xc4] ss:$16 sps:$4 sm:$0xff]  }
 0x25b   : > { %3424 = vmatpush1.bf16.msra.mxu1 %v6476_v6  ;;  %3312 = vmatprep.subr.bf16.mxu0 %v6487_v7  ;;  %v8183_v6 = vld [vmem:[%s8021_s29 + $0xcc] ss:$16 sps:$4 sm:$0xff]   ;;  %v6563_v7 = vld [vmem:[%s7570_s23 + $0x188] ss:$16 sps:$4 sm:$0xff]  }
 0x25c   : > { %3425 = vmatprep.subr.bf16.mxu1 %v6490_v8  ;;  %v6566_v8 = vld [vmem:[%s7570_s23 + $0x388] ss:$16 sps:$4 sm:$0xff]  }
 0x25d   : > { %3125 = vmatmul.mubr.bf16.gmra.mxu0 %v8074_v9 }
 0x25e   : > { %3238 = vmatmul.mubr.bf16.gmra.mxu1 %v8077_v10  ;;  %3313 = vmatpush1.bf16.msra.mxu0 %v6485_v11  ;;  %v6577_v11 = vld [vmem:[%s7570_s23 + $0x16c] ss:$16 sps:$4 sm:$0xff]  }
 0x25f   : > { %3426 = vmatpush1.bf16.msra.mxu1 %v6488_v12  ;;  %3314 = vmatprep.subr.bf16.mxu0 %v6493_v13  ;;  %v6580_v12 = vld [vmem:[%s7570_s23 + $0x36c] ss:$16 sps:$4 sm:$0xff]   ;;  %v8194_v13 = vld [vmem:[%s8021_s29 + $0xc0] ss:$16 sps:$4 sm:$0xff]  }
 0x260   : > { %3427 = vmatprep.subr.bf16.mxu1 %v6496_v14  ;;  %3134 = vmatprep.mubr.bf16.mxu0 %v8084_v15  ;;  %v8197_v14 = vld [vmem:[%s8021_s29 + $0xc8] ss:$16 sps:$4 sm:$0xff]  }
 0x261   : > { %3247 = vmatprep.mubr.bf16.mxu1 %v8087_v16 }
 0x262   : > { %3315 = vmatpush1.bf16.msra.mxu0 %v6491_v17  ;;  %v6575_v17 = vld [vmem:[%s7570_s23 + $0x168] ss:$16 sps:$4 sm:$0xff]  }
 0x263   : > { %3428 = vmatpush1.bf16.msra.mxu1 %v6494_v18  ;;  %3316 = vmatprep.subr.bf16.mxu0 %v6505_v19  ;;  %v6578_v18 = vld [vmem:[%s7570_s23 + $0x368] ss:$16 sps:$4 sm:$0xff]   ;;  %v6583_v19 = vld [vmem:[%s7570_s23 + $0x14c] ss:$16 sps:$4 sm:$0xff]  }
 0x264   : > { %3429 = vmatprep.subr.bf16.mxu1 %v6508_v20  ;;  %v6586_v20 = vld [vmem:[%s7570_s23 + $0x34c] ss:$16 sps:$4 sm:$0xff]  }
 0x265   : > { %3135 = vmatmul.mubr.bf16.gmra.mxu0 %v8098_v21 }
 0x266   : > { %3248 = vmatmul.mubr.bf16.gmra.mxu1 %v8101_v22  ;;  %3317 = vmatpush1.bf16.msra.mxu0 %v6503_v23  ;;  %v8204_v23 = vld [vmem:[%s8021_s29 + $0xe4] ss:$16 sps:$4 sm:$0xff]  }
 0x267   : > { %3430 = vmatpush1.bf16.msra.mxu1 %v6506_v24  ;;  %3318 = vmatprep.subr.bf16.mxu0 %v6511_v25  ;;  %v8207_v24 = vld [vmem:[%s8021_s29 + $0xec] ss:$16 sps:$4 sm:$0xff]   ;;  %v6581_v25 = vld [vmem:[%s7570_s23 + $0x148] ss:$16 sps:$4 sm:$0xff]  }
 0x268   : > { %3431 = vmatprep.subr.bf16.mxu1 %v6514_v26  ;;  %3144 = vmatprep.mubr.bf16.mxu0 %v8108_v27  ;;  %v6584_v26 = vld [vmem:[%s7570_s23 + $0x348] ss:$16 sps:$4 sm:$0xff]  }
 0x269   : > { %3257 = vmatprep.mubr.bf16.mxu1 %v8111_v28 }
 0x26a   : > { %3319 = vmatpush1.bf16.msra.mxu0 %v6509_v29  ;;  %v6595_v29 = vld [vmem:[%s7570_s23 + $0x12c] ss:$16 sps:$4 sm:$0xff]  }
 0x26b   : > { %3432 = vmatpush1.bf16.msra.mxu1 %v6512_v30  ;;  %3320 = vmatprep.subr.bf16.mxu0 %v6523_v31  ;;  %v6598_v30 = vld [vmem:[%s7570_s23 + $0x32c] ss:$16 sps:$4 sm:$0xff]   ;;  %v8218_v31 = vld [vmem:[%s8021_s29 + $0xe0] ss:$16 sps:$4 sm:$0xff]  }
 0x26c   : > { %3433 = vmatprep.subr.bf16.mxu1 %v6526_v32  ;;  %v8221_v32 = vld [vmem:[%s8021_s29 + $0xe8] ss:$16 sps:$4 sm:$0xff]  }
 0x26d   : > { %3145 = vmatmul.mubr.bf16.gmra.mxu0 %v8122_v33 }
 0x26e   : > { %3258 = vmatmul.mubr.bf16.gmra.mxu1 %v8125_v34  ;;  %3321 = vmatpush1.bf16.msra.mxu0 %v6521_v35  ;;  %v6593_v35 = vld [vmem:[%s7570_s23 + $0x128] ss:$16 sps:$4 sm:$0xff]  }
 0x26f   : > { %3434 = vmatpush1.bf16.msra.mxu1 %v6524_v36  ;;  %3322 = vmatprep.subr.bf16.mxu0 %v6529_v37  ;;  %v6596_v36 = vld [vmem:[%s7570_s23 + $0x328] ss:$16 sps:$4 sm:$0xff]   ;;  %v6601_v37 = vld [vmem:[%s7570_s23 + $0x10c] ss:$16 sps:$4 sm:$0xff]  }
 0x270   : > { %3435 = vmatprep.subr.bf16.mxu1 %v6532_v38  ;;  %3154 = vmatprep.mubr.bf16.mxu0 %v8132_v39  ;;  %v6604_v38 = vld [vmem:[%s7570_s23 + $0x30c] ss:$16 sps:$4 sm:$0xff]  }
 0x271   : > { %3267 = vmatprep.mubr.bf16.mxu1 %v8135_v40 }
 0x272   : > { %3323 = vmatpush1.bf16.msra.mxu0 %v6527_v47  ;;  %v6599_v47 = vld [vmem:[%s7570_s23 + $0x108] ss:$16 sps:$4 sm:$0xff]  }
 0x273   : > { %3436 = vmatpush1.bf16.msra.mxu1 %v6530_v49  ;;  %3324 = vmatprep.subr.bf16.mxu0 %v6541_v53  ;;  %v6602_v49 = vld [vmem:[%s7570_s23 + $0x308] ss:$16 sps:$4 sm:$0xff]   ;;  %v6607_v53 = vld [vmem:[%s7593_s19 + $0x74] ss:$8 sps:$4 sm:$0xff]   ;;  %s6089_s23 = sshll.u32 %s8897_s20, 2 }
 0x274   : > { %3437 = vmatprep.subr.bf16.mxu1 %v6544_v54  ;;  %v6605_v54 = vld [vmem:[%s7593_s19 + $0x70] ss:$8 sps:$4 sm:$0xff]  }
 0x275   : > { %3155 = vmatmul.mubr.bf16.gmra.mxu0 %v8146_v55 }
 0x276   : > { %3268 = vmatmul.mubr.bf16.gmra.mxu1 %v8149_v56  ;;  %3325 = vmatpush2.bf16.msra.mxu0 %v6539_v41  ;;  %v6610_v41 = vld [vmem:[%s7593_s19 + $0x64] ss:$8 sps:$4 sm:$0xff]  }
 0x277   : > { %3438 = vmatpush2.bf16.msra.mxu1 %v6542_v42  ;;  %3326 = vmatprep.subr.bf16.mxu0 %v6547_v57  ;;  %v6608_v42 = vld [vmem:[%s7593_s19 + $0x60] ss:$8 sps:$4 sm:$0xff]   ;;  %v6616_v57 = vld [vmem:[%s7593_s19 + $0x44] ss:$8 sps:$4 sm:$0xff]  }
 0x278   : > { %3439 = vmatprep.subr.bf16.mxu1 %v6550_v58  ;;  %3164 = vmatprep.mubr.bf16.mxu0 %v8156_v59  ;;  %v6623_v58 = vld [vmem:[%s7593_s19 + $0x10] ss:$8 sps:$4 sm:$0xff]  }
 0x279   : > { %3277 = vmatprep.mubr.bf16.mxu1 %v8159_v60 }
 0x27a   : > { %3327 = vmatpush2.bf16.msra.mxu0 %v6545_v61  ;;  %v6658_v61 = vld [vmem:[%s7593_s19 + $0x164] ss:$8 sps:$4 sm:$0xff]  }
 0x27b   : > { %3440 = vmatpush2.bf16.msra.mxu1 %v6548_v45  ;;  %3328 = vmatprep.subr.bf16.mxu0 %v6559_v43  ;;  %v6661_v45 = vld [vmem:[%s7593_s19 + $0x154] ss:$8 sps:$4 sm:$0xff]   ;;  %v6659_v43 = vld [vmem:[%s7593_s19 + $0x150] ss:$8 sps:$4 sm:$0xff]  }
 0x27c   : > { %3441 = vmatprep.subr.bf16.mxu1 %v6562_v44  ;;  %v6629_v44 = vld [vmem:[%s7593_s19 + $0xf0] ss:$8 sps:$4 sm:$0xff]  }
 0x27d   : > { %3165 = vmatmul.mubr.bf16.gmra.mxu0 %v8170_v46 }
 0x27e   : > { %3278 = vmatmul.mubr.bf16.gmra.mxu1 %v8173_v51  ;;  %3329 = vmatpush2.bf16.msra.mxu0 %v6557_v63  ;;  %v6664_v63 = vld [vmem:[%s7593_s19 + $0x144] ss:$8 sps:$4 sm:$0xff]  }
 0x27f   : > { %3442 = vmatpush2.bf16.msra.mxu1 %v6560_v0  ;;  %3330 = vmatprep.subr.bf16.mxu0 %v6565_v1  ;;  %v6665_v0 = vld [vmem:[%s7593_s19 + $0x130] ss:$8 sps:$4 sm:$0xff]   ;;  %v6637_v1 = vld [vmem:[%s7593_s19 + $0xd4] ss:$8 sps:$4 sm:$0xff]  }
 0x280   : > { %3443 = vmatprep.subr.bf16.mxu1 %v6568_v2  ;;  %3174 = vmatprep.mubr.bf16.mxu0 %v8180_v5  ;;  %v6670_v2 = vld [vmem:[%s7593_s19 + $0x124] ss:$8 sps:$4 sm:$0xff]  }
 0x281   : > { %3287 = vmatprep.mubr.bf16.mxu1 %v8183_v6 }
 0x282   : > { %3331 = vmatpush2.bf16.msra.mxu0 %v6563_v7  ;;  %v6638_v7 = vld [vmem:[%s7593_s19 + $0xc0] ss:$8 sps:$4 sm:$0xff]  }
 0x283   : > { %3444 = vmatpush2.bf16.msra.mxu1 %v6566_v8  ;;  %3332 = vmatprep.subr.bf16.mxu0 %v6577_v11  ;;  %v6671_v8 = vld [vmem:[%s7593_s19 + $0x110] ss:$8 sps:$4 sm:$0xff]   ;;  %v6643_v11 = vld [vmem:[%s7593_s19 + $0xb4] ss:$8 sps:$4 sm:$0xff]  }
 0x284   : > { %3445 = vmatprep.subr.bf16.mxu1 %v6580_v12  ;;  %v6676_v12 = vld [vmem:[%s7593_s19 + $0x104] ss:$8 sps:$4 sm:$0xff]  }
 0x285   : > { %3175 = vmatmul.mubr.bf16.gmra.mxu0 %v8194_v13 }
 0x286   : > { %3288 = vmatmul.mubr.bf16.gmra.mxu1 %v8197_v14  ;;  %3333 = vmatpush2.bf16.msra.mxu0 %v6575_v17  ;;  %v6644_v17 = vld [vmem:[%s7593_s19 + $0xa0] ss:$8 sps:$4 sm:$0xff]  }
 0x287   : > { %3446 = vmatpush2.bf16.msra.mxu1 %v6578_v18  ;;  %3334 = vmatprep.subr.bf16.mxu0 %v6583_v19  ;;  %v6677_v18 = vld [vmem:[%s7593_s19 + $0x1f0] ss:$8 sps:$4 sm:$0xff]   ;;  %v6649_v19 = vld [vmem:[%s7593_s19 + $0x94] ss:$8 sps:$4 sm:$0xff]  }
 0x288   : > { %3447 = vmatprep.subr.bf16.mxu1 %v6586_v20  ;;  %3184 = vmatprep.mubr.bf16.mxu0 %v8204_v23  ;;  %v6647_v20 = vld [vmem:[%s7593_s19 + $0x90] ss:$8 sps:$4 sm:$0xff]  }
 0x289   : > { %3297 = vmatprep.mubr.bf16.mxu1 %v8207_v24 }
 0x28a   : > { %3335 = vmatpush2.bf16.msra.mxu0 %v6581_v25  ;;  %v3536_v25 = vlaneseq }
 0x28b   : > { %3448 = vmatpush2.bf16.msra.mxu1 %v6584_v26  ;;  %3336 = vmatprep.subr.bf16.mxu0 %v6595_v29  ;;  %v6650_v26 = vld [vmem:[%s7593_s19 + $0x80] ss:$8 sps:$4 sm:$0xff]   ;;  %v6683_v29 = vld [vmem:[%s7593_s19 + $0x1d0] ss:$8 sps:$4 sm:$0xff]  }
 0x28c   : > { %3449 = vmatprep.subr.bf16.mxu1 %v6598_v30  ;;  %v6688_v30 = vld [vmem:[%s7593_s19 + $0x1c4] ss:$8 sps:$4 sm:$0xff]  }
 0x28d   : > { %3185 = vmatmul.mubr.bf16.gmra.mxu0 %v8218_v31 }
 0x28e   : > { %3298 = vmatmul.mubr.bf16.gmra.mxu1 %v8221_v32  ;;  %3337 = vmatpush2.bf16.msra.mxu0 %v6593_v35  ;;  %v8318_v35 = vshrl.u32 %v3536_v25, 7 }
 0x28f   : > { %3450 = vmatpush2.bf16.msra.mxu1 %v6596_v36  ;;  %3338 = vmatprep.subr.bf16.mxu0 %v6601_v37  ;;  %v8324_v36 = vld [vmem:[%s499_s18] sm:$0xf]  ;;  %s5388_s18 = sadd.s32 %s6089_s23, %s5796_s0  ;;  %s7093_s0 = sshll.u32 %s7251_s24, 4  ;;  %s7094_s0 = int_to_ptr.vmem [resolvable:$false] %s7093_s0 }
 0x290   : > { %3451 = vmatprep.subr.bf16.mxu1 %v6604_v38  ;;  %3340 = vmatprep.mubr.bf16.mxu0 %v8025_v48  ;;  %v6613_v48 = vld [vmem:[%s7593_s19 + $0x54] ss:$8 sps:$4 sm:$0xff]   ;;  %s7095_s27 = scalar_lea.vmem %s7094_s0, 16384  ;;  %p7096_p5 = scmp.lt.s32.totalorder %s8746_s11, %s7094_s0 }
 0x291   : > { %3453 = vmatprep.mubr.bf16.mxu1 %v8029_v50  ;;  %v6611_v50 = vld [vmem:[%s7593_s19 + $0x50] ss:$8 sps:$4 sm:$0xff]   ;;  %v6691_v37 = vld [vmem:[%s7593_s19 + $0x1b4] ss:$8 sps:$4 sm:$0xff]   ;;  %p7097_p12 = scmp.lt.s32.totalorder %s7095_s27, %s7089_s21 }
 0x292   : > { %3339 = vmatpush2.bf16.msra.mxu0 %v6599_v47  ;;  %v6689_v47 = vld [vmem:[%s7593_s19 + $0x1b0] ss:$8 sps:$4 sm:$0xff]  }
 0x293   : > { %3452 = vmatpush2.bf16.msra.mxu1 %v6602_v49  ;;  %4186 = vmatprep.subr.bf16.mxu0 %v6607_v53  ;;  %v8333_v49 = vld [vmem:[%s508_s17] sm:$0xf]  ;;  %s5390_s17 = sadd.s32 %s6091_s15, %s5388_s18  ;;  %p7098_p13 = por %p7097_p12, %p7096_p5 }
 0x294   : > { %s6092_s8 = sshll.u32 %s5390_s17, 7 }
 0x295   : > { %3341 = vmatmul.mubr.bf16.vlgmr.msra.gmra.mxu0 %v8050_v52  ;;  %v6614_v52 = vld [vmem:[%s7593_s19 + $0x40] ss:$8 sps:$4 sm:$0xff]   ;;  %s8742_s10 = scalar_lea.hbm %s8900_s30, %s6092_s8  ;;  %p7099_p0 = pnand %p7098_p13, %p7092_p11 }
 0x296   : > { %3454 = vmatmul.mubr.bf16.vlgmr.msra.gmra.mxu1 %v8053_v62  ;;  %3350 = vmatprep.mubr.bf16.mxu0 %v8060_v3  ;;  %v6619_v62 = vld [vmem:[%s7593_s19 + $0x34] ss:$8 sps:$4 sm:$0xff]   ;;  %v6617_v3 = vld [vmem:[%s7593_s19 + $0x30] ss:$8 sps:$4 sm:$0xff]  }
 0x297   : > { %3463 = vmatprep.mubr.bf16.mxu1 %v8063_v4  ;;  %4187 = vmatpush1.bf16.msra.mxu0 %v6605_v54  ;;  %v6622_v4 = vld [vmem:[%s7593_s19 + $0x24] ss:$8 sps:$4 sm:$0xff]  }
 0x298   : > { %4188 = vmatprep.subr.bf16.mxu0 %v6610_v41  ;;  %v6694_v54 = vld [vmem:[%s7593_s19 + $0x1a4] ss:$8 sps:$4 sm:$0xff]   ;;  %v6692_v41 = vld [vmem:[%s7593_s19 + $0x1a0] ss:$8 sps:$4 sm:$0xff]  }
 0x29b   : > { %4189 = vmatpush1.bf16.msra.mxu0 %v6608_v42  ;;  %v6697_v42 = vld [vmem:[%s7593_s19 + $0x194] ss:$8 sps:$4 sm:$0xff]  }
 0x29c   : > { %4190 = vmatprep.subr.bf16.mxu0 %v6613_v48  ;;  %v6695_v48 = vld [vmem:[%s7593_s19 + $0x190] ss:$8 sps:$4 sm:$0xff]  }
 0x29d   : > { %3351 = vmatmul.mubr.bf16.gmra.mxu0 %v8074_v9  ;;  %v6620_v9 = vld [vmem:[%s7593_s19 + $0x20] ss:$8 sps:$4 sm:$0xff]  }
 0x29e   : > { %3464 = vmatmul.mubr.bf16.gmra.mxu1 %v8077_v10  ;;  %3360 = vmatprep.mubr.bf16.mxu0 %v8084_v15  ;;  %v6625_v10 = vld [vmem:[%s7593_s19 + $0x14] ss:$8 sps:$4 sm:$0xff]  }
 0x29f   : > { %3473 = vmatprep.mubr.bf16.mxu1 %v8087_v16  ;;  %4191 = vmatpush1.bf16.msra.mxu0 %v6611_v50  ;;  %v6655_v15 = vld [vmem:[%s7593_s19 + $0x174] ss:$8 sps:$4 sm:$0xff]   ;;  %v6653_v16 = vld [vmem:[%s7593_s19 + $0x170] ss:$8 sps:$4 sm:$0xff]   ;;  %v6700_v50 = vld [vmem:[%s7593_s19 + $0x184] ss:$8 sps:$4 sm:$0xff]  }
 0x2a0   : > { %4192 = vmatprep.subr.bf16.mxu0 %v6616_v57  ;;  %4299 = vmatprep.subr.bf16.mxu1 %v6655_v15  ;;  %v6698_v57 = vld [vmem:[%s7593_s19 + $0x180] ss:$8 sps:$4 sm:$0xff]  }
 0x2a1   : > { %4300 = vmatpush1.bf16.msra.mxu1 %v6653_v16 }
 0x2a2   : > { %4301 = vmatprep.subr.bf16.mxu1 %v6658_v61 }
 0x2a3   : > { %4193 = vmatpush1.bf16.msra.mxu0 %v6614_v52  ;;  %v3542_v52 = vsub.s32 1, %v8318_v35 }
 0x2a4   : > { %4194 = vmatprep.subr.bf16.mxu0 %v6619_v62  ;;  %v3538_v62 = vsub.s32 0, %v8318_v35 }
 0x2a5   : > { %3361 = vmatmul.mubr.bf16.gmra.mxu0 %v8098_v21  ;;  %v6628_v21 = vld [vmem:[%s7593_s19 + $0x4] ss:$8 sps:$4 sm:$0xff]   ;;  %v8347_v15 = vrot.slane %v8324_v36, %v3542_v52 }
 0x2a6   : > { %3474 = vmatmul.mubr.bf16.gmra.mxu1 %v8101_v22  ;;  %3370 = vmatprep.mubr.bf16.mxu0 %v8108_v27  ;;  %v6656_v22 = vld [vmem:[%s7593_s19 + $0x160] ss:$8 sps:$4 sm:$0xff]  }
 0x2a7   : > { %3483 = vmatprep.mubr.bf16.mxu1 %v8111_v28  ;;  %4195 = vmatpush1.bf16.msra.mxu0 %v6617_v3  ;;  %v6626_v27 = vld [vmem:[%s7593_s19] ss:$8 sps:$4 sm:$0xff]   ;;  %v6631_v28 = vld [vmem:[%s7593_s19 + $0xf4] ss:$8 sps:$4 sm:$0xff]  }
 0x2a8   : > { %4196 = vmatprep.subr.bf16.mxu0 %v6622_v4  ;;  %4302 = vmatpush1.bf16.msra.mxu1 %v6656_v22 }
 0x2a9   : > { %4303 = vmatprep.subr.bf16.mxu1 %v6661_v45  ;;  %v8354_v45 = vrot.slane %v8333_v49, %v3542_v52 }
 0x2ab   : > { %4197 = vmatpush1.bf16.msra.mxu0 %v6620_v9 }
 0x2ac   : > { %4198 = vmatprep.subr.bf16.mxu0 %v6625_v10  ;;  %4304 = vmatpush1.bf16.msra.mxu1 %v6659_v43 }
 0x2ad   : > { %3371 = vmatmul.mubr.bf16.gmra.mxu0 %v8122_v33  ;;  %v6634_v33 = vld [vmem:[%s7593_s19 + $0xe4] ss:$8 sps:$4 sm:$0xff]   ;;  %4305 = vmatprep.subr.bf16.mxu1 %v6664_v63  ;;  %v8358_v63 = vrot.slane %v8333_v49, %v3538_v62 }
 0x2ae   : > { %3484 = vmatmul.mubr.bf16.gmra.mxu1 %v8125_v34  ;;  %3380 = vmatprep.mubr.bf16.mxu0 %v8132_v39  ;;  %v6662_v34 = vld [vmem:[%s7593_s19 + $0x140] ss:$8 sps:$4 sm:$0xff]   ;;  %v6667_v39 = vld [vmem:[%s7593_s19 + $0x134] ss:$8 sps:$4 sm:$0xff]  }
 0x2af   : > { %3493 = vmatprep.mubr.bf16.mxu1 %v8135_v40  ;;  %4199 = vmatpush1.bf16.msra.mxu0 %v6623_v58  ;;  %v6632_v40 = vld [vmem:[%s7593_s19 + $0xe0] ss:$8 sps:$4 sm:$0xff]   ;;  %v8350_v58 = vrot.slane %v8324_v36, %v3538_v62 }
 0x2b0   : > { %4200 = vmatprep.subr.bf16.mxu0 %v6628_v21  ;;  %4306 = vmatpush1.bf16.msra.mxu1 %v6662_v34 }
 0x2b1   : > { %4307 = vmatprep.subr.bf16.mxu1 %v6667_v39 }
 0x2b3   : > { %4201 = vmatpush1.bf16.msra.mxu0 %v6626_v27 }
 0x2b4   : > { %4202 = vmatprep.subr.bf16.mxu0 %v6631_v28  ;;  %4308 = vmatpush1.bf16.msra.mxu1 %v6665_v0 }
 0x2b5   : > { %3381 = vmatmul.mubr.bf16.gmra.mxu0 %v8146_v55  ;;  %v6635_v55 = vld [vmem:[%s7593_s19 + $0xd0] ss:$8 sps:$4 sm:$0xff]   ;;  %4309 = vmatprep.subr.bf16.mxu1 %v6670_v2 }
 0x2b6   : > { %3494 = vmatmul.mubr.bf16.gmra.mxu1 %v8149_v56  ;;  %3390 = vmatprep.mubr.bf16.mxu0 %v8156_v59  ;;  %v6668_v56 = vld [vmem:[%s7593_s19 + $0x120] ss:$8 sps:$4 sm:$0xff]   ;;  %v6640_v59 = vld [vmem:[%s7593_s19 + $0xc4] ss:$8 sps:$4 sm:$0xff]  }
 0x2b7   : > { %3503 = vmatprep.mubr.bf16.mxu1 %v8159_v60  ;;  %4203 = vmatpush2.bf16.msra.mxu0 %v6629_v44  ;;  %v6673_v60 = vld [vmem:[%s7593_s19 + $0x114] ss:$8 sps:$4 sm:$0xff]  }
 0x2b8   : > { %4204 = vmatprep.subr.bf16.mxu0 %v6634_v33  ;;  %4310 = vmatpush1.bf16.msra.mxu1 %v6668_v56 }
 0x2b9   : > { %4311 = vmatprep.subr.bf16.mxu1 %v6673_v60 }
 0x2bb   : > { %4205 = vmatpush2.bf16.msra.mxu0 %v6632_v40 }
 0x2bc   : > { %4206 = vmatprep.subr.bf16.mxu0 %v6637_v1  ;;  %4312 = vmatpush1.bf16.msra.mxu1 %v6671_v8 }
 0x2bd   : > { %3391 = vmatmul.mubr.bf16.gmra.mxu0 %v8170_v46  ;;  %v6641_v46 = vld [vmem:[%s7593_s19 + $0xb0] ss:$8 sps:$4 sm:$0xff]   ;;  %4313 = vmatprep.subr.bf16.mxu1 %v6676_v12 }
 0x2be   : > { %3504 = vmatmul.mubr.bf16.gmra.mxu1 %v8173_v51  ;;  %3400 = vmatprep.mubr.bf16.mxu0 %v8180_v5  ;;  %v6674_v51 = vld [vmem:[%s7593_s19 + $0x100] ss:$8 sps:$4 sm:$0xff]   ;;  %v6646_v5 = vld [vmem:[%s7593_s19 + $0xa4] ss:$8 sps:$4 sm:$0xff]  }
 0x2bf   : > { %3513 = vmatprep.mubr.bf16.mxu1 %v8183_v6  ;;  %4207 = vmatpush2.bf16.msra.mxu0 %v6635_v55  ;;  %v6679_v6 = vld [vmem:[%s7593_s19 + $0x1f4] ss:$8 sps:$4 sm:$0xff]  }
 0x2c0   : > { %4208 = vmatprep.subr.bf16.mxu0 %v6640_v59  ;;  %4314 = vmatpush1.bf16.msra.mxu1 %v6674_v51 }
 0x2c1   : > { %4315 = vmatprep.subr.bf16.mxu1 %v6679_v6 }
 0x2c3   : > { %4209 = vmatpush2.bf16.msra.mxu0 %v6638_v7 }
 0x2c4   : > { %4210 = vmatprep.subr.bf16.mxu0 %v6643_v11  ;;  %4316 = vmatpush2.bf16.msra.mxu1 %v6677_v18 }
 0x2c5   : > { %3401 = vmatmul.mubr.bf16.gmra.mxu0 %v8194_v13  ;;  %v6682_v13 = vld [vmem:[%s7593_s19 + $0x1e4] ss:$8 sps:$4 sm:$0xff]  }
 0x2c6   : > { %3514 = vmatmul.mubr.bf16.gmra.mxu1 %v8197_v14  ;;  %3410 = vmatprep.mubr.bf16.mxu0 %v8204_v23  ;;  %v6680_v14 = vld [vmem:[%s7593_s19 + $0x1e0] ss:$8 sps:$4 sm:$0xff]   ;;  %v6652_v23 = vld [vmem:[%s7593_s19 + $0x84] ss:$8 sps:$4 sm:$0xff]  }
 0x2c7   : > { %3523 = vmatprep.mubr.bf16.mxu1 %v8207_v24  ;;  %4211 = vmatpush2.bf16.msra.mxu0 %v6641_v46  ;;  %v6685_v24 = vld [vmem:[%s7593_s19 + $0x1d4] ss:$8 sps:$4 sm:$0xff]  }
 0x2c8   : > { %4212 = vmatprep.subr.bf16.mxu0 %v6646_v5  ;;  %4317 = vmatprep.subr.bf16.mxu1 %v6682_v13 }
 0x2c9   : > { %4318 = vmatpush2.bf16.msra.mxu1 %v6680_v14 }
 0x2ca   : > { %4319 = vmatprep.subr.bf16.mxu1 %v6685_v24 }
 0x2cb   : > { %4213 = vmatpush2.bf16.msra.mxu0 %v6644_v17 }
 0x2cc   : > { %4214 = vmatprep.subr.bf16.mxu0 %v6649_v19 }
 0x2cd   : > { %3411 = vmatmul.mubr.bf16.gmra.mxu0 %v8218_v31  ;;  %4320 = vmatpush2.bf16.msra.mxu1 %v6683_v29  ;;  %v6686_v31 = vld [vmem:[%s7593_s19 + $0x1c0] ss:$8 sps:$4 sm:$0xff]   ;;  %s8753_s19 = scalar_lea.sflag [#allocation5], %s582_s25 }
 0x2ce   : > { %3524 = vmatmul.mubr.bf16.gmra.mxu1 %v8221_v32  ;;  %4321 = vmatprep.subr.bf16.mxu1 %v6688_v30  ;;  %v3546_v32 = vsub.s32 2, %v8318_v35 }
 0x2cf   : > { %4215 = vmatpush2.bf16.msra.mxu0 %v6647_v20 }
 0x2d0   : > { %4216 = vmatprep.subr.bf16.mxu0 %v6652_v23  ;;  %v8328_v38 = vrot.slane %v8324_v36, %v3546_v32  ;;  %v8336_v53 = vrot.slane %v8333_v49, %v3546_v32 }
 0x2d1   : > { %4322 = vmatpush2.bf16.msra.mxu1 %v6686_v31 }
 0x2d2   : > { %4323 = vmatprep.subr.bf16.mxu1 %v6691_v37 }
 0x2d3   : > { %4217 = vmatpush2.bf16.msra.mxu0 %v6650_v26 }
 0x2d5   : > { %4324 = vmatpush2.bf16.msra.mxu1 %v6689_v47 }
 0x2d6   : > { %4325 = vmatprep.subr.bf16.mxu1 %v6694_v54 }
 0x2d9   : > { %4326 = vmatpush2.bf16.msra.mxu1 %v6692_v41 }
 0x2da   : > { %4327 = vmatprep.subr.bf16.mxu1 %v6697_v42 }
 0x2dd   : > { %4328 = vmatpush2.bf16.msra.mxu1 %v6695_v48 }
 0x2de   : > { %4329 = vmatprep.subr.bf16.mxu1 %v6700_v50 }
 0x2e1   : > { %4330 = vmatpush2.bf16.msra.mxu1 %v6698_v57 }
 0x315   : > { %v3116_v3 = vpop.f32.mrf.mxu0 }
 0x316   : > { %v3229_v4 = vpop.f32.mrf.mxu1 }
 0x317   : > { %v3118_v9 = vpop.f32.mrf.mxu0  ;;  %v3230_v16 = vadd.f32 %v3229_v4, %v3116_v3 }
 0x318   : > { %v3231_v10 = vpop.f32.mrf.mxu1 }
 0x319   : > { %v3232_v21 = vadd.f32 %v3231_v10, %v3118_v9  ;;  %v3120_v61 = vpop.f32.mrf.mxu0  ;;  %v3556_v33 = vmul.f32 %v8350_v58, %v3230_v16 }
 0x31a   : > { %v3233_v22 = vpop.f32.mrf.mxu1 }
 0x31b   : > { %v3234_v27 = vadd.f32 %v3233_v22, %v3120_v61  ;;  %v3557_v28 = vmul.f32 %v8347_v15, %v3232_v21  ;;  %v3122_v43 = vpop.f32.mrf.mxu0  ;;  %v3642_v60 = vadd.f32 %v8358_v63, %v3556_v33 }
 0x31c   : > { %v3235_v44 = vpop.f32.mrf.mxu1 }
 0x31d   : > { %v3560_v34 = vmul.f32 %v8350_v58, %v3234_v27  ;;  %v3236_v39 = vadd.f32 %v3235_v44, %v3122_v43  ;;  %v3126_v40 = vpop.f32.mrf.mxu0  ;;  %v3643_v55 = vadd.f32 %v8354_v45, %v3557_v28  ;;  %v3706_v20 = vmax.f32 %v3642_v60, 0.0 }
 0x31e   : > { %v3239_v0 = vpop.f32.mrf.mxu1 }
 0x31f   : > { %v3646_v1 = vadd.f32 %v8358_v63, %v3560_v34  ;;  %v3561_v2 = vmul.f32 %v8347_v15, %v3236_v39  ;;  %v3128_v56 = vpop.f32.mrf.mxu0  ;;  %v3240_v8 = vadd.f32 %v3239_v0, %v3126_v40  ;;  %v3707_v6 = vmax.f32 %v3643_v55, 0.0 }
 0x320   : > { %v3241_v59 = vpop.f32.mrf.mxu1 }
 0x321   : > { %v3647_v7 = vadd.f32 %v8354_v45, %v3561_v2  ;;  %v3242_v11 = vadd.f32 %v3241_v59, %v3128_v56  ;;  %v3130_v12 = vpop.f32.mrf.mxu0  ;;  %v3710_v51 = vmax.f32 %v3646_v1, 0.0  ;;  %v3564_v14 = vmul.f32 %v8350_v58, %v3240_v8 }
 0x322   : > { %v3243_v46 = vpop.f32.mrf.mxu1 }
 0x323   : > { %v3244_v5 = vadd.f32 %v3243_v46, %v3130_v12  ;;  %v3565_v17 = vmul.f32 %v8347_v15, %v3242_v11  ;;  %v3132_v18 = vpop.f32.mrf.mxu0  ;;  %v3711_v13 = vmax.f32 %v3647_v7, 0.0  ;;  %v3770_v30 = vpack.c.bf16 %v3710_v51, %v3706_v20 }
 0x324   : > { %v3245_v19 = vpop.f32.mrf.mxu1  ;;  %v3650_v41 = vadd.f32 %v8358_v63, %v3564_v14 }
 0x325   : > { %v3568_v23 = vmul.f32 %v8350_v58, %v3244_v5  ;;  %v3246_v24 = vadd.f32 %v3245_v19, %v3132_v18  ;;  %v3136_v25 = vpop.f32.mrf.mxu0  ;;  %v3771_v29 = vpack.c.bf16 %v3711_v13, %v3707_v6  ;;  %v3651_v37 = vadd.f32 %v8354_v45, %v3565_v17 }
 0x326   : > { %v3249_v26 = vpop.f32.mrf.mxu1  ;;  %v3714_v61 = vmax.f32 %v3650_v41, 0.0 }
 0x327   : > { %v3654_v31 = vadd.f32 %v8358_v63, %v3568_v23  ;;  %v3569_v32 = vmul.f32 %v8347_v15, %v3246_v24  ;;  %4218 = vmatprep.mubr.bf16.mxu0 %v3771_v29  ;;  %v3138_v47 = vpop.f32.mrf.mxu0  ;;  %v3250_v48 = vadd.f32 %v3249_v26, %v3136_v25  ;;  %v3715_v9 = vmax.f32 %v3651_v37, 0.0 }
 0x328   : > { %v3251_v54 = vpop.f32.mrf.mxu1  ;;  %4219 = vmatmul.mubr.bf16.vlgmr.msra.gmra.mxu0 %v3770_v30 }
 0x329   : > { %v3655_v42 = vadd.f32 %v8354_v45, %v3569_v32  ;;  %v3252_v50 = vadd.f32 %v3251_v54, %v3138_v47  ;;  %v3140_v57 = vpop.f32.mrf.mxu0  ;;  %v3718_v62 = vmax.f32 %v3654_v31, 0.0  ;;  %v3572_v22 = vmul.f32 %v8350_v58, %v3250_v48 }
 0x32a   : > { %v3253_v52 = vpop.f32.mrf.mxu1 }
 0x32b   : > { %v3254_v3 = vadd.f32 %v3253_v52, %v3140_v57  ;;  %v3719_v4 = vmax.f32 %v3655_v42, 0.0  ;;  %v3573_v10 = vmul.f32 %v8347_v15, %v3252_v50  ;;  %v3142_v16 = vpop.f32.mrf.mxu0  ;;  %v3774_v40 = vpack.c.bf16 %v3718_v62, %v3714_v61 }
 0x32c   : > { %v3255_v21 = vpop.f32.mrf.mxu1  ;;  %v3658_v55 = vadd.f32 %v8358_v63, %v3572_v22 }
 0x32d   : > { %v3576_v27 = vmul.f32 %v8350_v58, %v3254_v3  ;;  %v3256_v28 = vadd.f32 %v3255_v21, %v3142_v16  ;;  %v3146_v43 = vpop.f32.mrf.mxu0  ;;  %v3775_v33 = vpack.c.bf16 %v3719_v4, %v3715_v9  ;;  %v3659_v0 = vadd.f32 %v8354_v45, %v3573_v10 }
 0x32e   : > { %v3259_v44 = vpop.f32.mrf.mxu1  ;;  %v3722_v18 = vmax.f32 %v3658_v55, 0.0 }
 0x32f   : > { %v3662_v34 = vadd.f32 %v8358_v63, %v3576_v27  ;;  %v3577_v39 = vmul.f32 %v8347_v15, %v3256_v28  ;;  %4228 = vmatprep.mubr.bf16.mxu0 %v3775_v33  ;;  %v3148_v1 = vpop.f32.mrf.mxu0  ;;  %v3260_v59 = vadd.f32 %v3259_v44, %v3146_v43  ;;  %v3723_v51 = vmax.f32 %v3659_v0, 0.0 }
 0x330   : > { %v3261_v2 = vpop.f32.mrf.mxu1  ;;  %4229 = vmatmul.mubr.bf16.gmra.mxu0 %v3774_v40 }
 0x331   : > { %v3663_v56 = vadd.f32 %v8354_v45, %v3577_v39  ;;  %v3262_v60 = vadd.f32 %v3261_v2, %v3148_v1  ;;  %v3150_v7 = vpop.f32.mrf.mxu0  ;;  %v3726_v11 = vmax.f32 %v3662_v34, 0.0  ;;  %v3580_v19 = vmul.f32 %v8350_v58, %v3260_v59 }
 0x332   : > { %v3263_v8 = vpop.f32.mrf.mxu1 }
 0x333   : > { %v3264_v12 = vadd.f32 %v3263_v8, %v3150_v7  ;;  %v3727_v46 = vmax.f32 %v3663_v56, 0.0  ;;  %v3581_v5 = vmul.f32 %v8347_v15, %v3262_v60  ;;  %v3152_v6 = vpop.f32.mrf.mxu0  ;;  %v3778_v29 = vpack.c.bf16 %v3726_v11, %v3722_v18 }
 0x334   : > { %v3265_v17 = vpop.f32.mrf.mxu1  ;;  %v3666_v37 = vadd.f32 %v8358_v63, %v3580_v19 }
 0x335   : > { %v3584_v13 = vmul.f32 %v8350_v58, %v3264_v12  ;;  %v3266_v20 = vadd.f32 %v3265_v17, %v3152_v6  ;;  %v3156_v14 = vpop.f32.mrf.mxu0  ;;  %v3779_v24 = vpack.c.bf16 %v3727_v46, %v3723_v51  ;;  %v3667_v30 = vadd.f32 %v8354_v45, %v3581_v5 }
 0x336   : > { %v3269_v23 = vpop.f32.mrf.mxu1  ;;  %v3730_v10 = vmax.f32 %v3666_v37, 0.0 }
 0x337   : > { %v3670_v25 = vadd.f32 %v8358_v63, %v3584_v13  ;;  %v3585_v26 = vmul.f32 %v8347_v15, %v3266_v20  ;;  %4238 = vmatprep.mubr.bf16.mxu0 %v3779_v24  ;;  %v3158_v31 = vpop.f32.mrf.mxu0  ;;  %v3270_v54 = vadd.f32 %v3269_v23, %v3156_v14  ;;  %v3731_v62 = vmax.f32 %v3667_v30, 0.0 }
 0x338   : > { %v3271_v32 = vpop.f32.mrf.mxu1  ;;  %4239 = vmatmul.mubr.bf16.gmra.mxu0 %v3778_v29 }
 0x339   : > { %v3671_v47 = vadd.f32 %v8354_v45, %v3585_v26  ;;  %v3272_v41 = vadd.f32 %v3271_v32, %v3158_v31  ;;  %v3160_v42 = vpop.f32.mrf.mxu0  ;;  %v3734_v50 = vmax.f32 %v3670_v25, 0.0  ;;  %v3588_v16 = vmul.f32 %v8350_v58, %v3270_v54 }
 0x33a   : > { %v3273_v48 = vpop.f32.mrf.mxu1 }
 0x33b   : > { %v3274_v57 = vadd.f32 %v3273_v48, %v3160_v42  ;;  %v3735_v52 = vmax.f32 %v3671_v47, 0.0  ;;  %v3589_v3 = vmul.f32 %v8347_v15, %v3272_v41  ;;  %v3162_v4 = vpop.f32.mrf.mxu0  ;;  %v3782_v33 = vpack.c.bf16 %v3734_v50, %v3730_v10 }
 0x33c   : > { %v3275_v9 = vpop.f32.mrf.mxu1  ;;  %v3674_v0 = vadd.f32 %v8358_v63, %v3588_v16 }
 0x33d   : > { %v3592_v21 = vmul.f32 %v8350_v58, %v3274_v57  ;;  %v3276_v61 = vadd.f32 %v3275_v9, %v3162_v4  ;;  %v3166_v22 = vpop.f32.mrf.mxu0  ;;  %v3783_v28 = vpack.c.bf16 %v3735_v52, %v3731_v62  ;;  %v3675_v34 = vadd.f32 %v8354_v45, %v3589_v3 }
 0x33e   : > { %v3279_v27 = vpop.f32.mrf.mxu1  ;;  %v3738_v5 = vmax.f32 %v3674_v0, 0.0 }
 0x33f   : > { %v3678_v43 = vadd.f32 %v8358_v63, %v3592_v21  ;;  %v3593_v44 = vmul.f32 %v8347_v15, %v3276_v61  ;;  %4248 = vmatprep.mubr.bf16.mxu0 %v3783_v28  ;;  %v3168_v39 = vpop.f32.mrf.mxu0  ;;  %v3280_v2 = vadd.f32 %v3279_v27, %v3166_v22  ;;  %v3739_v11 = vmax.f32 %v3675_v34, 0.0 }
 0x340   : > { %v3281_v40 = vpop.f32.mrf.mxu1  ;;  %4249 = vmatmul.mubr.bf16.gmra.mxu0 %v3782_v33 }
 0x341   : > { %v3679_v1 = vadd.f32 %v8354_v45, %v3593_v44  ;;  %v3282_v55 = vadd.f32 %v3281_v40, %v3168_v39  ;;  %v3170_v56 = vpop.f32.mrf.mxu0  ;;  %v3742_v60 = vmax.f32 %v3678_v43, 0.0  ;;  %v3596_v6 = vmul.f32 %v8350_v58, %v3280_v2 }
 0x342   : > { %v3283_v59 = vpop.f32.mrf.mxu1 }
 0x343   : > { %v3743_v7 = vmax.f32 %v3679_v1, 0.0  ;;  %v3284_v8 = vadd.f32 %v3283_v59, %v3170_v56  ;;  %v3597_v12 = vmul.f32 %v8347_v15, %v3282_v55  ;;  %v3172_v46 = vpop.f32.mrf.mxu0  ;;  %v3786_v24 = vpack.c.bf16 %v3742_v60, %v3738_v5 }
 0x344   : > { %v3285_v51 = vpop.f32.mrf.mxu1  ;;  %v3682_v30 = vadd.f32 %v8358_v63, %v3596_v6  ;;  %v3550_v55 = vsub.s32 3, %v8318_v35 }
 0x345   : > { %v3600_v17 = vmul.f32 %v8350_v58, %v3284_v8  ;;  %v3286_v18 = vadd.f32 %v3285_v51, %v3172_v46  ;;  %v3176_v19 = vpop.f32.mrf.mxu0  ;;  %v3787_v20 = vpack.c.bf16 %v3743_v7, %v3739_v11  ;;  %v3683_v25 = vadd.f32 %v8354_v45, %v3597_v12 }
 0x346   : > { %v3289_v13 = vpop.f32.mrf.mxu1  ;;  %v3746_v3 = vmax.f32 %v3682_v30, 0.0 }
 0x347   : > { %v3686_v14 = vadd.f32 %v8358_v63, %v3600_v17  ;;  %v3601_v23 = vmul.f32 %v8347_v15, %v3286_v18  ;;  %4258 = vmatprep.mubr.bf16.mxu0 %v3787_v20  ;;  %v3178_v26 = vpop.f32.mrf.mxu0  ;;  %v3290_v32 = vadd.f32 %v3289_v13, %v3176_v19  ;;  %v3747_v50 = vmax.f32 %v3683_v25, 0.0 }
 0x348   : > { %v3291_v29 = vpop.f32.mrf.mxu1  ;;  %4259 = vmatmul.mubr.bf16.gmra.mxu0 %v3786_v24  ;;  %v8419_v13 = vrot.slane %v8324_v36, %v3550_v55 }
 0x349   : > { %v3687_v31 = vadd.f32 %v8354_v45, %v3601_v23  ;;  %v3292_v37 = vadd.f32 %v3291_v29, %v3178_v26  ;;  %v3180_v47 = vpop.f32.mrf.mxu0  ;;  %v3750_v41 = vmax.f32 %v3686_v14, 0.0  ;;  %v3604_v4 = vmul.f32 %v8350_v58, %v3290_v32 }
 0x34a   : > { %v3293_v54 = vpop.f32.mrf.mxu1  ;;  %v8428_v32 = vrot.slane %v8333_v49, %v3550_v55 }
 0x34b   : > { %v3751_v42 = vmax.f32 %v3687_v31, 0.0  ;;  %v3294_v48 = vadd.f32 %v3293_v54, %v3180_v47  ;;  %v3605_v57 = vmul.f32 %v8347_v15, %v3292_v37  ;;  %v3182_v52 = vpop.f32.mrf.mxu0  ;;  %v3790_v28 = vpack.c.bf16 %v3750_v41, %v3746_v3 }
 0x34c   : > { %v3295_v62 = vpop.f32.mrf.mxu1  ;;  %v3690_v39 = vadd.f32 %v8358_v63, %v3604_v4 }
 0x34d   : > { %v3608_v9 = vmul.f32 %v8350_v58, %v3294_v48  ;;  %v3296_v10 = vadd.f32 %v3295_v62, %v3182_v52  ;;  %v3186_v16 = vpop.f32.mrf.mxu0  ;;  %v3791_v61 = vpack.c.bf16 %v3751_v42, %v3747_v50  ;;  %v3691_v43 = vadd.f32 %v8354_v45, %v3605_v57 }
 0x34e   : > { %v3299_v21 = vpop.f32.mrf.mxu1  ;;  %v3754_v51 = vmax.f32 %v3690_v39, 0.0 }
 0x34f   : > { %v3694_v22 = vadd.f32 %v8358_v63, %v3608_v9  ;;  %v3609_v27 = vmul.f32 %v8347_v15, %v3296_v10  ;;  %v3300_v44 = vadd.f32 %v3299_v21, %v3186_v16  ;;  %4268 = vmatprep.mubr.bf16.mxu0 %v3791_v61  ;;  %v3188_v33 = vpop.f32.mrf.mxu0  ;;  %v3755_v7 = vmax.f32 %v3691_v43, 0.0 }
 0x350   : > { %v3301_v34 = vpop.f32.mrf.mxu1  ;;  %4269 = vmatmul.mubr.bf16.gmra.mxu0 %v3790_v28 }
 0x351   : > { %v3695_v40 = vadd.f32 %v8354_v45, %v3609_v27  ;;  %v3302_v0 = vadd.f32 %v3301_v34, %v3188_v33  ;;  %v3190_v1 = vpop.f32.mrf.mxu0  ;;  %v3758_v56 = vmax.f32 %v3694_v22, 0.0  ;;  %v3612_v8 = vmul.f32 %v8350_v58, %v3300_v44 }
 0x352   : > { %v3303_v2 = vpop.f32.mrf.mxu1 }
 0x353   : > { %v3759_v59 = vmax.f32 %v3695_v40, 0.0  ;;  %v3304_v60 = vadd.f32 %v3303_v2, %v3190_v1  ;;  %v3613_v11 = vmul.f32 %v8347_v15, %v3302_v0  ;;  %v3192_v12 = vpop.f32.mrf.mxu0  ;;  %v3794_v23 = vpack.c.bf16 %v3758_v56, %v3754_v51 }
 0x354   : > { %v3305_v46 = vpop.f32.mrf.mxu1  ;;  %v3698_v24 = vadd.f32 %v8358_v63, %v3612_v8 }
 0x355   : > { %v3616_v5 = vmul.f32 %v8350_v58, %v3304_v60  ;;  %v3306_v6 = vadd.f32 %v3305_v46, %v3192_v12  ;;  %v3342_v17 = vpop.f32.mrf.mxu0  ;;  %v3795_v19 = vpack.c.bf16 %v3759_v59, %v3755_v7  ;;  %v3699_v25 = vadd.f32 %v8354_v45, %v3613_v11 }
 0x356   : > { %v3455_v18 = vpop.f32.mrf.mxu1  ;;  %v3762_v42 = vmax.f32 %v3698_v24, 0.0 }
 0x357   : > { %v3702_v35 = vadd.f32 %v8358_v63, %v3616_v5  ;;  %v3617_v20 = vmul.f32 %v8347_v15, %v3306_v6  ;;  %v3456_v14 = vadd.f32 %v3455_v18, %v3342_v17  ;;  %4278 = vmatprep.mubr.bf16.mxu0 %v3795_v19  ;;  %v3344_v26 = vpop.f32.mrf.mxu0  ;;  %v3763_v48 = vmax.f32 %v3699_v25, 0.0 }
 0x358   : > { %v3457_v58 = vpop.f32.mrf.mxu1  ;;  %4279 = vmatmul.mubr.bf16.gmra.mxu0 %v3794_v23 }
 0x359   : > { %v3703_v29 = vadd.f32 %v8354_v45, %v3617_v20  ;;  %v3558_v30 = vmul.f32 %v8328_v38, %v3456_v14  ;;  %v3458_v31 = vadd.f32 %v3457_v58, %v3344_v26  ;;  %v3766_v36 = vmax.f32 %v3702_v35, 0.0  ;;  %v3346_v15 = vpop.f32.mrf.mxu0 }
 0x35a   : > { %v3459_v37 = vpop.f32.mrf.mxu1 }
 0x35b   : > { %v3767_v47 = vmax.f32 %v3703_v29, 0.0  ;;  %v3644_v63 = vadd.f32 %v8336_v53, %v3558_v30  ;;  %v3559_v54 = vmul.f32 %v8419_v13, %v3458_v31  ;;  %v3460_v41 = vadd.f32 %v3459_v37, %v3346_v15  ;;  %v3348_v50 = vpop.f32.mrf.mxu0 }
 0x35c   : > { %v3461_v45 = vpop.f32.mrf.mxu1  ;;  %v3798_v49 = vpack.c.bf16 %v3766_v36, %v3762_v42 }
 0x35d   : > { %v3562_v57 = vmul.f32 %v8328_v38, %v3460_v41  ;;  %v3462_v52 = vadd.f32 %v3461_v45, %v3348_v50  ;;  %v3352_v62 = vpop.f32.mrf.mxu0  ;;  %v3799_v4 = vpack.c.bf16 %v3767_v47, %v3763_v48  ;;  %v3645_v9 = vadd.f32 %v8428_v32, %v3559_v54 }
 0x35e   : > { %v3465_v3 = vpop.f32.mrf.mxu1  ;;  %v3708_v61 = vmax.f32 %v3644_v63, 0.0 }
 0x35f   : > { %v3648_v10 = vadd.f32 %v8336_v53, %v3562_v57  ;;  %v3563_v16 = vmul.f32 %v8419_v13, %v3462_v52  ;;  %v3466_v21 = vadd.f32 %v3465_v3, %v3352_v62  ;;  %4288 = vmatprep.mubr.bf16.mxu0 %v3799_v4  ;;  %v3354_v22 = vpop.f32.mrf.mxu0  ;;  %v3709_v40 = vmax.f32 %v3645_v9, 0.0 }
 0x360   : > { %v3467_v27 = vpop.f32.mrf.mxu1  ;;  %4289 = vmatmul.mubr.bf16.gmra.mxu0 %v3798_v49 }
 0x361   : > { %v3712_v28 = vmax.f32 %v3648_v10, 0.0  ;;  %v3649_v43 = vadd.f32 %v8428_v32, %v3563_v16  ;;  %v3566_v44 = vmul.f32 %v8328_v38, %v3466_v21  ;;  %v3468_v33 = vadd.f32 %v3467_v27, %v3354_v22  ;;  %v3356_v34 = vpop.f32.mrf.mxu0 }
 0x362   : > { %v3469_v39 = vpop.f32.mrf.mxu1 }
 0x363   : > { %v3772_v0 = vpack.c.bf16 %v3712_v28, %v3708_v61  ;;  %v3713_v1 = vmax.f32 %v3649_v43, 0.0  ;;  %v3652_v2 = vadd.f32 %v8336_v53, %v3566_v44  ;;  %v3567_v55 = vmul.f32 %v8419_v13, %v3468_v33  ;;  %v3358_v59 = vpop.f32.mrf.mxu0 }
 0x364   : > { %v3470_v56 = vadd.f32 %v3469_v39, %v3356_v34  ;;  %v3471_v60 = vpop.f32.mrf.mxu1 }
 0x365   : > { %v3472_v7 = vadd.f32 %v3471_v60, %v3358_v59  ;;  %v3773_v8 = vpack.c.bf16 %v3713_v1, %v3709_v40  ;;  %v3362_v12 = vpop.f32.mrf.mxu0  ;;  %v3653_v6 = vadd.f32 %v8428_v32, %v3567_v55  ;;  %v3716_v23 = vmax.f32 %v3652_v2, 0.0 }
 0x366   : > { %v3570_v11 = vmul.f32 %v8328_v38, %v3470_v56  ;;  %v3475_v46 = vpop.f32.mrf.mxu1 }
 0x367   : > { %v3571_v51 = vmul.f32 %v8419_v13, %v3472_v7  ;;  %v3476_v5 = vadd.f32 %v3475_v46, %v3362_v12  ;;  %4331 = vmatprep.mubr.bf16.mxu1 %v3773_v8  ;;  %v3364_v18 = vpop.f32.mrf.mxu0  ;;  %v3717_v31 = vmax.f32 %v3653_v6, 0.0 }
 0x368   : > { %v3656_v17 = vadd.f32 %v8336_v53, %v3570_v11  ;;  %v3477_v19 = vpop.f32.mrf.mxu1  ;;  %4332 = vmatmul.mubr.bf16.vlgmr.msra.gmra.mxu1 %v3772_v0 }
 0x369   : > { %v3657_v35 = vadd.f32 %v8428_v32, %v3571_v51  ;;  %v3574_v20 = vmul.f32 %v8328_v38, %v3476_v5  ;;  %v3478_v14 = vadd.f32 %v3477_v19, %v3364_v18  ;;  %v3366_v25 = vpop.f32.mrf.mxu0 }
 0x36a   : > { %v3720_v24 = vmax.f32 %v3656_v17, 0.0  ;;  %v3479_v26 = vpop.f32.mrf.mxu1 }
 0x36b   : > { %v3721_v58 = vmax.f32 %v3657_v35, 0.0  ;;  %v3660_v29 = vadd.f32 %v8336_v53, %v3574_v20  ;;  %v3480_v30 = vadd.f32 %v3479_v26, %v3366_v25  ;;  %v3575_v36 = vmul.f32 %v8419_v13, %v3478_v14  ;;  %v3368_v15 = vpop.f32.mrf.mxu0 }
 0x36c   : > { %v3481_v37 = vpop.f32.mrf.mxu1  ;;  %v3776_v47 = vpack.c.bf16 %v3720_v24, %v3716_v23 }
 0x36d   : > { %v3578_v63 = vmul.f32 %v8328_v38, %v3480_v30  ;;  %v3482_v54 = vadd.f32 %v3481_v37, %v3368_v15  ;;  %v3372_v41 = vpop.f32.mrf.mxu0  ;;  %v3777_v48 = vpack.c.bf16 %v3721_v58, %v3717_v31  ;;  %v3661_v52 = vadd.f32 %v8428_v32, %v3575_v36 }
 0x36e   : > { %v3485_v42 = vpop.f32.mrf.mxu1  ;;  %v3724_v16 = vmax.f32 %v3660_v29, 0.0 }
 0x36f   : > { %v3664_v50 = vadd.f32 %v8336_v53, %v3578_v63  ;;  %v3579_v45 = vmul.f32 %v8419_v13, %v3482_v54  ;;  %v3486_v57 = vadd.f32 %v3485_v42, %v3372_v41  ;;  %4341 = vmatprep.mubr.bf16.mxu1 %v3777_v48  ;;  %v3374_v62 = vpop.f32.mrf.mxu0  ;;  %v3725_v43 = vmax.f32 %v3661_v52, 0.0 }
 0x370   : > { %v3487_v3 = vpop.f32.mrf.mxu1  ;;  %4342 = vmatmul.mubr.bf16.gmra.mxu1 %v3776_v47 }
 0x371   : > { %v3728_v4 = vmax.f32 %v3664_v50, 0.0  ;;  %v3665_v49 = vadd.f32 %v8428_v32, %v3579_v45  ;;  %v3582_v9 = vmul.f32 %v8328_v38, %v3486_v57  ;;  %v3488_v10 = vadd.f32 %v3487_v3, %v3374_v62  ;;  %v3376_v21 = vpop.f32.mrf.mxu0 }
 0x372   : > { %v3489_v61 = vpop.f32.mrf.mxu1 }
 0x373   : > { %v3729_v22 = vmax.f32 %v3665_v49, 0.0  ;;  %v3668_v27 = vadd.f32 %v8336_v53, %v3582_v9  ;;  %v3490_v28 = vadd.f32 %v3489_v61, %v3376_v21  ;;  %v3583_v44 = vmul.f32 %v8419_v13, %v3488_v10  ;;  %v3378_v33 = vpop.f32.mrf.mxu0 }
 0x374   : > { %v3491_v34 = vpop.f32.mrf.mxu1  ;;  %v3780_v39 = vpack.c.bf16 %v3728_v4, %v3724_v16 }
 0x375   : > { %v3586_v40 = vmul.f32 %v8328_v38, %v3490_v28  ;;  %v3492_v0 = vadd.f32 %v3491_v34, %v3378_v33  ;;  %v3382_v1 = vpop.f32.mrf.mxu0  ;;  %v3781_v55 = vpack.c.bf16 %v3729_v22, %v3725_v43  ;;  %v3669_v7 = vadd.f32 %v8428_v32, %v3583_v44 }
 0x376   : > { %v3495_v2 = vpop.f32.mrf.mxu1  ;;  %v3732_v6 = vmax.f32 %v3668_v27, 0.0 }
 0x377   : > { %v3672_v56 = vadd.f32 %v8336_v53, %v3586_v40  ;;  %v3587_v59 = vmul.f32 %v8419_v13, %v3492_v0  ;;  %v3496_v60 = vadd.f32 %v3495_v2, %v3382_v1  ;;  %4351 = vmatprep.mubr.bf16.mxu1 %v3781_v55  ;;  %v3384_v8 = vpop.f32.mrf.mxu0  ;;  %v3733_v14 = vmax.f32 %v3669_v7, 0.0 }
 0x378   : > { %v3497_v11 = vpop.f32.mrf.mxu1  ;;  %4352 = vmatmul.mubr.bf16.gmra.mxu1 %v3780_v39 }
 0x379   : > { %v3736_v12 = vmax.f32 %v3672_v56, 0.0  ;;  %v3673_v46 = vadd.f32 %v8428_v32, %v3587_v59  ;;  %v3590_v51 = vmul.f32 %v8328_v38, %v3496_v60  ;;  %v3498_v5 = vadd.f32 %v3497_v11, %v3384_v8  ;;  %v3386_v17 = vpop.f32.mrf.mxu0 }
 0x37a   : > { %v3499_v18 = vpop.f32.mrf.mxu1 }
 0x37b   : > { %v3737_v19 = vmax.f32 %v3673_v46, 0.0  ;;  %v3676_v35 = vadd.f32 %v8336_v53, %v3590_v51  ;;  %v3500_v20 = vadd.f32 %v3499_v18, %v3386_v17  ;;  %v3591_v23 = vmul.f32 %v8419_v13, %v3498_v5  ;;  %v3388_v24 = vpop.f32.mrf.mxu0 }
 0x37c   : > { %v3501_v25 = vpop.f32.mrf.mxu1  ;;  %v3784_v26 = vpack.c.bf16 %v3736_v12, %v3732_v6 }
 0x37d   : > { %v3594_v58 = vmul.f32 %v8328_v38, %v3500_v20  ;;  %v3502_v29 = vadd.f32 %v3501_v25, %v3388_v24  ;;  %v3392_v30 = vpop.f32.mrf.mxu0  ;;  %v3785_v36 = vpack.c.bf16 %v3737_v19, %v3733_v14  ;;  %v3677_v63 = vadd.f32 %v8428_v32, %v3591_v23 }
 0x37e   : > { %v3505_v31 = vpop.f32.mrf.mxu1  ;;  %v3740_v57 = vmax.f32 %v3676_v35, 0.0 }
 0x37f   : > { %v3680_v15 = vadd.f32 %v8336_v53, %v3594_v58  ;;  %v3595_v37 = vmul.f32 %v8419_v13, %v3502_v29  ;;  %v3506_v47 = vadd.f32 %v3505_v31, %v3392_v30  ;;  %4361 = vmatprep.mubr.bf16.mxu1 %v3785_v36  ;;  %v3394_v54 = vpop.f32.mrf.mxu0  ;;  %v3741_v9 = vmax.f32 %v3677_v63, 0.0 }
 0x380   : > { %v3507_v41 = vpop.f32.mrf.mxu1  ;;  %4362 = vmatmul.mubr.bf16.gmra.mxu1 %v3784_v26 }
 0x381   : > { %v3744_v42 = vmax.f32 %v3680_v15, 0.0  ;;  %v3681_v48 = vadd.f32 %v8428_v32, %v3595_v37  ;;  %v3598_v50 = vmul.f32 %v8328_v38, %v3506_v47  ;;  %v3508_v45 = vadd.f32 %v3507_v41, %v3394_v54  ;;  %v3396_v52 = vpop.f32.mrf.mxu0 }
 0x382   : > { %v3509_v62 = vpop.f32.mrf.mxu1 }
 0x383   : > { %v3745_v3 = vmax.f32 %v3681_v48, 0.0  ;;  %v3684_v4 = vadd.f32 %v8336_v53, %v3598_v50  ;;  %v3510_v49 = vadd.f32 %v3509_v62, %v3396_v52  ;;  %v3599_v10 = vmul.f32 %v8419_v13, %v3508_v45  ;;  %v3398_v16 = vpop.f32.mrf.mxu0 }
 0x384   : > { %v3511_v21 = vpop.f32.mrf.mxu1  ;;  %v3788_v61 = vpack.c.bf16 %v3744_v42, %v3740_v57 }
 0x385   : > { %v3602_v22 = vmul.f32 %v8328_v38, %v3510_v49  ;;  %v3512_v27 = vadd.f32 %v3511_v21, %v3398_v16  ;;  %v3402_v28 = vpop.f32.mrf.mxu0  ;;  %v3789_v44 = vpack.c.bf16 %v3745_v3, %v3741_v9  ;;  %v3685_v40 = vadd.f32 %v8428_v32, %v3599_v10 }
 0x386   : > { %v3515_v43 = vpop.f32.mrf.mxu1  ;;  %v3748_v60 = vmax.f32 %v3684_v4, 0.0 }
 0x387   : > { %v3688_v33 = vadd.f32 %v8336_v53, %v3602_v22  ;;  %v3603_v34 = vmul.f32 %v8419_v13, %v3512_v27  ;;  %v3516_v39 = vadd.f32 %v3515_v43, %v3402_v28  ;;  %4371 = vmatprep.mubr.bf16.mxu1 %v3789_v44  ;;  %v3404_v0 = vpop.f32.mrf.mxu0  ;;  %v3749_v51 = vmax.f32 %v3685_v40, 0.0  ;;  %v6709_v40 = vld [vmem:[#allocation2 + $0xc4] ss:$16 sps:$4 sm:$0xff]  }
 0x388   : > { %v3517_v1 = vpop.f32.mrf.mxu1  ;;  %4372 = vmatmul.mubr.bf16.gmra.mxu1 %v3788_v61 }
 0x389   : > { %v3752_v2 = vmax.f32 %v3688_v33, 0.0  ;;  %v3689_v55 = vadd.f32 %v8428_v32, %v3603_v34  ;;  %v3606_v56 = vmul.f32 %v8328_v38, %v3516_v39  ;;  %v3518_v59 = vadd.f32 %v3517_v1, %v3404_v0  ;;  %v3406_v7 = vpop.f32.mrf.mxu0  ;;  %v6701_v33 = vld [vmem:[#allocation2 + $0xe0] ss:$16 sps:$4 sm:$0xff]   ;;  %v6703_v34 = vld [vmem:[#allocation2 + $0xe4] ss:$16 sps:$4 sm:$0xff]  }
 0x38a   : > { %v3519_v8 = vpop.f32.mrf.mxu1  ;;  %v6704_v39 = vld [vmem:[#allocation2 + $0xe8] ss:$16 sps:$4 sm:$0xff]   ;;  %5020 = vmatprep.subr.bf16.mxu0 %v6703_v34 }
 0x38b   : > { %v3753_v11 = vmax.f32 %v3689_v55, 0.0  ;;  %v3692_v12 = vadd.f32 %v8336_v53, %v3606_v56  ;;  %v3520_v46 = vadd.f32 %v3519_v8, %v3406_v7  ;;  %v3607_v5 = vmul.f32 %v8419_v13, %v3518_v59  ;;  %v3408_v6 = vpop.f32.mrf.mxu0  ;;  %5021 = vmatpush1.bf16.msra.mxu0 %v6701_v33  ;;  %v6710_v1 = vld [vmem:[#allocation2 + $0xc8] ss:$16 sps:$4 sm:$0xff]   ;;  %v6718_v55 = vld [vmem:[#allocation2 + $0xac] ss:$16 sps:$4 sm:$0xff]  }
 0x38c   : > { %v3521_v17 = vpop.f32.mrf.mxu1  ;;  %v3792_v18 = vpack.c.bf16 %v3752_v2, %v3748_v60  ;;  %5022 = vmatprep.subr.bf16.mxu0 %v6709_v40  ;;  %v6715_v2 = vld [vmem:[#allocation2 + $0xa4] ss:$16 sps:$4 sm:$0xff]   ;;  %v6713_v59 = vld [vmem:[#allocation2 + $0xa0] ss:$16 sps:$4 sm:$0xff]   ;;  %v6716_v60 = vld [vmem:[#allocation2 + $0xa8] ss:$16 sps:$4 sm:$0xff]  }
 0x38d   : > { %v3610_v19 = vmul.f32 %v8328_v38, %v3520_v46  ;;  %v3522_v35 = vadd.f32 %v3521_v17, %v3408_v6  ;;  %v3412_v20 = vpop.f32.mrf.mxu0  ;;  %v3793_v23 = vpack.c.bf16 %v3753_v11, %v3749_v51  ;;  %v3693_v58 = vadd.f32 %v8428_v32, %v3607_v5  ;;  %v6721_v7 = vld [vmem:[#allocation2 + $0x84] ss:$16 sps:$4 sm:$0xff]   ;;  %v6724_v8 = vld [vmem:[#allocation2 + $0x8c] ss:$16 sps:$4 sm:$0xff]   ;;  %v6722_v46 = vld [vmem:[#allocation2 + $0x88] ss:$16 sps:$4 sm:$0xff]  }
 0x38e   : > { %v3525_v14 = vpop.f32.mrf.mxu1  ;;  %v3756_v47 = vmax.f32 %v3692_v12, 0.0  ;;  %v6719_v12 = vld [vmem:[#allocation2 + $0x80] ss:$16 sps:$4 sm:$0xff]   ;;  %v6727_v51 = vld [vmem:[#allocation2 + $0x64] ss:$16 sps:$4 sm:$0xff]  }
 0x38f   : > { %v3696_v24 = vadd.f32 %v8336_v53, %v3610_v19  ;;  %v3611_v25 = vmul.f32 %v8419_v13, %v3522_v35  ;;  %v3526_v26 = vadd.f32 %v3525_v14, %v3412_v20  ;;  %4381 = vmatprep.mubr.bf16.mxu1 %v3793_v23  ;;  %v3414_v29 = vpop.f32.mrf.mxu0  ;;  %v3757_v45 = vmax.f32 %v3693_v58, 0.0  ;;  %v6730_v5 = vld [vmem:[#allocation2 + $0x6c] ss:$16 sps:$4 sm:$0xff]   ;;  %v6725_v17 = vld [vmem:[#allocation2 + $0x60] ss:$16 sps:$4 sm:$0xff]  }
 0x390   : > { %v3527_v30 = vpop.f32.mrf.mxu1  ;;  %4382 = vmatmul.mubr.bf16.gmra.mxu1 %v3792_v18  ;;  %v6728_v18 = vld [vmem:[#allocation2 + $0x68] ss:$16 sps:$4 sm:$0xff]   ;;  %v6733_v19 = vld [vmem:[#allocation2 + $0x44] ss:$16 sps:$4 sm:$0xff]   ;;  %v6736_v35 = vld [vmem:[#allocation2 + $0x4c] ss:$16 sps:$4 sm:$0xff]  }
 0x391   : > { %v3760_v31 = vmax.f32 %v3696_v24, 0.0  ;;  %v3697_v36 = vadd.f32 %v8428_v32, %v3611_v25  ;;  %v3614_v15 = vmul.f32 %v8328_v38, %v3526_v26  ;;  %v3528_v37 = vadd.f32 %v3527_v30, %v3414_v29  ;;  %v3416_v63 = vpop.f32.mrf.mxu0  ;;  %v6731_v14 = vld [vmem:[#allocation2 + $0x40] ss:$16 sps:$4 sm:$0xff]   ;;  %v6734_v23 = vld [vmem:[#allocation2 + $0x48] ss:$16 sps:$4 sm:$0xff]  }
 0x392   : > { %v3529_v54 = vpop.f32.mrf.mxu1  ;;  %v6739_v24 = vld [vmem:[#allocation2 + $0x24] ss:$16 sps:$4 sm:$0xff]   ;;  %v6742_v25 = vld [vmem:[#allocation2 + $0x2c] ss:$16 sps:$4 sm:$0xff]   ;;  %v6737_v58 = vld [vmem:[#allocation2 + $0x20] ss:$16 sps:$4 sm:$0xff]  }
 0x393   : > { %v3761_v41 = vmax.f32 %v3697_v36, 0.0  ;;  %v3700_v42 = vadd.f32 %v8336_v53, %v3614_v15  ;;  %v3615_v48 = vmul.f32 %v8419_v13, %v3528_v37  ;;  %v3530_v50 = vadd.f32 %v3529_v54, %v3416_v63  ;;  %v3418_v57 = vpop.f32.mrf.mxu0  ;;  %v6740_v29 = vld [vmem:[#allocation2 + $0x28] ss:$16 sps:$4 sm:$0xff]   ;;  %v6745_v30 = vld [vmem:[#allocation2 + $0x4] ss:$16 sps:$4 sm:$0xff]  }
 0x394   : > { %v3531_v52 = vpop.f32.mrf.mxu1  ;;  %v3796_v62 = vpack.c.bf16 %v3760_v31, %v3756_v47  ;;  %v6748_v31 = vld [vmem:[#allocation2 + $0xc] ss:$16 sps:$4 sm:$0xff]   ;;  %v6743_v15 = vld [vmem:[#allocation2] ss:$16 sps:$4 sm:$0xff]   ;;  %v6746_v37 = vld [vmem:[#allocation2 + $0x8] ss:$16 sps:$4 sm:$0xff]  }
 0x395   : > { %v3618_v3 = vmul.f32 %v8328_v38, %v3530_v50  ;;  %v3532_v4 = vadd.f32 %v3531_v52, %v3418_v57  ;;  %v3797_v49 = vpack.c.bf16 %v3761_v41, %v3757_v45  ;;  %v3701_v9 = vadd.f32 %v8428_v32, %v3615_v48  ;;  %v6751_v47 = vld [vmem:[#allocation2 + $0x1e4] ss:$16 sps:$4 sm:$0xff]   ;;  %v6754_v63 = vld [vmem:[#allocation2 + $0x1ec] ss:$16 sps:$4 sm:$0xff]   ;;  %v6749_v41 = vld [vmem:[#allocation2 + $0x1e0] ss:$16 sps:$4 sm:$0xff]  }
 0x396   : > { %v3764_v21 = vmax.f32 %v3700_v42, 0.0  ;;  %v6752_v42 = vld [vmem:[#allocation2 + $0x1e8] ss:$16 sps:$4 sm:$0xff]   ;;  %v6757_v48 = vld [vmem:[#allocation2 + $0x1c4] ss:$16 sps:$4 sm:$0xff]  }
 0x397   : > { %v3704_v10 = vadd.f32 %v8336_v53, %v3618_v3  ;;  %v3619_v16 = vmul.f32 %v8419_v13, %v3532_v4  ;;  %4391 = vmatprep.mubr.bf16.mxu1 %v3797_v49  ;;  %v3765_v27 = vmax.f32 %v3701_v9, 0.0  ;;  %v6706_v53 = vld [vmem:[#allocation2 + $0xec] ss:$16 sps:$4 sm:$0xff]   ;;  %v6755_v57 = vld [vmem:[#allocation2 + $0x1c0] ss:$16 sps:$4 sm:$0xff]  }
 0x398   : > { %4392 = vmatmul.mubr.bf16.gmra.mxu1 %v3796_v62  ;;  %v6712_v13 = vld [vmem:[#allocation2 + $0xcc] ss:$16 sps:$4 sm:$0xff]   ;;  %5133 = vmatprep.subr.bf16.mxu1 %v6706_v53  ;;  %v6758_v52 = vld [vmem:[#allocation2 + $0x1c8] ss:$16 sps:$4 sm:$0xff]  }
 0x399   : > { %v3768_v61 = vmax.f32 %v3704_v10, 0.0  ;;  %v3705_v22 = vadd.f32 %v8428_v32, %v3619_v16  ;;  %v6707_v32 = vld [vmem:[#allocation2 + $0xc0] ss:$16 sps:$4 sm:$0xff]   ;;  %5134 = vmatpush1.bf16.msra.mxu1 %v6704_v39  ;;  %v6760_v50 = vld [vmem:[#allocation2 + $0x1cc] ss:$16 sps:$4 sm:$0xff]  }
 0x39a   : > { %5135 = vmatprep.subr.bf16.mxu1 %v6712_v13  ;;  %5023 = vmatpush1.bf16.msra.mxu0 %v6707_v32 }
 0x39b   : > { %v3769_v28 = vmax.f32 %v3705_v22, 0.0  ;;  %v3800_v43 = vpack.c.bf16 %v3768_v61, %v3764_v21  ;;  %5024 = vmatprep.subr.bf16.mxu0 %v6715_v2 }
 0x39d   : > { %v3801_v44 = vpack.c.bf16 %v3769_v28, %v3765_v27  ;;  %5136 = vmatpush1.bf16.msra.mxu1 %v6710_v1 }
 0x39e   : > { %5137 = vmatprep.subr.bf16.mxu1 %v6718_v55  ;;  %5025 = vmatpush1.bf16.msra.mxu0 %v6713_v59 }
 0x39f   : > { %4401 = vmatprep.mubr.bf16.mxu1 %v3801_v44  ;;  %5026 = vmatprep.subr.bf16.mxu0 %v6721_v7 }
 0x3a0   : > { %4402 = vmatmul.mubr.bf16.gmra.mxu1 %v3800_v43 }
 0x3a1   : > { %5138 = vmatpush1.bf16.msra.mxu1 %v6716_v60 }
 0x3a2   : > { %5139 = vmatprep.subr.bf16.mxu1 %v6724_v8  ;;  %5027 = vmatpush1.bf16.msra.mxu0 %v6719_v12  ;;  %v6763_v8 = vld [vmem:[#allocation2 + $0x1a4] ss:$16 sps:$4 sm:$0xff]  }
 0x3a3   : > { %5028 = vmatprep.subr.bf16.mxu0 %v6727_v51  ;;  %v6764_v51 = vld [vmem:[#allocation2 + $0x1a8] ss:$16 sps:$4 sm:$0xff]  }
 0x3a5   : > { %5140 = vmatpush1.bf16.msra.mxu1 %v6722_v46  ;;  %v6761_v46 = vld [vmem:[#allocation2 + $0x1a0] ss:$16 sps:$4 sm:$0xff]  }
 0x3a6   : > { %5141 = vmatprep.subr.bf16.mxu1 %v6730_v5  ;;  %5029 = vmatpush1.bf16.msra.mxu0 %v6725_v17 }
 0x3a7   : > { %5030 = vmatprep.subr.bf16.mxu0 %v6733_v19 }
 0x3a9   : > { %5142 = vmatpush1.bf16.msra.mxu1 %v6728_v18 }
 0x3aa   : > { %5143 = vmatprep.subr.bf16.mxu1 %v6736_v35  ;;  %5031 = vmatpush1.bf16.msra.mxu0 %v6731_v14  ;;  %v6769_v35 = vld [vmem:[#allocation2 + $0x184] ss:$16 sps:$4 sm:$0xff]  }
 0x3ab   : > { %5032 = vmatprep.subr.bf16.mxu0 %v6739_v24  ;;  %v6770_v24 = vld [vmem:[#allocation2 + $0x188] ss:$16 sps:$4 sm:$0xff]  }
 0x3ad   : > { %5144 = vmatpush1.bf16.msra.mxu1 %v6734_v23  ;;  %v6767_v23 = vld [vmem:[#allocation2 + $0x180] ss:$16 sps:$4 sm:$0xff]  }
 0x3ae   : > { %5145 = vmatprep.subr.bf16.mxu1 %v6742_v25  ;;  %5033 = vmatpush1.bf16.msra.mxu0 %v6737_v58 }
 0x3af   : > { %5034 = vmatprep.subr.bf16.mxu0 %v6745_v30 }
 0x3b1   : > { %5146 = vmatpush1.bf16.msra.mxu1 %v6740_v29 }
 0x3b2   : > { %5147 = vmatprep.subr.bf16.mxu1 %v6748_v31  ;;  %5035 = vmatpush1.bf16.msra.mxu0 %v6743_v15  ;;  %v6778_v15 = vld [vmem:[#allocation2 + $0x16c] ss:$16 sps:$4 sm:$0xff]  }
 0x3b3   : > { %5036 = vmatprep.subr.bf16.mxu0 %v6751_v47 }
 0x3b5   : > { %5148 = vmatpush1.bf16.msra.mxu1 %v6746_v37 }
 0x3b6   : > { %5149 = vmatprep.subr.bf16.mxu1 %v6754_v63  ;;  %5037 = vmatpush2.bf16.msra.mxu0 %v6749_v41  ;;  %v6773_v63 = vld [vmem:[#allocation2 + $0x160] ss:$16 sps:$4 sm:$0xff]  }
 0x3b7   : > { %5038 = vmatprep.subr.bf16.mxu0 %v6757_v48 }
 0x3b9   : > { %5150 = vmatpush2.bf16.msra.mxu1 %v6752_v42 }
 0x3ba   : > { %5151 = vmatprep.subr.bf16.mxu1 %v6760_v50  ;;  %5039 = vmatpush2.bf16.msra.mxu0 %v6755_v57  ;;  %v6784_v57 = vld [vmem:[#allocation2 + $0x14c] ss:$16 sps:$4 sm:$0xff]  }
 0x3bb   : > { %5040 = vmatprep.subr.bf16.mxu0 %v6763_v8  ;;  %v6796_v8 = vld [vmem:[#allocation2 + $0x10c] ss:$16 sps:$4 sm:$0xff]  }
 0x3bd   : > { %5152 = vmatpush2.bf16.msra.mxu1 %v6758_v52 }
 0x3be   : > { %5041 = vmatpush2.bf16.msra.mxu0 %v6761_v46  ;;  %v6791_v46 = vld [vmem:[#allocation2 + $0x100] ss:$16 sps:$4 sm:$0xff]  }
 0x3bf   : > { %5042 = vmatprep.subr.bf16.mxu0 %v6769_v35 }
 0x3c2   : > { %5043 = vmatpush2.bf16.msra.mxu0 %v6767_v23 }
 0x3e8   : > { %v8493_v38 = vpop.f32.mrf.mxu0 }
 0x3ea   : > { %v8495_v0 = vpop.f32.mrf.mxu0 }
 0x3ec   : > { %v8497_v56 = vpop.f32.mrf.mxu0 }
 0x3ee   : > { %v8499_v11 = vpop.f32.mrf.mxu0 }
 0x3f0   : > { %v8501_v6 = vpop.f32.mrf.mxu0 }
 0x3f2   : > { %v8503_v20 = vpop.f32.mrf.mxu0 }
 0x3f4   : > { %v8505_v26 = vpop.f32.mrf.mxu0 }
 0x3f6   : > { %v4236_v36 = vpop.f32.mrf.mxu0 }
 0x3f8   : > { %v4240_v54 = vpop.f32.mrf.mxu0 }
 0x3fa   : > { %v4242_v45 = vpop.f32.mrf.mxu0 }
 0x3fc   : > { %v4244_v62 = vpop.f32.mrf.mxu0 }
 0x3fe   : > { %v4246_v3 = vpop.f32.mrf.mxu0 }
 0x400   : > { %v8507_v4 = vpop.f32.mrf.mxu0 }
 0x402   : > { %v8509_v49 = vpop.f32.mrf.mxu0 }
 0x404   : > { %v8511_v9 = vpop.f32.mrf.mxu0 }
 0x406   : > { %v8513_v10 = vpop.f32.mrf.mxu0 }
 0x408   : > { %v8515_v61 = vpop.f32.mrf.mxu0 }
 0x40a   : > { %v8525_v33 = vpop.f32.mrf.mxu0 }
 0x40c   : > { %v8535_v40 = vpop.f32.mrf.mxu0 }
 0x40e   : > { %v8545_v55 = vpop.f32.mrf.mxu0 }
 0x410   : > { %v8554_v5 = vpop.f32.mrf.mxu0 }
 0x412   : > { %v8562_v25 = vpop.f32.mrf.mxu0 }
 0x414   : > { %v8570_v37 = vpop.f32.mrf.mxu0 }
 0x416   : > { %v4276_v52 = vpop.f32.mrf.mxu0 }
 0x428   : > { %v4333_v16 = vpop.f32.mrf.mxu1 }
 0x429   : > { %v8518_v22 = vadd.f32 %v4333_v16, %v8493_v38  ;;  %v6782_v16 = vld [vmem:[#allocation2 + $0x148] ss:$16 sps:$4 sm:$0xff]  }
 0x42a   : > { %v4335_v21 = vpop.f32.mrf.mxu1 }
 0x42b   : > { %v8521_v27 = vadd.f32 %v4335_v21, %v8495_v0 }
 0x42c   : > { %v4337_v28 = vpop.f32.mrf.mxu1 }
 0x42d   : > { %v4412_v43 = vmax.f32 %v8518_v22, %v8521_v27  ;;  %v8528_v34 = vadd.f32 %v4337_v28, %v8497_v56 }
 0x42e   : > { %v4339_v44 = vpop.f32.mrf.mxu1 }
 0x42f   : > { %v8531_v39 = vadd.f32 %v4339_v44, %v8499_v11  ;;  %4413 = vmax.xlane.f32.xlu0 %v4412_v43  ;;  %v6766_v11 = vld [vmem:[#allocation2 + $0x1ac] ss:$16 sps:$4 sm:$0xff]   ;;  %v6787_v43 = vld [vmem:[#allocation2 + $0x124] ss:$16 sps:$4 sm:$0xff]  }
 0x430   : > { %v4343_v53 = vpop.f32.mrf.mxu1  ;;  %5153 = vmatprep.subr.bf16.mxu1 %v6766_v11  ;;  %v6790_v44 = vld [vmem:[#allocation2 + $0x12c] ss:$16 sps:$4 sm:$0xff]  }
 0x431   : > { %v4415_v38 = vmax.f32 %v8528_v34, %v8531_v39  ;;  %v8538_v0 = vadd.f32 %v4343_v53, %v8501_v6  ;;  %5154 = vmatpush2.bf16.msra.mxu1 %v6764_v51  ;;  %v4280_v53 = vpop.f32.mrf.mxu0  ;;  %v6794_v51 = vld [vmem:[#allocation2 + $0x108] ss:$16 sps:$4 sm:$0xff]  }
 0x432   : > { %v4345_v13 = vpop.f32.mrf.mxu1 }
 0x433   : > { %4416 = vmax.xlane.f32.xlu0 %v4415_v38  ;;  %v8541_v32 = vadd.f32 %v4345_v13, %v8503_v20  ;;  %v6772_v20 = vld [vmem:[#allocation2 + $0x18c] ss:$16 sps:$4 sm:$0xff]   ;;  %v6785_v13 = vld [vmem:[#allocation2 + $0x120] ss:$16 sps:$4 sm:$0xff]   ;;  %v4282_v11 = vpop.f32.mrf.mxu0 }
 0x434   : > { %v4347_v1 = vpop.f32.mrf.mxu1  ;;  %5155 = vmatprep.subr.bf16.mxu1 %v6772_v20 }
 0x435   : > { %v4418_v2 = vmax.f32 %v8538_v0, %v8541_v32  ;;  %v8548_v59 = vadd.f32 %v4347_v1, %v8505_v26  ;;  %5156 = vmatpush2.bf16.msra.mxu1 %v6770_v24  ;;  %v6788_v1 = vld [vmem:[#allocation2 + $0x128] ss:$16 sps:$4 sm:$0xff]   ;;  %v4284_v35 = vpop.f32.mrf.mxu0 }
 0x436   : > { %v4349_v56 = vpop.f32.mrf.mxu1  ;;  %5157 = vmatprep.subr.bf16.mxu1 %v6778_v15 }
 0x437   : > { %v8550_v60 = vadd.f32 %v4349_v56, %v4236_v36  ;;  %4419 = vmax.xlane.f32.xlu1 %v4418_v2  ;;  %v6775_v36 = vld [vmem:[#allocation2 + $0x164] ss:$16 sps:$4 sm:$0xff]   ;;  %v4286_v24 = vpop.f32.mrf.mxu0 }
 0x438   : > { %v4353_v7 = vpop.f32.mrf.mxu1  ;;  %5044 = vmatprep.subr.bf16.mxu0 %v6775_v36 }
 0x439   : > { %v4421_v12 = vmax.f32 %v8548_v59, %v8550_v60  ;;  %v8556_v17 = vadd.f32 %v4353_v7, %v4240_v54  ;;  %v6776_v54 = vld [vmem:[#allocation2 + $0x168] ss:$16 sps:$4 sm:$0xff]   ;;  %5045 = vmatpush2.bf16.msra.mxu0 %v6773_v63  ;;  %v6793_v7 = vld [vmem:[#allocation2 + $0x104] ss:$16 sps:$4 sm:$0xff]   ;;  %v4290_v15 = vpop.f32.mrf.mxu0 }
 0x43a   : > { %v4355_v6 = vpop.f32.mrf.mxu1  ;;  %5158 = vmatpush2.bf16.msra.mxu1 %v6776_v54 }
 0x43b   : > { %v8558_v18 = vadd.f32 %v4355_v6, %v4242_v45  ;;  %4422 = vmax.xlane.f32.xlu1 %v4421_v12  ;;  %v6781_v45 = vld [vmem:[#allocation2 + $0x144] ss:$16 sps:$4 sm:$0xff]   ;;  %5159 = vmatprep.subr.bf16.mxu1 %v6784_v57 }
 0x43c   : > { %v4357_v19 = vpop.f32.mrf.mxu1  ;;  %5046 = vmatprep.subr.bf16.mxu0 %v6781_v45 }
 0x43d   : > { %v4424_v14 = vmax.f32 %v8556_v17, %v8558_v18  ;;  %v8564_v58 = vadd.f32 %v4357_v19, %v4244_v62 }
 0x43e   : > { %v4359_v26 = vpop.f32.mrf.mxu1  ;;  %5160 = vmatpush2.bf16.msra.mxu1 %v6782_v16 }
 0x43f   : > { %v8566_v29 = vadd.f32 %v4359_v26, %v4246_v3  ;;  %4425 = vmax.xlane.f32.xlu0 %v4424_v14  ;;  %v6779_v3 = vld [vmem:[#allocation2 + $0x140] ss:$16 sps:$4 sm:$0xff]   ;;  %5161 = vmatprep.subr.bf16.mxu1 %v6790_v44 }
 0x440   : > { %v4363_v30 = vpop.f32.mrf.mxu1  ;;  %5047 = vmatpush2.bf16.msra.mxu0 %v6779_v3 }
 0x441   : > { %v4427_v31 = vmax.f32 %v8564_v58, %v8566_v29  ;;  %v8573_v41 = vadd.f32 %v4363_v30, %v8507_v4  ;;  %5048 = vmatprep.subr.bf16.mxu0 %v6787_v43 }
 0x442   : > { %v4365_v47 = vpop.f32.mrf.mxu1  ;;  %5162 = vmatpush2.bf16.msra.mxu1 %v6788_v1 }
 0x443   : > { %v8576_v42 = vadd.f32 %v4365_v47, %v8509_v49  ;;  %4428 = vmax.xlane.f32.xlu1 %v4427_v31  ;;  %5163 = vmatprep.subr.bf16.mxu1 %v6796_v8 }
 0x444   : > { %v4367_v48 = vpop.f32.mrf.mxu1  ;;  %5049 = vmatpush2.bf16.msra.mxu0 %v6785_v13 }
 0x445   : > { %v4430_v50 = vmax.f32 %v8573_v41, %v8576_v42  ;;  %v8581_v4 = vadd.f32 %v4367_v48, %v8511_v9  ;;  %5050 = vmatprep.subr.bf16.mxu0 %v6793_v7 }
 0x446   : > { %v4369_v62 = vpop.f32.mrf.mxu1  ;;  %5164 = vmatpush2.bf16.msra.mxu1 %v6794_v51 }
 0x447   : > { %v8584_v49 = vadd.f32 %v4369_v62, %v8513_v10  ;;  %4431 = vmax.xlane.f32.xlu0 %v4430_v50 }
 0x448   : > { %v4373_v21 = vpop.f32.mrf.mxu1  ;;  %5051 = vmatpush2.bf16.msra.mxu0 %v6791_v46 }
 0x449   : > { %v4433_v28 = vmax.f32 %v8581_v4, %v8584_v49  ;;  %v8589_v9 = vadd.f32 %v4373_v21, %v8515_v61 }
 0x44a   : > { %v4375_v38 = vpop.f32.mrf.mxu1 }
 0x44b   : > { %v8592_v10 = vadd.f32 %v4375_v38, %v8525_v33  ;;  %4434 = vmax.xlane.f32.xlu1 %v4433_v28 }
 0x44c   : > { %v4377_v2 = vpop.f32.mrf.mxu1 }
 0x44d   : > { %v4436_v56 = vmax.f32 %v8589_v9, %v8592_v10  ;;  %v8597_v61 = vadd.f32 %v4377_v2, %v8535_v40 }
 0x44e   : > { %v4379_v12 = vpop.f32.mrf.mxu1 }
 0x44f   : > { %v8600_v33 = vadd.f32 %v4379_v12, %v8545_v55  ;;  %4437 = vmax.xlane.f32.xlu0 %v4436_v56 }
 0x450   : > { %v4383_v6 = vpop.f32.mrf.mxu1 }
 0x451   : > { %v4439_v19 = vmax.f32 %v8597_v61, %v8600_v33  ;;  %v8605_v14 = vadd.f32 %v4383_v6, %v8554_v5 }
 0x452   : > { %v4385_v20 = vpop.f32.mrf.mxu1 }
 0x453   : > { %v8608_v40 = vadd.f32 %v4385_v20, %v8562_v25  ;;  %4440 = vmax.xlane.f32.xlu1 %v4439_v19 }
 0x454   : > { %v4387_v55 = vpop.f32.mrf.mxu1 }
 0x455   : > { %v4442_v23 = vmax.f32 %v8605_v14, %v8608_v40  ;;  %v8613_v30 = vadd.f32 %v4387_v55, %v8570_v37  ;;  %v4292_v37 = vpop.f32.mrf.mxu0 }
 0x456   : > { %v4389_v26 = vpop.f32.mrf.mxu1 }
 0x457   : > { %v8615_v31 = vadd.f32 %v4389_v26, %v4276_v52  ;;  %4443 = vmax.xlane.f32.xlu0 %v4442_v23  ;;  %v4294_v3 = vpop.f32.mrf.mxu0 }
 0x458   : > { %v4393_v36 = vpop.f32.mrf.mxu1 }
 0x459   : > { %v4445_v5 = vmax.f32 %v8613_v30, %v8615_v31  ;;  %v8619_v47 = vadd.f32 %v4393_v36, %v4280_v53  ;;  %v4296_v53 = vpop.f32.mrf.mxu0 }
 0x45a   : > { %v4395_v25 = vpop.f32.mrf.mxu1 }
 0x45b   : > { %v8621_v63 = vadd.f32 %v4395_v25, %v4282_v11  ;;  %4446 = vmax.xlane.f32.xlu1 %v4445_v5 }
 0x45c   : > { %v4397_v54 = vpop.f32.mrf.mxu1 }
 0x45d   : > { %v4448_v48 = vmax.f32 %v8619_v47, %v8621_v63  ;;  %v8625_v45 = vadd.f32 %v4397_v54, %v4284_v35 }
 0x45e   : > { %v4399_v50 = vpop.f32.mrf.mxu1 }
 0x45f   : > { %v8627_v57 = vadd.f32 %v4399_v50, %v4286_v24  ;;  %4449 = vmax.xlane.f32.xlu0 %v4448_v48 }
 0x460   : > { %v4403_v52 = vpop.f32.mrf.mxu1 }
 0x461   : > { %v4451_v62 = vmax.f32 %v8625_v45, %v8627_v57  ;;  %v8631_v21 = vadd.f32 %v4403_v52, %v4290_v15 }
 0x462   : > { %v4405_v16 = vpop.f32.mrf.mxu1 }
 0x463   : > { %v8633_v28 = vadd.f32 %v4405_v16, %v4292_v37  ;;  %4452 = vmax.xlane.f32.xlu1 %v4451_v62 }
 0x464   : > { %v4407_v43 = vpop.f32.mrf.mxu1 }
 0x465   : > { %v4454_v44 = vmax.f32 %v8631_v21, %v8633_v28  ;;  %v8637_v13 = vadd.f32 %v4407_v43, %v4294_v3 }
 0x466   : > { %v4409_v38 = vpop.f32.mrf.mxu1 }
 0x467   : > { %v8639_v1 = vadd.f32 %v4409_v38, %v4296_v53  ;;  %4455 = vmax.xlane.f32.xlu0 %v4454_v44 }
 0x469   : > { %v4457_v2 = vmax.f32 %v8637_v13, %v8639_v1 }
 0x46b   : > { %4458 = vmax.xlane.f32.xlu1 %v4457_v2 }
 0x4b8   : > { %v4414_v56 = vpop.xlane.xlu0 %4413 }
 0x4b9   : > { %v4460_v7 = vsub.f32 %v8518_v22, %v4414_v56  ;;  %v4461_v8 = vsub.f32 %v8521_v27, %v4414_v56 }
 0x4bb   : > { %v4492_v11 = vmul.f32 1.442695, %v4460_v7  ;;  %v4494_v12 = vmul.f32 1.442695, %v4461_v8 }
 0x4bc   : > { %v4417_v46 = vpop.xlane.xlu0 %4416 }
 0x4bd   : > { %6797 = vpow2.f32 %v4492_v11  ;;  %v4462_v51 = vsub.f32 %v8528_v34, %v4417_v46  ;;  %v4463_v6 = vsub.f32 %v8531_v39, %v4417_v46 }
 0x4be   : > { %6799 = vpow2.f32 %v4494_v12 }
 0x4bf   : > { %v4496_v19 = vmul.f32 1.442695, %v4462_v51  ;;  %v4498_v35 = vmul.f32 1.442695, %v4463_v6 }
 0x4c0   : > { %v4420_v20 = vpop.xlane.xlu1 %4419 }
 0x4c1   : > { %6801 = vpow2.f32 %v4496_v19  ;;  %v4464_v55 = vsub.f32 %v8538_v0, %v4420_v20  ;;  %v4465_v22 = vsub.f32 %v8541_v32, %v4420_v20 }
 0x4c2   : > { %6803 = vpow2.f32 %v4498_v35 }
 0x4c3   : > { %v4500_v23 = vmul.f32 1.442695, %v4464_v55  ;;  %v4502_v27 = vmul.f32 1.442695, %v4465_v22 }
 0x4c4   : > { %v4423_v24 = vpop.xlane.xlu1 %4422 }
 0x4c5   : > { %6805 = vpow2.f32 %v4500_v23  ;;  %v4466_v26 = vsub.f32 %v8548_v59, %v4423_v24  ;;  %v4467_v34 = vsub.f32 %v8550_v60, %v4423_v24 }
 0x4c6   : > { %6807 = vpow2.f32 %v4502_v27 }
 0x4c7   : > { %v4504_v39 = vmul.f32 1.442695, %v4466_v26  ;;  %v4506_v36 = vmul.f32 1.442695, %v4467_v34 }
 0x4c8   : > { %v4426_v5 = vpop.xlane.xlu0 %4425 }
 0x4c9   : > { %6809 = vpow2.f32 %v4504_v39  ;;  %v4468_v25 = vsub.f32 %v8556_v17, %v4426_v5  ;;  %v4469_v0 = vsub.f32 %v8558_v18, %v4426_v5 }
 0x4ca   : > { %v6798_v15 = vpop.eup %6797  ;;  %6811 = vpow2.f32 %v4506_v36 }
 0x4cb   : > { %v6800_v54 = vpop.eup %6799  ;;  %v4508_v32 = vmul.f32 1.442695, %v4468_v25  ;;  %v4510_v48 = vmul.f32 1.442695, %v4469_v0 }
 0x4cc   : > { %v4556_v37 = vadd.f32 %v6800_v54, %v6798_v15  ;;  %v4429_v50 = vpop.xlane.xlu1 %4428 }
 0x4cd   : > { %6813 = vpow2.f32 %v4508_v32  ;;  %v4470_v59 = vsub.f32 %v8564_v58, %v4429_v50  ;;  %v4471_v60 = vsub.f32 %v8566_v29, %v4429_v50 }
 0x4ce   : > { %v6802_v52 = vpop.eup %6801  ;;  %4557 = vadd.xlane.f32.xlu0 %v4556_v37  ;;  %6815 = vpow2.f32 %v4510_v48 }
 0x4cf   : > { %v6804_v62 = vpop.eup %6803  ;;  %v4620_v3 = vpack.c.bf16 %v6802_v52, %v6798_v15  ;;  %v4512_v16 = vmul.f32 1.442695, %v4470_v59  ;;  %v4514_v17 = vmul.f32 1.442695, %v4471_v60 }
 0x4d0   : > { %v4621_v43 = vpack.c.bf16 %v6804_v62, %v6800_v54  ;;  %v4559_v18 = vadd.f32 %v6804_v62, %v6802_v52  ;;  %v4432_v44 = vpop.xlane.xlu0 %4431 }
 0x4d1   : > { %6817 = vpow2.f32 %v4512_v16  ;;  %v4472_v53 = vsub.f32 %v8573_v41, %v4432_v44  ;;  %v4473_v38 = vsub.f32 %v8576_v42, %v4432_v44 }
 0x4d2   : > { %5052 = vmatprep.mubr.bf16.mxu0 %v4621_v43  ;;  %5165 = vmatprep.mubr.bf16.mxu1 %v4621_v43  ;;  %v6806_v2 = vpop.eup %6805  ;;  %6819 = vpow2.f32 %v4514_v17 }
 0x4d3   : > { %4560 = vadd.xlane.f32.xlu1 %v4559_v18  ;;  %5053 = vmatmul.mubr.bf16.vlgmr.msra.gmra.mxu0 %v4620_v3  ;;  %v6808_v58 = vpop.eup %6807  ;;  %v4516_v29 = vmul.f32 1.442695, %v4472_v53  ;;  %v4518_v56 = vmul.f32 1.442695, %v4473_v38 }
 0x4d4   : > { %5166 = vmatmul.mubr.bf16.vlgmr.msra.gmra.mxu1 %v4620_v3  ;;  %v4435_v7 = vpop.xlane.xlu1 %4434  ;;  %v4562_v8 = vadd.f32 %v6808_v58, %v6806_v2 }
 0x4d5   : > { %6821 = vpow2.f32 %v4516_v29  ;;  %v4474_v11 = vsub.f32 %v8581_v4, %v4435_v7  ;;  %v4475_v12 = vsub.f32 %v8584_v49, %v4435_v7 }
 0x4d6   : > { %v6810_v41 = vpop.eup %6809  ;;  %6823 = vpow2.f32 %v4518_v56  ;;  %4563 = vadd.xlane.f32.xlu0 %v4562_v8 }
 0x4d7   : > { %v6812_v42 = vpop.eup %6811  ;;  %v4520_v46 = vmul.f32 1.442695, %v4474_v11  ;;  %v4522_v51 = vmul.f32 1.442695, %v4475_v12  ;;  %v4622_v6 = vpack.c.bf16 %v6810_v41, %v6806_v2 }
 0x4d8   : > { %v4438_v19 = vpop.xlane.xlu0 %4437  ;;  %v4623_v35 = vpack.c.bf16 %v6812_v42, %v6808_v58  ;;  %v4565_v20 = vadd.f32 %v6812_v42, %v6810_v41 }
 0x4d9   : > { %6825 = vpow2.f32 %v4520_v46  ;;  %v4476_v55 = vsub.f32 %v8589_v9, %v4438_v19  ;;  %v4477_v22 = vsub.f32 %v8592_v10, %v4438_v19 }
 0x4da   : > { %v6814_v23 = vpop.eup %6813  ;;  %6827 = vpow2.f32 %v4522_v51  ;;  %5062 = vmatprep.mubr.bf16.mxu0 %v4623_v35  ;;  %5175 = vmatprep.mubr.bf16.mxu1 %v4623_v35 }
 0x4db   : > { %v6816_v4 = vpop.eup %6815  ;;  %v4524_v49 = vmul.f32 1.442695, %v4476_v55  ;;  %v4526_v27 = vmul.f32 1.442695, %v4477_v22  ;;  %4566 = vadd.xlane.f32.xlu1 %v4565_v20  ;;  %5063 = vmatmul.mubr.bf16.gmra.mxu0 %v4622_v6 }
 0x4dc   : > { %5176 = vmatmul.mubr.bf16.gmra.mxu1 %v4622_v6  ;;  %v4441_v24 = vpop.xlane.xlu1 %4440  ;;  %v4568_v26 = vadd.f32 %v6816_v4, %v6814_v23 }
 0x4dd   : > { %6829 = vpow2.f32 %v4524_v49  ;;  %v4478_v34 = vsub.f32 %v8597_v61, %v4441_v24  ;;  %v4479_v39 = vsub.f32 %v8600_v33, %v4441_v24 }
 0x4de   : > { %v6818_v9 = vpop.eup %6817  ;;  %6831 = vpow2.f32 %v4526_v27  ;;  %4569 = vadd.xlane.f32.xlu0 %v4568_v26 }
 0x4df   : > { %v6820_v10 = vpop.eup %6819  ;;  %v4528_v36 = vmul.f32 1.442695, %v4478_v34  ;;  %v4530_v5 = vmul.f32 1.442695, %v4479_v39  ;;  %v4624_v15 = vpack.c.bf16 %v6818_v9, %v6814_v23 }
 0x4e0   : > { %v4444_v25 = vpop.xlane.xlu0 %4443  ;;  %v4625_v0 = vpack.c.bf16 %v6820_v10, %v6816_v4  ;;  %v4571_v54 = vadd.f32 %v6820_v10, %v6818_v9 }
 0x4e1   : > { %6833 = vpow2.f32 %v4528_v36  ;;  %v4480_v32 = vsub.f32 %v8605_v14, %v4444_v25  ;;  %v4481_v48 = vsub.f32 %v8608_v40, %v4444_v25 }
 0x4e2   : > { %v6822_v37 = vpop.eup %6821  ;;  %6835 = vpow2.f32 %v4530_v5  ;;  %5072 = vmatprep.mubr.bf16.mxu0 %v4625_v0  ;;  %5185 = vmatprep.mubr.bf16.mxu1 %v4625_v0 }
 0x4e3   : > { %v6824_v61 = vpop.eup %6823  ;;  %v4532_v33 = vmul.f32 1.442695, %v4480_v32  ;;  %v4534_v50 = vmul.f32 1.442695, %v4481_v48  ;;  %4572 = vadd.xlane.f32.xlu1 %v4571_v54  ;;  %5073 = vmatmul.mubr.bf16.gmra.mxu0 %v4624_v15 }
 0x4e4   : > { %5186 = vmatmul.mubr.bf16.gmra.mxu1 %v4624_v15  ;;  %v4447_v52 = vpop.xlane.xlu1 %4446  ;;  %v4574_v59 = vadd.f32 %v6824_v61, %v6822_v37 }
 0x4e5   : > { %6837 = vpow2.f32 %v4532_v33  ;;  %v4482_v60 = vsub.f32 %v8613_v30, %v4447_v52  ;;  %v4483_v62 = vsub.f32 %v8615_v31, %v4447_v52 }
 0x4e6   : > { %v6826_v14 = vpop.eup %6825  ;;  %6839 = vpow2.f32 %v4534_v50  ;;  %4575 = vadd.xlane.f32.xlu0 %v4574_v59 }
 0x4e7   : > { %v6828_v40 = vpop.eup %6827  ;;  %v4536_v3 = vmul.f32 1.442695, %v4482_v60  ;;  %v4538_v16 = vmul.f32 1.442695, %v4483_v62  ;;  %v4626_v17 = vpack.c.bf16 %v6826_v14, %v6822_v37 }
 0x4e8   : > { %v4450_v43 = vpop.xlane.xlu0 %4449  ;;  %v4627_v18 = vpack.c.bf16 %v6828_v40, %v6824_v61  ;;  %v4577_v44 = vadd.f32 %v6828_v40, %v6826_v14 }
 0x4e9   : > { %6841 = vpow2.f32 %v4536_v3  ;;  %v4484_v53 = vsub.f32 %v8619_v47, %v4450_v43  ;;  %v4485_v38 = vsub.f32 %v8621_v63, %v4450_v43 }
 0x4ea   : > { %v6830_v2 = vpop.eup %6829  ;;  %6843 = vpow2.f32 %v4538_v16  ;;  %5082 = vmatprep.mubr.bf16.mxu0 %v4627_v18  ;;  %5195 = vmatprep.mubr.bf16.mxu1 %v4627_v18 }
 0x4eb   : > { %v6832_v30 = vpop.eup %6831  ;;  %v4540_v31 = vmul.f32 1.442695, %v4484_v53  ;;  %v4542_v58 = vmul.f32 1.442695, %v4485_v38  ;;  %4578 = vadd.xlane.f32.xlu1 %v4577_v44  ;;  %5083 = vmatmul.mubr.bf16.gmra.mxu0 %v4626_v17 }
 0x4ec   : > { %5196 = vmatmul.mubr.bf16.gmra.mxu1 %v4626_v17  ;;  %v4453_v29 = vpop.xlane.xlu1 %4452  ;;  %v4580_v56 = vadd.f32 %v6832_v30, %v6830_v2 }
 0x4ed   : > { %6845 = vpow2.f32 %v4540_v31  ;;  %v4486_v7 = vsub.f32 %v8625_v45, %v4453_v29  ;;  %v4487_v8 = vsub.f32 %v8627_v57, %v4453_v29 }
 0x4ee   : > { %v6834_v47 = vpop.eup %6833  ;;  %6847 = vpow2.f32 %v4542_v58  ;;  %4581 = vadd.xlane.f32.xlu0 %v4580_v56 }
 0x4ef   : > { %v6836_v63 = vpop.eup %6835  ;;  %v4544_v11 = vmul.f32 1.442695, %v4486_v7  ;;  %v4546_v12 = vmul.f32 1.442695, %v4487_v8  ;;  %v4628_v41 = vpack.c.bf16 %v6834_v47, %v6830_v2 }
 0x4f0   : > { %v4456_v42 = vpop.xlane.xlu0 %4455  ;;  %v4629_v46 = vpack.c.bf16 %v6836_v63, %v6832_v30  ;;  %v4583_v51 = vadd.f32 %v6836_v63, %v6834_v47 }
 0x4f1   : > { %6849 = vpow2.f32 %v4544_v11  ;;  %v4488_v6 = vsub.f32 %v8631_v21, %v4456_v42  ;;  %v4489_v19 = vsub.f32 %v8633_v28, %v4456_v42 }
 0x4f2   : > { %v6838_v35 = vpop.eup %6837  ;;  %6851 = vpow2.f32 %v4546_v12  ;;  %5092 = vmatprep.mubr.bf16.mxu0 %v4629_v46  ;;  %5205 = vmatprep.mubr.bf16.mxu1 %v4629_v46 }
 0x4f3   : > { %v6840_v45 = vpop.eup %6839  ;;  %v4548_v57 = vmul.f32 1.442695, %v4488_v6  ;;  %v4550_v20 = vmul.f32 1.442695, %v4489_v19  ;;  %4584 = vadd.xlane.f32.xlu1 %v4583_v51  ;;  %5093 = vmatmul.mubr.bf16.gmra.mxu0 %v4628_v41 }
 0x4f4   : > { %5206 = vmatmul.mubr.bf16.gmra.mxu1 %v4628_v41  ;;  %v4459_v55 = vpop.xlane.xlu1 %4458  ;;  %v4586_v22 = vadd.f32 %v6840_v45, %v6838_v35 }
 0x4f5   : > { %6853 = vpow2.f32 %v4548_v57  ;;  %v4490_v23 = vsub.f32 %v8637_v13, %v4459_v55  ;;  %v4491_v4 = vsub.f32 %v8639_v1, %v4459_v55 }
 0x4f6   : > { %v6842_v21 = vpop.eup %6841  ;;  %6855 = vpow2.f32 %v4550_v20  ;;  %4587 = vadd.xlane.f32.xlu0 %v4586_v22 }
 0x4f7   : > { %v6844_v28 = vpop.eup %6843  ;;  %v4552_v49 = vmul.f32 1.442695, %v4490_v23  ;;  %v4554_v27 = vmul.f32 1.442695, %v4491_v4  ;;  %v4630_v24 = vpack.c.bf16 %v6842_v21, %v6838_v35 }
 0x4f8   : > { %v4631_v26 = vpack.c.bf16 %v6844_v28, %v6840_v45  ;;  %v4589_v34 = vadd.f32 %v6844_v28, %v6842_v21 }
 0x4f9   : > { %6857 = vpow2.f32 %v4552_v49 }
 0x4fa   : > { %v6846_v39 = vpop.eup %6845  ;;  %6859 = vpow2.f32 %v4554_v27  ;;  %5102 = vmatprep.mubr.bf16.mxu0 %v4631_v26  ;;  %5215 = vmatprep.mubr.bf16.mxu1 %v4631_v26 }
 0x4fb   : > { %v6848_v9 = vpop.eup %6847  ;;  %4590 = vadd.xlane.f32.xlu1 %v4589_v34  ;;  %5103 = vmatmul.mubr.bf16.gmra.mxu0 %v4630_v24 }
 0x4fc   : > { %5216 = vmatmul.mubr.bf16.gmra.mxu1 %v4630_v24  ;;  %v4592_v13 = vadd.f32 %v6848_v9, %v6846_v39 }
 0x4fe   : > { %v6850_v1 = vpop.eup %6849  ;;  %4593 = vadd.xlane.f32.xlu0 %v4592_v13 }
 0x4ff   : > { %v6852_v10 = vpop.eup %6851  ;;  %v4632_v36 = vpack.c.bf16 %v6850_v1, %v6846_v39 }
 0x500   : > { %v4633_v5 = vpack.c.bf16 %v6852_v10, %v6848_v9  ;;  %v4595_v15 = vadd.f32 %v6852_v10, %v6850_v1 }
 0x502   : > { %v6854_v25 = vpop.eup %6853  ;;  %5112 = vmatprep.mubr.bf16.mxu0 %v4633_v5  ;;  %5225 = vmatprep.mubr.bf16.mxu1 %v4633_v5 }
 0x503   : > { %v6856_v0 = vpop.eup %6855  ;;  %4596 = vadd.xlane.f32.xlu1 %v4595_v15  ;;  %5113 = vmatmul.mubr.bf16.gmra.mxu0 %v4632_v36 }
 0x504   : > { %5226 = vmatmul.mubr.bf16.gmra.mxu1 %v4632_v36  ;;  %v4598_v54 = vadd.f32 %v6856_v0, %v6854_v25 }
 0x506   : > { %v6858_v32 = vpop.eup %6857  ;;  %4599 = vadd.xlane.f32.xlu0 %v4598_v54 }
 0x507   : > { %v6860_v48 = vpop.eup %6859  ;;  %v4634_v37 = vpack.c.bf16 %v6858_v32, %v6854_v25 }
 0x508   : > { %v4635_v61 = vpack.c.bf16 %v6860_v48, %v6856_v0  ;;  %v4601_v33 = vadd.f32 %v6860_v48, %v6858_v32 }
 0x50a   : > { %5122 = vmatprep.mubr.bf16.mxu0 %v4635_v61  ;;  %5235 = vmatprep.mubr.bf16.mxu1 %v4635_v61 }
 0x50b   : > { %4602 = vadd.xlane.f32.xlu1 %v4601_v33  ;;  %5123 = vmatmul.mubr.bf16.gmra.mxu0 %v4634_v37 }
 0x50c   : > { %5236 = vmatmul.mubr.bf16.gmra.mxu1 %v4634_v37 }
 0x557   : > { %v4558_v50 = vpop.xlane.xlu0 %4557 }
 0x558   : > { %6861 = vrcp.f32 %v4558_v50 }
 0x55c   : > { %v4561_v52 = vpop.xlane.xlu1 %4560 }
 0x55d   : > { %6863 = vrcp.f32 %v4561_v52 }
 0x55f   : > { %v4564_v59 = vpop.xlane.xlu0 %4563 }
 0x560   : > { %6865 = vrcp.f32 %v4564_v59 }
 0x564   : > { %v4567_v60 = vpop.xlane.xlu1 %4566 }
 0x565   : > { %v6862_v62 = vpop.eup %6861  ;;  %6867 = vrcp.f32 %v4567_v60 }
 0x567   : > { %v4570_v40 = vpop.xlane.xlu0 %4569 }
 0x568   : > { %6869 = vrcp.f32 %v4570_v40 }
 0x56a   : > { %v6864_v53 = vpop.eup %6863 }
 0x56c   : > { %v4573_v30 = vpop.xlane.xlu1 %4572 }
 0x56d   : > { %6871 = vrcp.f32 %v4573_v30  ;;  %v6866_v63 = vpop.eup %6865 }
 0x56f   : > { %v4576_v11 = vpop.xlane.xlu0 %4575 }
 0x570   : > { %6873 = vrcp.f32 %v4576_v11 }
 0x572   : > { %v6868_v35 = vpop.eup %6867 }
 0x574   : > { %v4579_v45 = vpop.xlane.xlu1 %4578 }
 0x575   : > { %6875 = vrcp.f32 %v4579_v45  ;;  %v6870_v49 = vpop.eup %6869 }
 0x577   : > { %v4582_v27 = vpop.xlane.xlu0 %4581 }
 0x578   : > { %6877 = vrcp.f32 %v4582_v27 }
 0x57a   : > { %v6872_v36 = vpop.eup %6871 }
 0x57c   : > { %v4585_v5 = vpop.xlane.xlu1 %4584 }
 0x57d   : > { %6879 = vrcp.f32 %v4585_v5  ;;  %v6874_v33 = vpop.eup %6873 }
 0x57f   : > { %v4588_v50 = vpop.xlane.xlu0 %4587 }
 0x580   : > { %6881 = vrcp.f32 %v4588_v50 }
 0x593   : > { %v5054_v14 = vpop.f32.mrf.mxu0 }
 0x594   : > { %v5246_v3 = vmul.f32 %v6862_v62, %v5054_v14  ;;  %v5167_v16 = vpop.f32.mrf.mxu1 }
 0x595   : > { %v5248_v17 = vmul.f32 %v6862_v62, %v5167_v16  ;;  %v5056_v43 = vpop.f32.mrf.mxu0 }
 0x596   : > { %5310 = vst [vmem:[%s7595_s26] sm:$0xff] %v5246_v3  ;;  %v5247_v18 = vmul.f32 %v6862_v62, %v5056_v43  ;;  %v5169_v44 = vpop.f32.mrf.mxu1  ;;  %v4591_v43 = vpop.xlane.xlu1 %4590 }
 0x597   : > { %5312 = vst [vmem:[%s7595_s26 + $0x10] sm:$0xff] %v5248_v17  ;;  %v5249_v38 = vmul.f32 %v6862_v62, %v5169_v44  ;;  %v5058_v2 = vpop.f32.mrf.mxu0  ;;  %v6876_v17 = vpop.eup %6875  ;;  %6883 = vrcp.f32 %v4591_v43 }
 0x598   : > { %5311 = vst [vmem:[%s7595_s26 + $0x8] sm:$0xff] %v5247_v18  ;;  %v5250_v31 = vmul.f32 %v6864_v53, %v5058_v2  ;;  %v5171_v58 = vpop.f32.mrf.mxu1 }
 0x599   : > { %5313 = vst [vmem:[%s7595_s26 + $0x18] sm:$0xff] %v5249_v38  ;;  %v5252_v29 = vmul.f32 %v6864_v53, %v5171_v58  ;;  %v5060_v56 = vpop.f32.mrf.mxu0 }
 0x59a   : > { %5314 = vst [vmem:[%s7595_s26 + $0x20] sm:$0xff] %v5250_v31  ;;  %v5251_v7 = vmul.f32 %v6864_v53, %v5060_v56  ;;  %v5173_v8 = vpop.f32.mrf.mxu1  ;;  %v4594_v56 = vpop.xlane.xlu0 %4593 }
 0x59b   : > { %5316 = vst [vmem:[%s7595_s26 + $0x30] sm:$0xff] %v5252_v29  ;;  %v5253_v47 = vmul.f32 %v6864_v53, %v5173_v8  ;;  %v5064_v12 = vpop.f32.mrf.mxu0  ;;  %v6878_v29 = vpop.eup %6877  ;;  %6885 = vrcp.f32 %v4594_v56 }
 0x59c   : > { %5315 = vst [vmem:[%s7595_s26 + $0x28] sm:$0xff] %v5251_v7  ;;  %v5254_v41 = vmul.f32 %v6866_v63, %v5064_v12  ;;  %v5177_v42 = vpop.f32.mrf.mxu1 }
 0x59d   : > { %5317 = vst [vmem:[%s7595_s26 + $0x38] sm:$0xff] %v5253_v47  ;;  %v5256_v46 = vmul.f32 %v6866_v63, %v5177_v42  ;;  %v5066_v51 = vpop.f32.mrf.mxu0 }
 0x59e   : > { %5318 = vst [vmem:[%s7595_s26 + $0x40] sm:$0xff] %v5254_v41  ;;  %v5255_v6 = vmul.f32 %v6866_v63, %v5066_v51  ;;  %v5179_v19 = vpop.f32.mrf.mxu1  ;;  %v4597_v51 = vpop.xlane.xlu1 %4596 }
 0x59f   : > { %5320 = vst [vmem:[%s7595_s26 + $0x50] sm:$0xff] %v5256_v46  ;;  %v5257_v57 = vmul.f32 %v6866_v63, %v5179_v19  ;;  %v5068_v20 = vpop.f32.mrf.mxu0  ;;  %v6880_v46 = vpop.eup %6879  ;;  %6887 = vrcp.f32 %v4597_v51 }
 0x5a0   : > { %5319 = vst [vmem:[%s7595_s26 + $0x48] sm:$0xff] %v5255_v6  ;;  %v5258_v55 = vmul.f32 %v6868_v35, %v5068_v20  ;;  %v5181_v22 = vpop.f32.mrf.mxu1 }
 0x5a1   : > { %5321 = vst [vmem:[%s7595_s26 + $0x58] sm:$0xff] %v5257_v57  ;;  %v5260_v23 = vmul.f32 %v6868_v35, %v5181_v22  ;;  %v5070_v4 = vpop.f32.mrf.mxu0 }
 0x5a2   : > { %5322 = vst [vmem:[%s7595_s26 + $0x60] sm:$0xff] %v5258_v55  ;;  %v5259_v21 = vmul.f32 %v6868_v35, %v5070_v4  ;;  %v5183_v28 = vpop.f32.mrf.mxu1  ;;  %v4600_v4 = vpop.xlane.xlu0 %4599 }
 0x5a3   : > { %5324 = vst [vmem:[%s7595_s26 + $0x70] sm:$0xff] %v5260_v23  ;;  %v5261_v24 = vmul.f32 %v6868_v35, %v5183_v28  ;;  %v5074_v26 = vpop.f32.mrf.mxu0  ;;  %v6882_v23 = vpop.eup %6881  ;;  %6889 = vrcp.f32 %v4600_v4 }
 0x5a4   : > { %5323 = vst [vmem:[%s7595_s26 + $0x68] sm:$0xff] %v5259_v21  ;;  %v5262_v34 = vmul.f32 %v6870_v49, %v5074_v26  ;;  %v5187_v39 = vpop.f32.mrf.mxu1 }
 0x5a5   : > { %5325 = vst [vmem:[%s7595_s26 + $0x78] sm:$0xff] %v5261_v24  ;;  %v5264_v9 = vmul.f32 %v6870_v49, %v5187_v39  ;;  %v5076_v13 = vpop.f32.mrf.mxu0 }
 0x5a6   : > { %5326 = vst [vmem:[%s7595_s26 + $0x80] sm:$0xff] %v5262_v34  ;;  %v5263_v1 = vmul.f32 %v6870_v49, %v5076_v13  ;;  %v5189_v10 = vpop.f32.mrf.mxu1  ;;  %v4603_v13 = vpop.xlane.xlu1 %4602 }
 0x5a7   : > { %5328 = vst [vmem:[%s7595_s26 + $0x90] sm:$0xff] %v5264_v9  ;;  %v5265_v15 = vmul.f32 %v6870_v49, %v5189_v10  ;;  %v5078_v25 = vpop.f32.mrf.mxu0  ;;  %v6884_v9 = vpop.eup %6883  ;;  %6891 = vrcp.f32 %v4603_v13 }
 0x5a8   : > { %5327 = vst [vmem:[%s7595_s26 + $0x88] sm:$0xff] %v5263_v1  ;;  %v5266_v0 = vmul.f32 %v6872_v36, %v5078_v25  ;;  %v5191_v54 = vpop.f32.mrf.mxu1 }
 0x5a9   : > { %5329 = vst [vmem:[%s7595_s26 + $0x98] sm:$0xff] %v5265_v15  ;;  %v5268_v32 = vmul.f32 %v6872_v36, %v5191_v54  ;;  %v5080_v48 = vpop.f32.mrf.mxu0 }
 0x5aa   : > { %5330 = vst [vmem:[%s7595_s26 + $0xa0] sm:$0xff] %v5266_v0  ;;  %v5267_v37 = vmul.f32 %v6872_v36, %v5080_v48  ;;  %v5193_v61 = vpop.f32.mrf.mxu1 }
 0x5ab   : > { %5332 = vst [vmem:[%s7595_s26 + $0xb0] sm:$0xff] %v5268_v32  ;;  %v5269_v52 = vmul.f32 %v6872_v36, %v5193_v61  ;;  %v5084_v59 = vpop.f32.mrf.mxu0  ;;  %v6886_v32 = vpop.eup %6885 }
 0x5ac   : > { %5331 = vst [vmem:[%s7595_s26 + $0xa8] sm:$0xff] %v5267_v37  ;;  %v5270_v60 = vmul.f32 %v6874_v33, %v5084_v59  ;;  %v5197_v62 = vpop.f32.mrf.mxu1 }
 0x5ad   : > { %5333 = vst [vmem:[%s7595_s26 + $0xb8] sm:$0xff] %v5269_v52  ;;  %v5272_v14 = vmul.f32 %v6874_v33, %v5197_v62  ;;  %v5086_v40 = vpop.f32.mrf.mxu0  ;;  %v6888_v62 = vpop.eup %6887 }
 0x5ae   : > { %5334 = vst [vmem:[%s7595_s26 + $0xc0] sm:$0xff] %v5270_v60  ;;  %v5271_v3 = vmul.f32 %v6874_v33, %v5086_v40  ;;  %v5199_v16 = vpop.f32.mrf.mxu1 }
 0x5af   : > { %5336 = vst [vmem:[%s7595_s26 + $0xd0] sm:$0xff] %v5272_v14  ;;  %v5273_v18 = vmul.f32 %v6874_v33, %v5199_v16  ;;  %v5088_v44 = vpop.f32.mrf.mxu0 }
 0x5b0   : > { %5335 = vst [vmem:[%s7595_s26 + $0xc8] sm:$0xff] %v5271_v3  ;;  %v5274_v53 = vmul.f32 %v6876_v17, %v5088_v44  ;;  %v5201_v38 = vpop.f32.mrf.mxu1 }
 0x5b1   : > { %5337 = vst [vmem:[%s7595_s26 + $0xd8] sm:$0xff] %v5273_v18  ;;  %v5276_v2 = vmul.f32 %v6876_v17, %v5201_v38  ;;  %v5090_v30 = vpop.f32.mrf.mxu0 }
 0x5b2   : > { %5338 = vst [vmem:[%s7595_s26 + $0xe0] sm:$0xff] %v5274_v53  ;;  %v5275_v31 = vmul.f32 %v6876_v17, %v5090_v30  ;;  %v5203_v58 = vpop.f32.mrf.mxu1  ;;  %v6890_v53 = vpop.eup %6889 }
 0x5b3   : > { %5340 = vst [vmem:[%s7595_s26 + $0xf0] sm:$0xff] %v5276_v2  ;;  %v5277_v7 = vmul.f32 %v6876_v17, %v5203_v58  ;;  %v5094_v8 = vpop.f32.mrf.mxu0 }
 0x5b4   : > { %5339 = vst [vmem:[%s7595_s26 + $0xe8] sm:$0xff] %v5275_v31  ;;  %v5278_v47 = vmul.f32 %v6878_v29, %v5094_v8  ;;  %v5207_v63 = vpop.f32.mrf.mxu1  ;;  %v6892_v8 = vpop.eup %6891 }
 0x5b5   : > { %5341 = vst [vmem:[%s7595_s26 + $0xf8] sm:$0xff] %v5277_v7  ;;  %v5280_v11 = vmul.f32 %v6878_v29, %v5207_v63  ;;  %v5096_v12 = vpop.f32.mrf.mxu0 }
 0x5b6   : > { %5342 = vst [vmem:[%s7595_s26 + $0x100] sm:$0xff] %v5278_v47  ;;  %v5279_v41 = vmul.f32 %v6878_v29, %v5096_v12  ;;  %v5209_v42 = vpop.f32.mrf.mxu1 }
 0x5b7   : > { %5344 = vst [vmem:[%s7595_s26 + $0x110] sm:$0xff] %v5280_v11  ;;  %v5281_v6 = vmul.f32 %v6878_v29, %v5209_v42  ;;  %v5098_v19 = vpop.f32.mrf.mxu0 }
 0x5b8   : > { %5343 = vst [vmem:[%s7595_s26 + $0x108] sm:$0xff] %v5279_v41  ;;  %v5282_v35 = vmul.f32 %v6880_v46, %v5098_v19  ;;  %v5211_v45 = vpop.f32.mrf.mxu1 }
 0x5b9   : > { %5345 = vst [vmem:[%s7595_s26 + $0x118] sm:$0xff] %v5281_v6  ;;  %v5284_v57 = vmul.f32 %v6880_v46, %v5211_v45  ;;  %v5100_v20 = vpop.f32.mrf.mxu0 }
 0x5ba   : > { %5346 = vst [vmem:[%s7595_s26 + $0x120] sm:$0xff] %v5282_v35  ;;  %v5283_v55 = vmul.f32 %v6880_v46, %v5100_v20  ;;  %v5213_v22 = vpop.f32.mrf.mxu1 }
 0x5bb   : > { %5348 = vst [vmem:[%s7595_s26 + $0x130] sm:$0xff] %v5284_v57  ;;  %v5285_v21 = vmul.f32 %v6880_v46, %v5213_v22  ;;  %v5104_v28 = vpop.f32.mrf.mxu0 }
 0x5bc   : > { %5347 = vst [vmem:[%s7595_s26 + $0x128] sm:$0xff] %v5283_v55  ;;  %v5286_v49 = vmul.f32 %v6882_v23, %v5104_v28  ;;  %v5217_v27 = vpop.f32.mrf.mxu1 }
 0x5bd   : > { %5349 = vst [vmem:[%s7595_s26 + $0x138] sm:$0xff] %v5285_v21  ;;  %v5288_v24 = vmul.f32 %v6882_v23, %v5217_v27  ;;  %v5106_v26 = vpop.f32.mrf.mxu0 }
 0x5be   : > { %5350 = vst [vmem:[%s7595_s26 + $0x140] sm:$0xff] %v5286_v49  ;;  %v5287_v34 = vmul.f32 %v6882_v23, %v5106_v26  ;;  %v5219_v39 = vpop.f32.mrf.mxu1 }
 0x5bf   : > { %5352 = vst [vmem:[%s7595_s26 + $0x150] sm:$0xff] %v5288_v24  ;;  %v5289_v1 = vmul.f32 %v6882_v23, %v5219_v39  ;;  %v5108_v10 = vpop.f32.mrf.mxu0 }
 0x5c0   : > { %5351 = vst [vmem:[%s7595_s26 + $0x148] sm:$0xff] %v5287_v34  ;;  %v5290_v36 = vmul.f32 %v6884_v9, %v5108_v10  ;;  %v5221_v5 = vpop.f32.mrf.mxu1 }
 0x5c1   : > { %5353 = vst [vmem:[%s7595_s26 + $0x158] sm:$0xff] %v5289_v1  ;;  %v5292_v15 = vmul.f32 %v6884_v9, %v5221_v5  ;;  %v5110_v25 = vpop.f32.mrf.mxu0 }
 0x5c2   : > { %5354 = vst [vmem:[%s7595_s26 + $0x160] sm:$0xff] %v5290_v36  ;;  %v5291_v0 = vmul.f32 %v6884_v9, %v5110_v25  ;;  %v5223_v54 = vpop.f32.mrf.mxu1 }
 0x5c3   : > { %5356 = vst [vmem:[%s7595_s26 + $0x170] sm:$0xff] %v5292_v15  ;;  %v5293_v48 = vmul.f32 %v6884_v9, %v5223_v54  ;;  %v5114_v37 = vpop.f32.mrf.mxu0 }
 0x5c4   : > { %5355 = vst [vmem:[%s7595_s26 + $0x168] sm:$0xff] %v5291_v0  ;;  %v5294_v61 = vmul.f32 %v6886_v32, %v5114_v37  ;;  %v5227_v33 = vpop.f32.mrf.mxu1 }
 0x5c5   : > { %5357 = vst [vmem:[%s7595_s26 + $0x178] sm:$0xff] %v5293_v48  ;;  %v5296_v50 = vmul.f32 %v6886_v32, %v5227_v33  ;;  %v5116_v52 = vpop.f32.mrf.mxu0 }
 0x5c6   : > { %5358 = vst [vmem:[%s7595_s26 + $0x180] sm:$0xff] %v5294_v61  ;;  %v5295_v59 = vmul.f32 %v6886_v32, %v5116_v52  ;;  %v5229_v60 = vpop.f32.mrf.mxu1 }
 0x5c7   : > { %5360 = vst [vmem:[%s7595_s26 + $0x190] sm:$0xff] %v5296_v50  ;;  %v5297_v14 = vmul.f32 %v6886_v32, %v5229_v60  ;;  %v5118_v40 = vpop.f32.mrf.mxu0 }
 0x5c8   : > { %5359 = vst [vmem:[%s7595_s26 + $0x188] sm:$0xff] %v5295_v59  ;;  %v5298_v3 = vmul.f32 %v6888_v62, %v5118_v40  ;;  %v5231_v16 = vpop.f32.mrf.mxu1 }
 0x5c9   : > { %5361 = vst [vmem:[%s7595_s26 + $0x198] sm:$0xff] %v5297_v14  ;;  %v5300_v17 = vmul.f32 %v6888_v62, %v5231_v16  ;;  %v5120_v43 = vpop.f32.mrf.mxu0 }
 0x5ca   : > { %5362 = vst [vmem:[%s7595_s26 + $0x1a0] sm:$0xff] %v5298_v3  ;;  %v5299_v18 = vmul.f32 %v6888_v62, %v5120_v43  ;;  %v5233_v44 = vpop.f32.mrf.mxu1 }
 0x5cb   : > { %5364 = vst [vmem:[%s7595_s26 + $0x1b0] sm:$0xff] %v5300_v17  ;;  %v5301_v38 = vmul.f32 %v6888_v62, %v5233_v44  ;;  %v5124_v2 = vpop.f32.mrf.mxu0 }
 0x5cc   : > { %5363 = vst [vmem:[%s7595_s26 + $0x1a8] sm:$0xff] %v5299_v18  ;;  %v5302_v30 = vmul.f32 %v6890_v53, %v5124_v2  ;;  %v5237_v31 = vpop.f32.mrf.mxu1 }
 0x5cd   : > { %5365 = vst [vmem:[%s7595_s26 + $0x1b8] sm:$0xff] %v5301_v38  ;;  %v5304_v58 = vmul.f32 %v6890_v53, %v5237_v31  ;;  %v5126_v29 = vpop.f32.mrf.mxu0 }
 0x5ce   : > { %5366 = vst [vmem:[%s7595_s26 + $0x1c0] sm:$0xff] %v5302_v30  ;;  %v5303_v56 = vmul.f32 %v6890_v53, %v5126_v29  ;;  %v5239_v7 = vpop.f32.mrf.mxu1 }
 0x5cf   : > { %5368 = vst [vmem:[%s7595_s26 + $0x1d0] sm:$0xff] %v5304_v58  ;;  %v5305_v47 = vmul.f32 %v6890_v53, %v5239_v7  ;;  %v5128_v63 = vpop.f32.mrf.mxu0 }
 0x5d0   : > { %5367 = vst [vmem:[%s7595_s26 + $0x1c8] sm:$0xff] %v5303_v56  ;;  %v5306_v11 = vmul.f32 %v6892_v8, %v5128_v63  ;;  %v5241_v12 = vpop.f32.mrf.mxu1 }
 0x5d1   : > { %5369 = vst [vmem:[%s7595_s26 + $0x1d8] sm:$0xff] %v5305_v47  ;;  %v5308_v41 = vmul.f32 %v6892_v8, %v5241_v12  ;;  %v5130_v42 = vpop.f32.mrf.mxu0 }
 0x5d2   : > { %5370 = vst [vmem:[%s7595_s26 + $0x1e0] sm:$0xff] %v5306_v11  ;;  %v5307_v46 = vmul.f32 %v6892_v8, %v5130_v42  ;;  %v5243_v51 = vpop.f32.mrf.mxu1 }
 0x5d3   : > { %5372 = vst [vmem:[%s7595_s26 + $0x1f0] sm:$0xff] %v5308_v41  ;;  %v5309_v6 = vmul.f32 %v6892_v8, %v5243_v51 }
 0x5d4   : > { %5371 = vst [vmem:[%s7595_s26 + $0x1e8] sm:$0xff] %v5307_v46 }
 0x5d5   : > { %5373 = vst [vmem:[%s7595_s26 + $0x1f8] sm:$0xff] %v5309_v6 }
 0x5d6   : > { %7102 = shalt.err (!%p7099_p0)
}
 0x5d7   : > { %s7103_s25 = scalar_lea.hbm %s8742_s10, 8192  ;;  %s7107_s29 = scalar_lea.hbm %s8901_s4, 65536 }
 0x5d8   : > { %p7104_p3 = scmp.ne.s32.totalorder %s8742_s10, %s7103_s25  ;;  %p7108_p4 = scmp.lt.s32.totalorder %s8742_s10, %s8901_s4 }
 0x5d9   : > { %p7109_p7 = scmp.lt.s32.totalorder %s7107_s29, %s7103_s25 }
 0x5da   : > { %p7105_p9 = pnand %p7104_p3, %p7404_p1 }
 0x5db   : > { %p7110_p8 = por %p7109_p7, %p7108_p4 }
 0x5dc   : > { %p7106_p10 = pneg %p7105_p9 }
 0x5de   : > { %p7111_p6 = pnand %p7110_p8, %p7106_p10 }
 0x5e0   : > { %7114 = shalt.err (!%p7111_p6)
}
 0x5e1   : > { %s7252_s23 = smov 512   ;;  %s7253_s18 = smov 1024  }
 0x5e2   : > { %s7254_s15 = smov 32  }
 0x5e3   : > { %6183 = dma.vmem_to_hbm [thread:$0]  (%p7404_p1), %s8746_s11, 8192, %s8742_s10, %s8753_s19, %s7252_s23, %s7253_s18, %s7254_s15  }
 0x5e4 PF: > { %s8903_s17 = sld [smem:[#allocation30_spill]] }
 0x5e5   : > { %s8904_s8 = sld [smem:[#allocation21_spill]] }
 0x5ea   : > { %p6212_p11 = scmp.ge.s32.totalorder %s8903_s17, 2 }
 0x5eb   : > { %s5408_s13 = sand.u32 1, %s8904_s8  }
 0x5ec   : > { %p6208_p5 = pnand %p6212_p11, %p7414_p2  ;;  %s5409_s22 = scalar_lea.sflag [#allocation5], %s5408_s13 }
 0x5ee   : > { %p6209_p12 = pneg %p6208_p5 }
 0x5f0   : > { %7184 = dma.done.wait (%p6209_p12), %s5409_s22, 8192  }
 0x5f1   : > { %7186 = vsyncadd (%p6209_p12), %s5409_s22, 4294959104  ;;  %s33_s17 = sadd.s32 1, %s8903_s17   ;;  %s8907_s27 = sld [smem:[#allocation22_spill]] }
 0x5f2   : > { %p8781_p13 = scmp.ge.s32.totalorder %s33_s17, 10   ;;  %s8908_s28 = sld [smem:[#allocation23_spill]] }
 0x5f3   : > { %s8909_s29 = sld [smem:[#allocation36_spill]]  ;;  %s8918_s30 = smov %s7205_s9 }
 0x5f4   : > { %s8910_s11 = sld [smem:[#allocation24_spill]]  ;;  %s8921_s13 = smov %s7233_s16 }
 0x5f5   : > { %s8911_s10 = sld [smem:[#allocation35_spill]] }
 0x5f6   : > { %s8912_s2 = sld [smem:[#allocation28_spill]] }
 0x5f7   : > { %s8913_s12 = sld [smem:[#allocation29_spill]] }
 0x5f8   : > { %s8914_s14 = sld [smem:[#allocation31_spill]] }
 0x5f9   : > { %s8915_s15 = sld [smem:[#allocation32_spill]] }
 0x5fa   : > { %s8916_s19 = sld [smem:[#allocation33_spill]]  ;;  %s8919_s9 = smov %s8910_s11 }
 0x5fc   : > { %s8920_s11 = smov %s8912_s2  ;;  %32 = sbr.rel (!%p8781_p13) target bundleno = 21 (0x15), region = 177 }
 0x600   : > { %s8922_s16 = smov %s8916_s19 }
 0x601   :  { %5414 = vsyncpa [#allocation4], 1 }
 0x602   :  { %5416 = vsyncpa [#allocation4 + $0x1], 1 }
 0x603   :  { %5417 = vsyncpa [#allocation7], 1 }
 0x604   :  { %5419 = vsyncpa [#allocation7 + $0x1], 1 }
 0x605   :  { %5420 = vsyncpa [#allocation10], 1 }
 0x606   :  { %5422 = vsyncpa [#allocation10 + $0x1], 1 }
 0x607   :  { %5423 = vsyncpa [#allocation13], 1 }
 0x608   :  { %5425 = vsyncpa [#allocation13 + $0x1], 1 }
 0x609   :  { %5426 = vsyncpa [#allocation5], 1 }
 0x60a   :  { %5428 = vsyncpa [#allocation5 + $0x1], 1 }

</bundles_post_ra>
